<compile_context>
chip_gen: v7x
topology: tpu7x:2x2x1
jax: 0.10.0
libtpu: 0.0.40
codegen_flags: <defaults>
</compile_context>

<pallas_src>
import functools
import math

import jax
import jax.numpy as jnp
import numpy as np
from jax import lax
from jax.experimental import pallas as pl
from jax.experimental.pallas import tpu as pltpu

LAT_PAD = 128   # lane-dense padding of the prediction output


def _leaky_relu(v):
    return jnp.where(v > 0, v, 0.01 * v)


def _gru_cell(x_f, x_b, h, w):
    """One GRU cell step, PyTorch gate order (r, z, n), per-gate weights.

    w = (wih_f, wih_b, whh, bih, bhh); each entry is a list of 3 per-gate 2-D
    values ([K, H] weights / [1, H] biases).  x_b is the backward half of the
    layer input (None for layer 0, whose input is not direction-concatenated).
    """
    wih_f, wih_b, whh, bih, bhh = w

    def gi(g):
        acc = jnp.dot(x_f, wih_f[g], preferred_element_type=jnp.float32)
        if x_b is not None:
            acc = acc + jnp.dot(x_b, wih_b[g], preferred_element_type=jnp.float32)
        return acc + bih[g]

    def gh(g):
        return jnp.dot(h, whh[g], preferred_element_type=jnp.float32) + bhh[g]

    r = jax.nn.sigmoid(gi(0) + gh(0))
    z = jax.nn.sigmoid(gi(1) + gh(1))
    n = jnp.tanh(gi(2) + r * gh(2))
    return (1.0 - z) * n + z * h


# ---------------------------------------------------------------------------
# Kernel: full VariationalSeq2Seq_baseline forward in one invocation
# ---------------------------------------------------------------------------
def _vseq2seq_kernel(
    # --- encoder inputs ---
    obs_ref,                                                    # [T, B, D]
    ewe1_ref, ebe1_ref, ewe2_ref, ebe2_ref, ewe3_ref, ebe3_ref,
    e_wihf_ref, e_wihb_ref, e_whh_ref, e_bih_ref, e_bhh_ref,    # [L,2,3,*,H]
    # --- decoder inputs ---
    dwe1f_ref, dwe1b_ref, dbe1_ref, dwe2_ref, dbe2_ref,
    d_wihf_ref, d_wihb_ref, d_whh_ref, d_bih_ref, d_bhh_ref,    # [L,2,3,*,H]
    woutf_ref, woutb_ref, bout_ref,                             # [H,LAT_PAD],[1,LAT_PAD]
    # --- output ---
    zhat_ref,                                                   # [T, B, LAT_PAD]
    # --- scratch ---
    emb_ref, seqa_f_ref, seqa_b_ref, seqb_f_ref, seqb_b_ref,    # [T, B, H] each
    *,
    seq_len: int, batch: int, hidden_dim: int, n_layers: int,
):
    T, B, H, L = seq_len, batch, hidden_dim, n_layers

    # ---- hoist all weights out of the time loops (loaded once per call) ----
    def load_gru(wf_ref, wb_ref, wh_ref, bi_ref, bh_ref):
        return [
            [
                (
                    [wf_ref[l, d, g] for g in range(3)],
                    [wb_ref[l, d, g] for g in range(3)],
                    [wh_ref[l, d, g] for g in range(3)],
                    [bi_ref[l, d, g] for g in range(3)],
                    [bh_ref[l, d, g] for g in range(3)],
                )
                for d in range(2)
            ]
            for l in range(L)
        ]

    enc_w = load_gru(e_wihf_ref, e_wihb_ref, e_whh_ref, e_bih_ref, e_bhh_ref)
    dec_w = load_gru(d_wihf_ref, d_wihb_ref, d_whh_ref, d_bih_ref, d_bhh_ref)

    ewe1, ebe1 = ewe1_ref[...], ebe1_ref[...]
    ewe2, ebe2 = ewe2_ref[...], ebe2_ref[...]
    ewe3, ebe3 = ewe3_ref[...], ebe3_ref[...]
    dwe1f, dwe1b, dbe1 = dwe1f_ref[...], dwe1b_ref[...], dbe1_ref[...]
    dwe2, dbe2 = dwe2_ref[...], dbe2_ref[...]
    woutf, woutb, bout = woutf_ref[...], woutb_ref[...], bout_ref[...]

    h0 = jnp.zeros((B, H), jnp.float32)

    # ====================== encoder ======================
    # embedding_z: Linear -> LeakyReLU -> Linear -> LeakyReLU -> Linear -> Tanh
    def emb_body(t, carry):
        x = obs_ref[t]
        e = _leaky_relu(jnp.dot(x, ewe1, preferred_element_type=jnp.float32) + ebe1)
        e = _leaky_relu(jnp.dot(e, ewe2, preferred_element_type=jnp.float32) + ebe2)
        emb_ref[t] = jnp.tanh(jnp.dot(e, ewe3, preferred_element_type=jnp.float32) + ebe3)
        return carry

    lax.fori_loop(0, T, emb_body, 0)

    # stacked bidirectional GRU over the sequence (only h_n is needed downstream)
    enc_hidden = []
    in_f, in_b = emb_ref, None
    out_bufs = [(seqa_f_ref, seqa_b_ref), (seqb_f_ref, seqb_b_ref)]
    for l in range(L):
        write_seq = l < L - 1               # top layer's output sequence is unused
        out_f_ref, out_b_ref = out_bufs[l % 2]
        w_fwd, w_bwd = enc_w[l][0], enc_w[l][1]

        def fwd_body(t, h, in_f=in_f, in_b=in_b, out_f_ref=out_f_ref,
                     w=w_fwd, write_seq=write_seq):
            x_b = in_b[t] if in_b is not None else None
            h = _gru_cell(in_f[t], x_b, h, w)
            if write_seq:
                out_f_ref[t] = h
            return h

        def bwd_body(i, h, in_f=in_f, in_b=in_b, out_b_ref=out_b_ref,
                     w=w_bwd, write_seq=write_seq):
            t = T - 1 - i
            x_b = in_b[t] if in_b is not None else None
            h = _gru_cell(in_f[t], x_b, h, w)
            if write_seq:
                out_b_ref[t] = h
            return h

        enc_hidden.append(lax.fori_loop(0, T, fwd_body, h0))   # h_n[2l]   (fwd)
        enc_hidden.append(lax.fori_loop(0, T, bwd_body, h0))   # h_n[2l+1] (bwd)
        in_f, in_b = out_f_ref, out_b_ref

    # ============== decoder: autoregressive (T-1)-step loop ==============
    zhat_ref[0] = jnp.zeros((B, LAT_PAD), jnp.float32)   # z_hat[0] stays zero

    def dec_body(k, carry):
        out_f, out_b = carry[0], carry[1]
        hs = list(carry[2:])
        # decoder embedding_z on previous output (Linear(2H,H) split in halves)
        e1 = _leaky_relu(
            jnp.dot(out_f, dwe1f, preferred_element_type=jnp.float32)
            + jnp.dot(out_b, dwe1b, preferred_element_type=jnp.float32) + dbe1)
        e2 = _leaky_relu(jnp.dot(e1, dwe2, preferred_element_type=jnp.float32) + dbe2)
        x_f, x_b = e2, None
        new_hs = [None] * (2 * L)
        for l in range(L):
            h_f = _gru_cell(x_f, x_b, hs[2 * l], dec_w[l][0])
            h_b = _gru_cell(x_f, x_b, hs[2 * l + 1], dec_w[l][1])
            new_hs[2 * l], new_hs[2 * l + 1] = h_f, h_b
            x_f, x_b = h_f, h_b
        # fc_out, lane-padded to LAT_PAD columns -> unmasked full-width store
        pred = (jnp.dot(x_f, woutf, preferred_element_type=jnp.float32)
                + jnp.dot(x_b, woutb, preferred_element_type=jnp.float32) + bout)
        zhat_ref[k] = pred
        return (x_f, x_b, *new_hs)

    lax.fori_loop(1, T, dec_body, (h0, h0, *enc_hidden))


# ---------------------------------------------------------------------------
# Wrapper
# ---------------------------------------------------------------------------
def vseq2seq_forward(obsrv, params, *, latent_dim, hidden_dim, n_layers):
    """obsrv [T, B, obser_dim] -> z_hat [T, B, latent_dim]."""
    T, B, D = obsrv.shape
    H, L = hidden_dim, n_layers

    arg_order = (
        "ewe1", "ebe1", "ewe2", "ebe2", "ewe3", "ebe3",
        "e_wihf", "e_wihb", "e_whh", "e_bih", "e_bhh",
        "dwe1f", "dwe1b", "dbe1", "dwe2", "dbe2",
        "d_wihf", "d_wihb", "d_whh", "d_bih", "d_bhh",
        "woutf", "woutb", "bout",
    )
    args = (obsrv,) + tuple(params[k] for k in arg_order)

    # advisory cost estimate so XLA does not treat the fused kernel as free
    cells = 2 * L * (2 * T - 1)                               # GRU cell evals
    flops = int(2 * B * (T * (D * D + D * H + H * H)
                         + (T - 1) * (3 * H * H + 2 * H * LAT_PAD)
                         + cells * 9 * H * H))
    transcendentals = int(B * H * (T + 3 * cells))
    bytes_accessed = int(4 * (sum(int(np.prod(a.shape)) for a in args)
                              + T * B * LAT_PAD))

    kernel = functools.partial(
        _vseq2seq_kernel, seq_len=T, batch=B, hidden_dim=H, n_layers=L)
    vmem = pl.BlockSpec(memory_space=pltpu.MemorySpace.VMEM)

    zhat_pad = pl.pallas_call(
        kernel,
        out_shape=jax.ShapeDtypeStruct((T, B, LAT_PAD), jnp.float32),
        in_specs=[vmem] * len(args),
        out_specs=vmem,
        scratch_shapes=[pltpu.VMEM((T, B, H), jnp.float32) for _ in range(5)],
        cost_estimate=pl.CostEstimate(flops=flops,
                                      transcendentals=transcendentals,
                                      bytes_accessed=bytes_accessed),
    )(*args)

    return zhat_pad[:, :, :latent_dim]


# ---------------------------------------------------------------------------
# Deterministic parameter construction.  GRU weights are stored per layer /
# direction / gate with the layer input split into forward/backward halves
# (equivalent to PyTorch's concatenated layout); Linear weights are [in, out].
# ---------------------------------------------------------------------------
def make_params(key, obser_dim, latent_dim, hidden_dim, n_layers, lat_pad=LAT_PAD):
    assert latent_dim <= lat_pad
    D, H, L, Lat = obser_dim, hidden_dim, n_layers, latent_dim
    keys = iter(jax.random.split(key, 32))

    def u(shape, fan_in):
        bound = 1.0 / math.sqrt(fan_in)
        return jax.random.uniform(next(keys), shape, jnp.float32, -bound, bound)

    woutf = u((H, Lat), 2 * H)
    woutb = u((H, Lat), 2 * H)
    bout = u((1, Lat), 2 * H)
    pad = ((0, 0), (0, lat_pad - Lat))

    return dict(
        # encoder embedding_z: Linear(D,D) -> Linear(D,H) -> Linear(H,H)
        ewe1=u((D, D), D), ebe1=u((1, D), D),
        ewe2=u((D, H), D), ebe2=u((1, H), D),
        ewe3=u((H, H), H), ebe3=u((1, H), H),
        # encoder bidirectional GRU (layer 0 uses only the forward-half input)
        e_wihf=u((L, 2, 3, H, H), H), e_wihb=u((L, 2, 3, H, H), H),
        e_whh=u((L, 2, 3, H, H), H),
        e_bih=u((L, 2, 3, 1, H), H), e_bhh=u((L, 2, 3, 1, H), H),
        # decoder embedding_z: Linear(2H,H) split in halves + Linear(H,H)
        dwe1f=u((H, H), 2 * H), dwe1b=u((H, H), 2 * H), dbe1=u((1, H), 2 * H),
        dwe2=u((H, H), H), dbe2=u((1, H), H),
        # decoder bidirectional GRU
        d_wihf=u((L, 2, 3, H, H), H), d_wihb=u((L, 2, 3, H, H), H),
        d_whh=u((L, 2, 3, H, H), H),
        d_bih=u((L, 2, 3, 1, H), H), d_bhh=u((L, 2, 3, 1, H), H),
        # fc_out: Linear(2H, latent), split and lane-padded to lat_pad columns
        woutf=jnp.pad(woutf, pad), woutb=jnp.pad(woutb, pad),
        bout=jnp.pad(bout, pad),
    )


# ---------------------------------------------------------------------------
# Pure-JAX reference (same math, PyTorch GRU semantics) for a sanity check.
# ---------------------------------------------------------------------------
def reference_forward(obsrv, params, *, latent_dim, hidden_dim, n_layers):
    T, B, D = obsrv.shape
    H, L = hidden_dim, n_layers

    def leaky(v):
        return jnp.where(v > 0, v, 0.01 * v)

    def cell(x_f, x_b, h, wf, wb, wh, bi, bh):
        def gi(g):
            a = x_f @ wf[g]
            if x_b is not None:
                a = a + x_b @ wb[g]
            return a + bi[g]

        def gh(g):
            return h @ wh[g] + bh[g]

        r = jax.nn.sigmoid(gi(0) + gh(0))
        z = jax.nn.sigmoid(gi(1) + gh(1))
        n = jnp.tanh(gi(2) + r * gh(2))
        return (1.0 - z) * n + z * h

    # encoder embedding
    x = obsrv.reshape(T * B, D)
    e = leaky(x @ params["ewe1"] + params["ebe1"])
    e = leaky(e @ params["ewe2"] + params["ebe2"])
    e = jnp.tanh(e @ params["ewe3"] + params["ebe3"])
    emb = e.reshape(T, B, H)
    seq_f = [emb[t] for t in range(T)]
    seq_b = None

    # encoder bidirectional stacked GRU
    enc_hidden = []
    for l in range(L):
        wf, wb = params["e_wihf"][l], params["e_wihb"][l]
        wh = params["e_whh"][l]
        bi, bh = params["e_bih"][l], params["e_bhh"][l]
        h = jnp.zeros((B, H), jnp.float32)
        ys_f = []
        for t in range(T):
            xb = seq_b[t] if seq_b is not None else None
            h = cell(seq_f[t], xb, h, wf[0], wb[0], wh[0], bi[0], bh[0])
            ys_f.append(h)
        enc_hidden.append(h)
        h = jnp.zeros((B, H), jnp.float32)
        ys_b = [None] * T
        for t in range(T - 1, -1, -1):
            xb = seq_b[t] if seq_b is not None else None
            h = cell(seq_f[t], xb, h, wf[1], wb[1], wh[1], bi[1], bh[1])
            ys_b[t] = h
        enc_hidden.append(h)
        seq_f, seq_b = ys_f, ys_b

    # decoder loop
    hs = list(enc_hidden)
    out_f = jnp.zeros((B, H), jnp.float32)
    out_b = jnp.zeros((B, H), jnp.float32)
    woutf = params["woutf"][:, :latent_dim]
    woutb = params["woutb"][:, :latent_dim]
    bout = params["bout"][:, :latent_dim]
    z_hat = [jnp.zeros((B, latent_dim), jnp.float32)]
    for _ in range(1, T):
        e1 = leaky(out_f @ params["dwe1f"] + out_b @ params["dwe1b"] + params["dbe1"])
        e2 = leaky(e1 @ params["dwe2"] + params["dbe2"])
        x_f, x_b = e2, None
        for l in range(L):
            wf, wb = params["d_wihf"][l], params["d_wihb"][l]
            wh = params["d_whh"][l]
            bi, bh = params["d_bih"][l], params["d_bhh"][l]
            h_f = cell(x_f, x_b, hs[2 * l], wf[0], wb[0], wh[0], bi[0], bh[0])
            h_b = cell(x_f, x_b, hs[2 * l + 1], wf[1], wb[1], wh[1], bi[1], bh[1])
            hs[2 * l], hs[2 * l + 1] = h_f, h_b
            x_f, x_b = h_f, h_b
        z_hat.append(x_f @ woutf + x_b @ woutb + bout)
        out_f, out_b = x_f, x_b
    return jnp.stack(z_hat, axis=0)


# ---------------------------------------------------------------------------
if __name__ == "__main__":
    obser_dim = 16
    latent_dim = 8
    hidden_dim = 10            # hard-coded inside VariationalSeq2Seq_baseline
    n_layers = 2
    seq_len = 12
    batch = 8

    key = jax.random.PRNGKey(0)
    k_par, k_obs = jax.random.split(key)
    params = make_params(k_par, obser_dim, latent_dim, hidden_dim, n_layers)
    obsrv = jax.random.normal(k_obs, (seq_len, batch, obser_dim), jnp.float32)

    z_hat = vseq2seq_forward(obsrv, params, latent_dim=latent_dim,
                             hidden_dim=hidden_dim, n_layers=n_layers)
    jax.block_until_ready(z_hat)

    # sanity check against pure-JAX reference
    z_ref = reference_forward(obsrv, params, latent_dim=latent_dim,
                              hidden_dim=hidden_dim, n_layers=n_layers)
    np.testing.assert_allclose(np.asarray(z_hat), np.asarray(z_ref),
                               atol=2e-2, rtol=2e-2)

    assert z_hat.shape == (seq_len, batch, latent_dim)
    assert float(jnp.abs(z_hat[0]).max()) == 0.0   # z_hat[0] stays zero, as in torch
    print("KERNEL_OK")
</pallas_src>

<mosaic_0001>
module attributes {stable_mosaic.version = 11 : i64} {
  func.func @_vseq2seq_kernel(%arg0: memref<12x8x16xf32, #tpu.memory_space<vmem>>, %arg1: memref<16x16xf32, #tpu.memory_space<vmem>>, %arg2: memref<1x16xf32, #tpu.memory_space<vmem>>, %arg3: memref<16x10xf32, #tpu.memory_space<vmem>>, %arg4: memref<1x10xf32, #tpu.memory_space<vmem>>, %arg5: memref<10x10xf32, #tpu.memory_space<vmem>>, %arg6: memref<1x10xf32, #tpu.memory_space<vmem>>, %arg7: memref<2x2x3x10x10xf32, #tpu.memory_space<vmem>>, %arg8: memref<2x2x3x10x10xf32, #tpu.memory_space<vmem>>, %arg9: memref<2x2x3x10x10xf32, #tpu.memory_space<vmem>>, %arg10: memref<2x2x3x1x10xf32, #tpu.memory_space<vmem>>, %arg11: memref<2x2x3x1x10xf32, #tpu.memory_space<vmem>>, %arg12: memref<10x10xf32, #tpu.memory_space<vmem>>, %arg13: memref<10x10xf32, #tpu.memory_space<vmem>>, %arg14: memref<1x10xf32, #tpu.memory_space<vmem>>, %arg15: memref<10x10xf32, #tpu.memory_space<vmem>>, %arg16: memref<1x10xf32, #tpu.memory_space<vmem>>, %arg17: memref<2x2x3x10x10xf32, #tpu.memory_space<vmem>>, %arg18: memref<2x2x3x10x10xf32, #tpu.memory_space<vmem>>, %arg19: memref<2x2x3x10x10xf32, #tpu.memory_space<vmem>>, %arg20: memref<2x2x3x1x10xf32, #tpu.memory_space<vmem>>, %arg21: memref<2x2x3x1x10xf32, #tpu.memory_space<vmem>>, %arg22: memref<10x128xf32, #tpu.memory_space<vmem>>, %arg23: memref<10x128xf32, #tpu.memory_space<vmem>>, %arg24: memref<1x128xf32, #tpu.memory_space<vmem>>, %arg25: memref<12x8x128xf32, #tpu.memory_space<vmem>>, %arg26: memref<12x8x10xf32, #tpu.memory_space<vmem>>, %arg27: memref<12x8x10xf32, #tpu.memory_space<vmem>>, %arg28: memref<12x8x10xf32, #tpu.memory_space<vmem>>, %arg29: memref<12x8x10xf32, #tpu.memory_space<vmem>>, %arg30: memref<12x8x10xf32, #tpu.memory_space<vmem>>) attributes {dimension_semantics = [], scalar_prefetch = 0 : i64, scratch_operands = 5 : i64, tpu.core_type = #tpu.core_type<tc>} {
    %c0 = arith.constant 0 : index
    %c0_0 = arith.constant 0 : index
    %c0_1 = arith.constant 0 : index
    %c0_2 = arith.constant 0 : index
    %c0_3 = arith.constant 0 : index
    %0 = vector.load %arg7[%c0, %c0_0, %c0_1, %c0_2, %c0_3] : memref<2x2x3x10x10xf32, #tpu.memory_space<vmem>>, vector<1x1x1x10x10xf32>
    %1 = vector.shape_cast %0 : vector<1x1x1x10x10xf32> to vector<10x10xf32>
    %c0_4 = arith.constant 0 : index
    %c0_5 = arith.constant 0 : index
    %c1 = arith.constant 1 : index
    %c0_6 = arith.constant 0 : index
    %c0_7 = arith.constant 0 : index
    %2 = vector.load %arg7[%c0_4, %c0_5, %c1, %c0_6, %c0_7] : memref<2x2x3x10x10xf32, #tpu.memory_space<vmem>>, vector<1x1x1x10x10xf32>
    %3 = vector.shape_cast %2 : vector<1x1x1x10x10xf32> to vector<10x10xf32>
    %c0_8 = arith.constant 0 : index
    %c0_9 = arith.constant 0 : index
    %c2 = arith.constant 2 : index
    %c0_10 = arith.constant 0 : index
    %c0_11 = arith.constant 0 : index
    %4 = vector.load %arg7[%c0_8, %c0_9, %c2, %c0_10, %c0_11] : memref<2x2x3x10x10xf32, #tpu.memory_space<vmem>>, vector<1x1x1x10x10xf32>
    %5 = vector.shape_cast %4 : vector<1x1x1x10x10xf32> to vector<10x10xf32>
    %c0_12 = arith.constant 0 : index
    %c0_13 = arith.constant 0 : index
    %c0_14 = arith.constant 0 : index
    %c0_15 = arith.constant 0 : index
    %c0_16 = arith.constant 0 : index
    %6 = vector.load %arg9[%c0_12, %c0_13, %c0_14, %c0_15, %c0_16] : memref<2x2x3x10x10xf32, #tpu.memory_space<vmem>>, vector<1x1x1x10x10xf32>
    %7 = vector.shape_cast %6 : vector<1x1x1x10x10xf32> to vector<10x10xf32>
    %c0_17 = arith.constant 0 : index
    %c0_18 = arith.constant 0 : index
    %c1_19 = arith.constant 1 : index
    %c0_20 = arith.constant 0 : index
    %c0_21 = arith.constant 0 : index
    %8 = vector.load %arg9[%c0_17, %c0_18, %c1_19, %c0_20, %c0_21] : memref<2x2x3x10x10xf32, #tpu.memory_space<vmem>>, vector<1x1x1x10x10xf32>
    %9 = vector.shape_cast %8 : vector<1x1x1x10x10xf32> to vector<10x10xf32>
    %c0_22 = arith.constant 0 : index
    %c0_23 = arith.constant 0 : index
    %c2_24 = arith.constant 2 : index
    %c0_25 = arith.constant 0 : index
    %c0_26 = arith.constant 0 : index
    %10 = vector.load %arg9[%c0_22, %c0_23, %c2_24, %c0_25, %c0_26] : memref<2x2x3x10x10xf32, #tpu.memory_space<vmem>>, vector<1x1x1x10x10xf32>
    %11 = vector.shape_cast %10 : vector<1x1x1x10x10xf32> to vector<10x10xf32>
    %c0_27 = arith.constant 0 : index
    %c0_28 = arith.constant 0 : index
    %c0_29 = arith.constant 0 : index
    %c0_30 = arith.constant 0 : index
    %c0_31 = arith.constant 0 : index
    %12 = vector.load %arg10[%c0_27, %c0_28, %c0_29, %c0_30, %c0_31] : memref<2x2x3x1x10xf32, #tpu.memory_space<vmem>>, vector<1x1x1x1x10xf32>
    %13 = vector.shape_cast %12 : vector<1x1x1x1x10xf32> to vector<1x10xf32>
    %c0_32 = arith.constant 0 : index
    %c0_33 = arith.constant 0 : index
    %c1_34 = arith.constant 1 : index
    %c0_35 = arith.constant 0 : index
    %c0_36 = arith.constant 0 : index
    %14 = vector.load %arg10[%c0_32, %c0_33, %c1_34, %c0_35, %c0_36] : memref<2x2x3x1x10xf32, #tpu.memory_space<vmem>>, vector<1x1x1x1x10xf32>
    %15 = vector.shape_cast %14 : vector<1x1x1x1x10xf32> to vector<1x10xf32>
    %c0_37 = arith.constant 0 : index
    %c0_38 = arith.constant 0 : index
    %c2_39 = arith.constant 2 : index
    %c0_40 = arith.constant 0 : index
    %c0_41 = arith.constant 0 : index
    %16 = vector.load %arg10[%c0_37, %c0_38, %c2_39, %c0_40, %c0_41] : memref<2x2x3x1x10xf32, #tpu.memory_space<vmem>>, vector<1x1x1x1x10xf32>
    %17 = vector.shape_cast %16 : vector<1x1x1x1x10xf32> to vector<1x10xf32>
    %c0_42 = arith.constant 0 : index
    %c0_43 = arith.constant 0 : index
    %c0_44 = arith.constant 0 : index
    %c0_45 = arith.constant 0 : index
    %c0_46 = arith.constant 0 : index
    %18 = vector.load %arg11[%c0_42, %c0_43, %c0_44, %c0_45, %c0_46] : memref<2x2x3x1x10xf32, #tpu.memory_space<vmem>>, vector<1x1x1x1x10xf32>
    %19 = vector.shape_cast %18 : vector<1x1x1x1x10xf32> to vector<1x10xf32>
    %c0_47 = arith.constant 0 : index
    %c0_48 = arith.constant 0 : index
    %c1_49 = arith.constant 1 : index
    %c0_50 = arith.constant 0 : index
    %c0_51 = arith.constant 0 : index
    %20 = vector.load %arg11[%c0_47, %c0_48, %c1_49, %c0_50, %c0_51] : memref<2x2x3x1x10xf32, #tpu.memory_space<vmem>>, vector<1x1x1x1x10xf32>
    %21 = vector.shape_cast %20 : vector<1x1x1x1x10xf32> to vector<1x10xf32>
    %c0_52 = arith.constant 0 : index
    %c0_53 = arith.constant 0 : index
    %c2_54 = arith.constant 2 : index
    %c0_55 = arith.constant 0 : index
    %c0_56 = arith.constant 0 : index
    %22 = vector.load %arg11[%c0_52, %c0_53, %c2_54, %c0_55, %c0_56] : memref<2x2x3x1x10xf32, #tpu.memory_space<vmem>>, vector<1x1x1x1x10xf32>
    %23 = vector.shape_cast %22 : vector<1x1x1x1x10xf32> to vector<1x10xf32>
    %c0_57 = arith.constant 0 : index
    %c1_58 = arith.constant 1 : index
    %c0_59 = arith.constant 0 : index
    %c0_60 = arith.constant 0 : index
    %c0_61 = arith.constant 0 : index
    %24 = vector.load %arg7[%c0_57, %c1_58, %c0_59, %c0_60, %c0_61] : memref<2x2x3x10x10xf32, #tpu.memory_space<vmem>>, vector<1x1x1x10x10xf32>
    %25 = vector.shape_cast %24 : vector<1x1x1x10x10xf32> to vector<10x10xf32>
    %c0_62 = arith.constant 0 : index
    %c1_63 = arith.constant 1 : index
    %c1_64 = arith.constant 1 : index
    %c0_65 = arith.constant 0 : index
    %c0_66 = arith.constant 0 : index
    %26 = vector.load %arg7[%c0_62, %c1_63, %c1_64, %c0_65, %c0_66] : memref<2x2x3x10x10xf32, #tpu.memory_space<vmem>>, vector<1x1x1x10x10xf32>
    %27 = vector.shape_cast %26 : vector<1x1x1x10x10xf32> to vector<10x10xf32>
    %c0_67 = arith.constant 0 : index
    %c1_68 = arith.constant 1 : index
    %c2_69 = arith.constant 2 : index
    %c0_70 = arith.constant 0 : index
    %c0_71 = arith.constant 0 : index
    %28 = vector.load %arg7[%c0_67, %c1_68, %c2_69, %c0_70, %c0_71] : memref<2x2x3x10x10xf32, #tpu.memory_space<vmem>>, vector<1x1x1x10x10xf32>
    %29 = vector.shape_cast %28 : vector<1x1x1x10x10xf32> to vector<10x10xf32>
    %c0_72 = arith.constant 0 : index
    %c1_73 = arith.constant 1 : index
    %c0_74 = arith.constant 0 : index
    %c0_75 = arith.constant 0 : index
    %c0_76 = arith.constant 0 : index
    %30 = vector.load %arg9[%c0_72, %c1_73, %c0_74, %c0_75, %c0_76] : memref<2x2x3x10x10xf32, #tpu.memory_space<vmem>>, vector<1x1x1x10x10xf32>
    %31 = vector.shape_cast %30 : vector<1x1x1x10x10xf32> to vector<10x10xf32>
    %c0_77 = arith.constant 0 : index
    %c1_78 = arith.constant 1 : index
    %c1_79 = arith.constant 1 : index
    %c0_80 = arith.constant 0 : index
    %c0_81 = arith.constant 0 : index
    %32 = vector.load %arg9[%c0_77, %c1_78, %c1_79, %c0_80, %c0_81] : memref<2x2x3x10x10xf32, #tpu.memory_space<vmem>>, vector<1x1x1x10x10xf32>
    %33 = vector.shape_cast %32 : vector<1x1x1x10x10xf32> to vector<10x10xf32>
    %c0_82 = arith.constant 0 : index
    %c1_83 = arith.constant 1 : index
    %c2_84 = arith.constant 2 : index
    %c0_85 = arith.constant 0 : index
    %c0_86 = arith.constant 0 : index
    %34 = vector.load %arg9[%c0_82, %c1_83, %c2_84, %c0_85, %c0_86] : memref<2x2x3x10x10xf32, #tpu.memory_space<vmem>>, vector<1x1x1x10x10xf32>
    %35 = vector.shape_cast %34 : vector<1x1x1x10x10xf32> to vector<10x10xf32>
    %c0_87 = arith.constant 0 : index
    %c1_88 = arith.constant 1 : index
    %c0_89 = arith.constant 0 : index
    %c0_90 = arith.constant 0 : index
    %c0_91 = arith.constant 0 : index
    %36 = vector.load %arg10[%c0_87, %c1_88, %c0_89, %c0_90, %c0_91] : memref<2x2x3x1x10xf32, #tpu.memory_space<vmem>>, vector<1x1x1x1x10xf32>
    %37 = vector.shape_cast %36 : vector<1x1x1x1x10xf32> to vector<1x10xf32>
    %c0_92 = arith.constant 0 : index
    %c1_93 = arith.constant 1 : index
    %c1_94 = arith.constant 1 : index
    %c0_95 = arith.constant 0 : index
    %c0_96 = arith.constant 0 : index
    %38 = vector.load %arg10[%c0_92, %c1_93, %c1_94, %c0_95, %c0_96] : memref<2x2x3x1x10xf32, #tpu.memory_space<vmem>>, vector<1x1x1x1x10xf32>
    %39 = vector.shape_cast %38 : vector<1x1x1x1x10xf32> to vector<1x10xf32>
    %c0_97 = arith.constant 0 : index
    %c1_98 = arith.constant 1 : index
    %c2_99 = arith.constant 2 : index
    %c0_100 = arith.constant 0 : index
    %c0_101 = arith.constant 0 : index
    %40 = vector.load %arg10[%c0_97, %c1_98, %c2_99, %c0_100, %c0_101] : memref<2x2x3x1x10xf32, #tpu.memory_space<vmem>>, vector<1x1x1x1x10xf32>
    %41 = vector.shape_cast %40 : vector<1x1x1x1x10xf32> to vector<1x10xf32>
    %c0_102 = arith.constant 0 : index
    %c1_103 = arith.constant 1 : index
    %c0_104 = arith.constant 0 : index
    %c0_105 = arith.constant 0 : index
    %c0_106 = arith.constant 0 : index
    %42 = vector.load %arg11[%c0_102, %c1_103, %c0_104, %c0_105, %c0_106] : memref<2x2x3x1x10xf32, #tpu.memory_space<vmem>>, vector<1x1x1x1x10xf32>
    %43 = vector.shape_cast %42 : vector<1x1x1x1x10xf32> to vector<1x10xf32>
    %c0_107 = arith.constant 0 : index
    %c1_108 = arith.constant 1 : index
    %c1_109 = arith.constant 1 : index
    %c0_110 = arith.constant 0 : index
    %c0_111 = arith.constant 0 : index
    %44 = vector.load %arg11[%c0_107, %c1_108, %c1_109, %c0_110, %c0_111] : memref<2x2x3x1x10xf32, #tpu.memory_space<vmem>>, vector<1x1x1x1x10xf32>
    %45 = vector.shape_cast %44 : vector<1x1x1x1x10xf32> to vector<1x10xf32>
    %c0_112 = arith.constant 0 : index
    %c1_113 = arith.constant 1 : index
    %c2_114 = arith.constant 2 : index
    %c0_115 = arith.constant 0 : index
    %c0_116 = arith.constant 0 : index
    %46 = vector.load %arg11[%c0_112, %c1_113, %c2_114, %c0_115, %c0_116] : memref<2x2x3x1x10xf32, #tpu.memory_space<vmem>>, vector<1x1x1x1x10xf32>
    %47 = vector.shape_cast %46 : vector<1x1x1x1x10xf32> to vector<1x10xf32>
    %c1_117 = arith.constant 1 : index
    %c0_118 = arith.constant 0 : index
    %c0_119 = arith.constant 0 : index
    %c0_120 = arith.constant 0 : index
    %c0_121 = arith.constant 0 : index
    %48 = vector.load %arg7[%c1_117, %c0_118, %c0_119, %c0_120, %c0_121] : memref<2x2x3x10x10xf32, #tpu.memory_space<vmem>>, vector<1x1x1x10x10xf32>
    %49 = vector.shape_cast %48 : vector<1x1x1x10x10xf32> to vector<10x10xf32>
    %c1_122 = arith.constant 1 : index
    %c0_123 = arith.constant 0 : index
    %c1_124 = arith.constant 1 : index
    %c0_125 = arith.constant 0 : index
    %c0_126 = arith.constant 0 : index
    %50 = vector.load %arg7[%c1_122, %c0_123, %c1_124, %c0_125, %c0_126] : memref<2x2x3x10x10xf32, #tpu.memory_space<vmem>>, vector<1x1x1x10x10xf32>
    %51 = vector.shape_cast %50 : vector<1x1x1x10x10xf32> to vector<10x10xf32>
    %c1_127 = arith.constant 1 : index
    %c0_128 = arith.constant 0 : index
    %c2_129 = arith.constant 2 : index
    %c0_130 = arith.constant 0 : index
    %c0_131 = arith.constant 0 : index
    %52 = vector.load %arg7[%c1_127, %c0_128, %c2_129, %c0_130, %c0_131] : memref<2x2x3x10x10xf32, #tpu.memory_space<vmem>>, vector<1x1x1x10x10xf32>
    %53 = vector.shape_cast %52 : vector<1x1x1x10x10xf32> to vector<10x10xf32>
    %c1_132 = arith.constant 1 : index
    %c0_133 = arith.constant 0 : index
    %c0_134 = arith.constant 0 : index
    %c0_135 = arith.constant 0 : index
    %c0_136 = arith.constant 0 : index
    %54 = vector.load %arg8[%c1_132, %c0_133, %c0_134, %c0_135, %c0_136] : memref<2x2x3x10x10xf32, #tpu.memory_space<vmem>>, vector<1x1x1x10x10xf32>
    %55 = vector.shape_cast %54 : vector<1x1x1x10x10xf32> to vector<10x10xf32>
    %c1_137 = arith.constant 1 : index
    %c0_138 = arith.constant 0 : index
    %c1_139 = arith.constant 1 : index
    %c0_140 = arith.constant 0 : index
    %c0_141 = arith.constant 0 : index
    %56 = vector.load %arg8[%c1_137, %c0_138, %c1_139, %c0_140, %c0_141] : memref<2x2x3x10x10xf32, #tpu.memory_space<vmem>>, vector<1x1x1x10x10xf32>
    %57 = vector.shape_cast %56 : vector<1x1x1x10x10xf32> to vector<10x10xf32>
    %c1_142 = arith.constant 1 : index
    %c0_143 = arith.constant 0 : index
    %c2_144 = arith.constant 2 : index
    %c0_145 = arith.constant 0 : index
    %c0_146 = arith.constant 0 : index
    %58 = vector.load %arg8[%c1_142, %c0_143, %c2_144, %c0_145, %c0_146] : memref<2x2x3x10x10xf32, #tpu.memory_space<vmem>>, vector<1x1x1x10x10xf32>
    %59 = vector.shape_cast %58 : vector<1x1x1x10x10xf32> to vector<10x10xf32>
    %c1_147 = arith.constant 1 : index
    %c0_148 = arith.constant 0 : index
    %c0_149 = arith.constant 0 : index
    %c0_150 = arith.constant 0 : index
    %c0_151 = arith.constant 0 : index
    %60 = vector.load %arg9[%c1_147, %c0_148, %c0_149, %c0_150, %c0_151] : memref<2x2x3x10x10xf32, #tpu.memory_space<vmem>>, vector<1x1x1x10x10xf32>
    %61 = vector.shape_cast %60 : vector<1x1x1x10x10xf32> to vector<10x10xf32>
    %c1_152 = arith.constant 1 : index
    %c0_153 = arith.constant 0 : index
    %c1_154 = arith.constant 1 : index
    %c0_155 = arith.constant 0 : index
    %c0_156 = arith.constant 0 : index
    %62 = vector.load %arg9[%c1_152, %c0_153, %c1_154, %c0_155, %c0_156] : memref<2x2x3x10x10xf32, #tpu.memory_space<vmem>>, vector<1x1x1x10x10xf32>
    %63 = vector.shape_cast %62 : vector<1x1x1x10x10xf32> to vector<10x10xf32>
    %c1_157 = arith.constant 1 : index
    %c0_158 = arith.constant 0 : index
    %c2_159 = arith.constant 2 : index
    %c0_160 = arith.constant 0 : index
    %c0_161 = arith.constant 0 : index
    %64 = vector.load %arg9[%c1_157, %c0_158, %c2_159, %c0_160, %c0_161] : memref<2x2x3x10x10xf32, #tpu.memory_space<vmem>>, vector<1x1x1x10x10xf32>
    %65 = vector.shape_cast %64 : vector<1x1x1x10x10xf32> to vector<10x10xf32>
    %c1_162 = arith.constant 1 : index
    %c0_163 = arith.constant 0 : index
    %c0_164 = arith.constant 0 : index
    %c0_165 = arith.constant 0 : index
    %c0_166 = arith.constant 0 : index
    %66 = vector.load %arg10[%c1_162, %c0_163, %c0_164, %c0_165, %c0_166] : memref<2x2x3x1x10xf32, #tpu.memory_space<vmem>>, vector<1x1x1x1x10xf32>
    %67 = vector.shape_cast %66 : vector<1x1x1x1x10xf32> to vector<1x10xf32>
    %c1_167 = arith.constant 1 : index
    %c0_168 = arith.constant 0 : index
    %c1_169 = arith.constant 1 : index
    %c0_170 = arith.constant 0 : index
    %c0_171 = arith.constant 0 : index
    %68 = vector.load %arg10[%c1_167, %c0_168, %c1_169, %c0_170, %c0_171] : memref<2x2x3x1x10xf32, #tpu.memory_space<vmem>>, vector<1x1x1x1x10xf32>
    %69 = vector.shape_cast %68 : vector<1x1x1x1x10xf32> to vector<1x10xf32>
    %c1_172 = arith.constant 1 : index
    %c0_173 = arith.constant 0 : index
    %c2_174 = arith.constant 2 : index
    %c0_175 = arith.constant 0 : index
    %c0_176 = arith.constant 0 : index
    %70 = vector.load %arg10[%c1_172, %c0_173, %c2_174, %c0_175, %c0_176] : memref<2x2x3x1x10xf32, #tpu.memory_space<vmem>>, vector<1x1x1x1x10xf32>
    %71 = vector.shape_cast %70 : vector<1x1x1x1x10xf32> to vector<1x10xf32>
    %c1_177 = arith.constant 1 : index
    %c0_178 = arith.constant 0 : index
    %c0_179 = arith.constant 0 : index
    %c0_180 = arith.constant 0 : index
    %c0_181 = arith.constant 0 : index
    %72 = vector.load %arg11[%c1_177, %c0_178, %c0_179, %c0_180, %c0_181] : memref<2x2x3x1x10xf32, #tpu.memory_space<vmem>>, vector<1x1x1x1x10xf32>
    %73 = vector.shape_cast %72 : vector<1x1x1x1x10xf32> to vector<1x10xf32>
    %c1_182 = arith.constant 1 : index
    %c0_183 = arith.constant 0 : index
    %c1_184 = arith.constant 1 : index
    %c0_185 = arith.constant 0 : index
    %c0_186 = arith.constant 0 : index
    %74 = vector.load %arg11[%c1_182, %c0_183, %c1_184, %c0_185, %c0_186] : memref<2x2x3x1x10xf32, #tpu.memory_space<vmem>>, vector<1x1x1x1x10xf32>
    %75 = vector.shape_cast %74 : vector<1x1x1x1x10xf32> to vector<1x10xf32>
    %c1_187 = arith.constant 1 : index
    %c0_188 = arith.constant 0 : index
    %c2_189 = arith.constant 2 : index
    %c0_190 = arith.constant 0 : index
    %c0_191 = arith.constant 0 : index
    %76 = vector.load %arg11[%c1_187, %c0_188, %c2_189, %c0_190, %c0_191] : memref<2x2x3x1x10xf32, #tpu.memory_space<vmem>>, vector<1x1x1x1x10xf32>
    %77 = vector.shape_cast %76 : vector<1x1x1x1x10xf32> to vector<1x10xf32>
    %c1_192 = arith.constant 1 : index
    %c1_193 = arith.constant 1 : index
    %c0_194 = arith.constant 0 : index
    %c0_195 = arith.constant 0 : index
    %c0_196 = arith.constant 0 : index
    %78 = vector.load %arg7[%c1_192, %c1_193, %c0_194, %c0_195, %c0_196] : memref<2x2x3x10x10xf32, #tpu.memory_space<vmem>>, vector<1x1x1x10x10xf32>
    %79 = vector.shape_cast %78 : vector<1x1x1x10x10xf32> to vector<10x10xf32>
    %c1_197 = arith.constant 1 : index
    %c1_198 = arith.constant 1 : index
    %c1_199 = arith.constant 1 : index
    %c0_200 = arith.constant 0 : index
    %c0_201 = arith.constant 0 : index
    %80 = vector.load %arg7[%c1_197, %c1_198, %c1_199, %c0_200, %c0_201] : memref<2x2x3x10x10xf32, #tpu.memory_space<vmem>>, vector<1x1x1x10x10xf32>
    %81 = vector.shape_cast %80 : vector<1x1x1x10x10xf32> to vector<10x10xf32>
    %c1_202 = arith.constant 1 : index
    %c1_203 = arith.constant 1 : index
    %c2_204 = arith.constant 2 : index
    %c0_205 = arith.constant 0 : index
    %c0_206 = arith.constant 0 : index
    %82 = vector.load %arg7[%c1_202, %c1_203, %c2_204, %c0_205, %c0_206] : memref<2x2x3x10x10xf32, #tpu.memory_space<vmem>>, vector<1x1x1x10x10xf32>
    %83 = vector.shape_cast %82 : vector<1x1x1x10x10xf32> to vector<10x10xf32>
    %c1_207 = arith.constant 1 : index
    %c1_208 = arith.constant 1 : index
    %c0_209 = arith.constant 0 : index
    %c0_210 = arith.constant 0 : index
    %c0_211 = arith.constant 0 : index
    %84 = vector.load %arg8[%c1_207, %c1_208, %c0_209, %c0_210, %c0_211] : memref<2x2x3x10x10xf32, #tpu.memory_space<vmem>>, vector<1x1x1x10x10xf32>
    %85 = vector.shape_cast %84 : vector<1x1x1x10x10xf32> to vector<10x10xf32>
    %c1_212 = arith.constant 1 : index
    %c1_213 = arith.constant 1 : index
    %c1_214 = arith.constant 1 : index
    %c0_215 = arith.constant 0 : index
    %c0_216 = arith.constant 0 : index
    %86 = vector.load %arg8[%c1_212, %c1_213, %c1_214, %c0_215, %c0_216] : memref<2x2x3x10x10xf32, #tpu.memory_space<vmem>>, vector<1x1x1x10x10xf32>
    %87 = vector.shape_cast %86 : vector<1x1x1x10x10xf32> to vector<10x10xf32>
    %c1_217 = arith.constant 1 : index
    %c1_218 = arith.constant 1 : index
    %c2_219 = arith.constant 2 : index
    %c0_220 = arith.constant 0 : index
    %c0_221 = arith.constant 0 : index
    %88 = vector.load %arg8[%c1_217, %c1_218, %c2_219, %c0_220, %c0_221] : memref<2x2x3x10x10xf32, #tpu.memory_space<vmem>>, vector<1x1x1x10x10xf32>
    %89 = vector.shape_cast %88 : vector<1x1x1x10x10xf32> to vector<10x10xf32>
    %c1_222 = arith.constant 1 : index
    %c1_223 = arith.constant 1 : index
    %c0_224 = arith.constant 0 : index
    %c0_225 = arith.constant 0 : index
    %c0_226 = arith.constant 0 : index
    %90 = vector.load %arg9[%c1_222, %c1_223, %c0_224, %c0_225, %c0_226] : memref<2x2x3x10x10xf32, #tpu.memory_space<vmem>>, vector<1x1x1x10x10xf32>
    %91 = vector.shape_cast %90 : vector<1x1x1x10x10xf32> to vector<10x10xf32>
    %c1_227 = arith.constant 1 : index
    %c1_228 = arith.constant 1 : index
    %c1_229 = arith.constant 1 : index
    %c0_230 = arith.constant 0 : index
    %c0_231 = arith.constant 0 : index
    %92 = vector.load %arg9[%c1_227, %c1_228, %c1_229, %c0_230, %c0_231] : memref<2x2x3x10x10xf32, #tpu.memory_space<vmem>>, vector<1x1x1x10x10xf32>
    %93 = vector.shape_cast %92 : vector<1x1x1x10x10xf32> to vector<10x10xf32>
    %c1_232 = arith.constant 1 : index
    %c1_233 = arith.constant 1 : index
    %c2_234 = arith.constant 2 : index
    %c0_235 = arith.constant 0 : index
    %c0_236 = arith.constant 0 : index
    %94 = vector.load %arg9[%c1_232, %c1_233, %c2_234, %c0_235, %c0_236] : memref<2x2x3x10x10xf32, #tpu.memory_space<vmem>>, vector<1x1x1x10x10xf32>
    %95 = vector.shape_cast %94 : vector<1x1x1x10x10xf32> to vector<10x10xf32>
    %c1_237 = arith.constant 1 : index
    %c1_238 = arith.constant 1 : index
    %c0_239 = arith.constant 0 : index
    %c0_240 = arith.constant 0 : index
    %c0_241 = arith.constant 0 : index
    %96 = vector.load %arg10[%c1_237, %c1_238, %c0_239, %c0_240, %c0_241] : memref<2x2x3x1x10xf32, #tpu.memory_space<vmem>>, vector<1x1x1x1x10xf32>
    %97 = vector.shape_cast %96 : vector<1x1x1x1x10xf32> to vector<1x10xf32>
    %c1_242 = arith.constant 1 : index
    %c1_243 = arith.constant 1 : index
    %c1_244 = arith.constant 1 : index
    %c0_245 = arith.constant 0 : index
    %c0_246 = arith.constant 0 : index
    %98 = vector.load %arg10[%c1_242, %c1_243, %c1_244, %c0_245, %c0_246] : memref<2x2x3x1x10xf32, #tpu.memory_space<vmem>>, vector<1x1x1x1x10xf32>
    %99 = vector.shape_cast %98 : vector<1x1x1x1x10xf32> to vector<1x10xf32>
    %c1_247 = arith.constant 1 : index
    %c1_248 = arith.constant 1 : index
    %c2_249 = arith.constant 2 : index
    %c0_250 = arith.constant 0 : index
    %c0_251 = arith.constant 0 : index
    %100 = vector.load %arg10[%c1_247, %c1_248, %c2_249, %c0_250, %c0_251] : memref<2x2x3x1x10xf32, #tpu.memory_space<vmem>>, vector<1x1x1x1x10xf32>
    %101 = vector.shape_cast %100 : vector<1x1x1x1x10xf32> to vector<1x10xf32>
    %c1_252 = arith.constant 1 : index
    %c1_253 = arith.constant 1 : index
    %c0_254 = arith.constant 0 : index
    %c0_255 = arith.constant 0 : index
    %c0_256 = arith.constant 0 : index
    %102 = vector.load %arg11[%c1_252, %c1_253, %c0_254, %c0_255, %c0_256] : memref<2x2x3x1x10xf32, #tpu.memory_space<vmem>>, vector<1x1x1x1x10xf32>
    %103 = vector.shape_cast %102 : vector<1x1x1x1x10xf32> to vector<1x10xf32>
    %c1_257 = arith.constant 1 : index
    %c1_258 = arith.constant 1 : index
    %c1_259 = arith.constant 1 : index
    %c0_260 = arith.constant 0 : index
    %c0_261 = arith.constant 0 : index
    %104 = vector.load %arg11[%c1_257, %c1_258, %c1_259, %c0_260, %c0_261] : memref<2x2x3x1x10xf32, #tpu.memory_space<vmem>>, vector<1x1x1x1x10xf32>
    %105 = vector.shape_cast %104 : vector<1x1x1x1x10xf32> to vector<1x10xf32>
    %c1_262 = arith.constant 1 : index
    %c1_263 = arith.constant 1 : index
    %c2_264 = arith.constant 2 : index
    %c0_265 = arith.constant 0 : index
    %c0_266 = arith.constant 0 : index
    %106 = vector.load %arg11[%c1_262, %c1_263, %c2_264, %c0_265, %c0_266] : memref<2x2x3x1x10xf32, #tpu.memory_space<vmem>>, vector<1x1x1x1x10xf32>
    %107 = vector.shape_cast %106 : vector<1x1x1x1x10xf32> to vector<1x10xf32>
    %c0_267 = arith.constant 0 : index
    %c0_268 = arith.constant 0 : index
    %c0_269 = arith.constant 0 : index
    %c0_270 = arith.constant 0 : index
    %c0_271 = arith.constant 0 : index
    %108 = vector.load %arg17[%c0_267, %c0_268, %c0_269, %c0_270, %c0_271] : memref<2x2x3x10x10xf32, #tpu.memory_space<vmem>>, vector<1x1x1x10x10xf32>
    %109 = vector.shape_cast %108 : vector<1x1x1x10x10xf32> to vector<10x10xf32>
    %c0_272 = arith.constant 0 : index
    %c0_273 = arith.constant 0 : index
    %c1_274 = arith.constant 1 : index
    %c0_275 = arith.constant 0 : index
    %c0_276 = arith.constant 0 : index
    %110 = vector.load %arg17[%c0_272, %c0_273, %c1_274, %c0_275, %c0_276] : memref<2x2x3x10x10xf32, #tpu.memory_space<vmem>>, vector<1x1x1x10x10xf32>
    %111 = vector.shape_cast %110 : vector<1x1x1x10x10xf32> to vector<10x10xf32>
    %c0_277 = arith.constant 0 : index
    %c0_278 = arith.constant 0 : index
    %c2_279 = arith.constant 2 : index
    %c0_280 = arith.constant 0 : index
    %c0_281 = arith.constant 0 : index
    %112 = vector.load %arg17[%c0_277, %c0_278, %c2_279, %c0_280, %c0_281] : memref<2x2x3x10x10xf32, #tpu.memory_space<vmem>>, vector<1x1x1x10x10xf32>
    %113 = vector.shape_cast %112 : vector<1x1x1x10x10xf32> to vector<10x10xf32>
    %c0_282 = arith.constant 0 : index
    %c0_283 = arith.constant 0 : index
    %c0_284 = arith.constant 0 : index
    %c0_285 = arith.constant 0 : index
    %c0_286 = arith.constant 0 : index
    %114 = vector.load %arg19[%c0_282, %c0_283, %c0_284, %c0_285, %c0_286] : memref<2x2x3x10x10xf32, #tpu.memory_space<vmem>>, vector<1x1x1x10x10xf32>
    %115 = vector.shape_cast %114 : vector<1x1x1x10x10xf32> to vector<10x10xf32>
    %c0_287 = arith.constant 0 : index
    %c0_288 = arith.constant 0 : index
    %c1_289 = arith.constant 1 : index
    %c0_290 = arith.constant 0 : index
    %c0_291 = arith.constant 0 : index
    %116 = vector.load %arg19[%c0_287, %c0_288, %c1_289, %c0_290, %c0_291] : memref<2x2x3x10x10xf32, #tpu.memory_space<vmem>>, vector<1x1x1x10x10xf32>
    %117 = vector.shape_cast %116 : vector<1x1x1x10x10xf32> to vector<10x10xf32>
    %c0_292 = arith.constant 0 : index
    %c0_293 = arith.constant 0 : index
    %c2_294 = arith.constant 2 : index
    %c0_295 = arith.constant 0 : index
    %c0_296 = arith.constant 0 : index
    %118 = vector.load %arg19[%c0_292, %c0_293, %c2_294, %c0_295, %c0_296] : memref<2x2x3x10x10xf32, #tpu.memory_space<vmem>>, vector<1x1x1x10x10xf32>
    %119 = vector.shape_cast %118 : vector<1x1x1x10x10xf32> to vector<10x10xf32>
    %c0_297 = arith.constant 0 : index
    %c0_298 = arith.constant 0 : index
    %c0_299 = arith.constant 0 : index
    %c0_300 = arith.constant 0 : index
    %c0_301 = arith.constant 0 : index
    %120 = vector.load %arg20[%c0_297, %c0_298, %c0_299, %c0_300, %c0_301] : memref<2x2x3x1x10xf32, #tpu.memory_space<vmem>>, vector<1x1x1x1x10xf32>
    %121 = vector.shape_cast %120 : vector<1x1x1x1x10xf32> to vector<1x10xf32>
    %c0_302 = arith.constant 0 : index
    %c0_303 = arith.constant 0 : index
    %c1_304 = arith.constant 1 : index
    %c0_305 = arith.constant 0 : index
    %c0_306 = arith.constant 0 : index
    %122 = vector.load %arg20[%c0_302, %c0_303, %c1_304, %c0_305, %c0_306] : memref<2x2x3x1x10xf32, #tpu.memory_space<vmem>>, vector<1x1x1x1x10xf32>
    %123 = vector.shape_cast %122 : vector<1x1x1x1x10xf32> to vector<1x10xf32>
    %c0_307 = arith.constant 0 : index
    %c0_308 = arith.constant 0 : index
    %c2_309 = arith.constant 2 : index
    %c0_310 = arith.constant 0 : index
    %c0_311 = arith.constant 0 : index
    %124 = vector.load %arg20[%c0_307, %c0_308, %c2_309, %c0_310, %c0_311] : memref<2x2x3x1x10xf32, #tpu.memory_space<vmem>>, vector<1x1x1x1x10xf32>
    %125 = vector.shape_cast %124 : vector<1x1x1x1x10xf32> to vector<1x10xf32>
    %c0_312 = arith.constant 0 : index
    %c0_313 = arith.constant 0 : index
    %c0_314 = arith.constant 0 : index
    %c0_315 = arith.constant 0 : index
    %c0_316 = arith.constant 0 : index
    %126 = vector.load %arg21[%c0_312, %c0_313, %c0_314, %c0_315, %c0_316] : memref<2x2x3x1x10xf32, #tpu.memory_space<vmem>>, vector<1x1x1x1x10xf32>
    %127 = vector.shape_cast %126 : vector<1x1x1x1x10xf32> to vector<1x10xf32>
    %c0_317 = arith.constant 0 : index
    %c0_318 = arith.constant 0 : index
    %c1_319 = arith.constant 1 : index
    %c0_320 = arith.constant 0 : index
    %c0_321 = arith.constant 0 : index
    %128 = vector.load %arg21[%c0_317, %c0_318, %c1_319, %c0_320, %c0_321] : memref<2x2x3x1x10xf32, #tpu.memory_space<vmem>>, vector<1x1x1x1x10xf32>
    %129 = vector.shape_cast %128 : vector<1x1x1x1x10xf32> to vector<1x10xf32>
    %c0_322 = arith.constant 0 : index
    %c0_323 = arith.constant 0 : index
    %c2_324 = arith.constant 2 : index
    %c0_325 = arith.constant 0 : index
    %c0_326 = arith.constant 0 : index
    %130 = vector.load %arg21[%c0_322, %c0_323, %c2_324, %c0_325, %c0_326] : memref<2x2x3x1x10xf32, #tpu.memory_space<vmem>>, vector<1x1x1x1x10xf32>
    %131 = vector.shape_cast %130 : vector<1x1x1x1x10xf32> to vector<1x10xf32>
    %c0_327 = arith.constant 0 : index
    %c1_328 = arith.constant 1 : index
    %c0_329 = arith.constant 0 : index
    %c0_330 = arith.constant 0 : index
    %c0_331 = arith.constant 0 : index
    %132 = vector.load %arg17[%c0_327, %c1_328, %c0_329, %c0_330, %c0_331] : memref<2x2x3x10x10xf32, #tpu.memory_space<vmem>>, vector<1x1x1x10x10xf32>
    %133 = vector.shape_cast %132 : vector<1x1x1x10x10xf32> to vector<10x10xf32>
    %c0_332 = arith.constant 0 : index
    %c1_333 = arith.constant 1 : index
    %c1_334 = arith.constant 1 : index
    %c0_335 = arith.constant 0 : index
    %c0_336 = arith.constant 0 : index
    %134 = vector.load %arg17[%c0_332, %c1_333, %c1_334, %c0_335, %c0_336] : memref<2x2x3x10x10xf32, #tpu.memory_space<vmem>>, vector<1x1x1x10x10xf32>
    %135 = vector.shape_cast %134 : vector<1x1x1x10x10xf32> to vector<10x10xf32>
    %c0_337 = arith.constant 0 : index
    %c1_338 = arith.constant 1 : index
    %c2_339 = arith.constant 2 : index
    %c0_340 = arith.constant 0 : index
    %c0_341 = arith.constant 0 : index
    %136 = vector.load %arg17[%c0_337, %c1_338, %c2_339, %c0_340, %c0_341] : memref<2x2x3x10x10xf32, #tpu.memory_space<vmem>>, vector<1x1x1x10x10xf32>
    %137 = vector.shape_cast %136 : vector<1x1x1x10x10xf32> to vector<10x10xf32>
    %c0_342 = arith.constant 0 : index
    %c1_343 = arith.constant 1 : index
    %c0_344 = arith.constant 0 : index
    %c0_345 = arith.constant 0 : index
    %c0_346 = arith.constant 0 : index
    %138 = vector.load %arg19[%c0_342, %c1_343, %c0_344, %c0_345, %c0_346] : memref<2x2x3x10x10xf32, #tpu.memory_space<vmem>>, vector<1x1x1x10x10xf32>
    %139 = vector.shape_cast %138 : vector<1x1x1x10x10xf32> to vector<10x10xf32>
    %c0_347 = arith.constant 0 : index
    %c1_348 = arith.constant 1 : index
    %c1_349 = arith.constant 1 : index
    %c0_350 = arith.constant 0 : index
    %c0_351 = arith.constant 0 : index
    %140 = vector.load %arg19[%c0_347, %c1_348, %c1_349, %c0_350, %c0_351] : memref<2x2x3x10x10xf32, #tpu.memory_space<vmem>>, vector<1x1x1x10x10xf32>
    %141 = vector.shape_cast %140 : vector<1x1x1x10x10xf32> to vector<10x10xf32>
    %c0_352 = arith.constant 0 : index
    %c1_353 = arith.constant 1 : index
    %c2_354 = arith.constant 2 : index
    %c0_355 = arith.constant 0 : index
    %c0_356 = arith.constant 0 : index
    %142 = vector.load %arg19[%c0_352, %c1_353, %c2_354, %c0_355, %c0_356] : memref<2x2x3x10x10xf32, #tpu.memory_space<vmem>>, vector<1x1x1x10x10xf32>
    %143 = vector.shape_cast %142 : vector<1x1x1x10x10xf32> to vector<10x10xf32>
    %c0_357 = arith.constant 0 : index
    %c1_358 = arith.constant 1 : index
    %c0_359 = arith.constant 0 : index
    %c0_360 = arith.constant 0 : index
    %c0_361 = arith.constant 0 : index
    %144 = vector.load %arg20[%c0_357, %c1_358, %c0_359, %c0_360, %c0_361] : memref<2x2x3x1x10xf32, #tpu.memory_space<vmem>>, vector<1x1x1x1x10xf32>
    %145 = vector.shape_cast %144 : vector<1x1x1x1x10xf32> to vector<1x10xf32>
    %c0_362 = arith.constant 0 : index
    %c1_363 = arith.constant 1 : index
    %c1_364 = arith.constant 1 : index
    %c0_365 = arith.constant 0 : index
    %c0_366 = arith.constant 0 : index
    %146 = vector.load %arg20[%c0_362, %c1_363, %c1_364, %c0_365, %c0_366] : memref<2x2x3x1x10xf32, #tpu.memory_space<vmem>>, vector<1x1x1x1x10xf32>
    %147 = vector.shape_cast %146 : vector<1x1x1x1x10xf32> to vector<1x10xf32>
    %c0_367 = arith.constant 0 : index
    %c1_368 = arith.constant 1 : index
    %c2_369 = arith.constant 2 : index
    %c0_370 = arith.constant 0 : index
    %c0_371 = arith.constant 0 : index
    %148 = vector.load %arg20[%c0_367, %c1_368, %c2_369, %c0_370, %c0_371] : memref<2x2x3x1x10xf32, #tpu.memory_space<vmem>>, vector<1x1x1x1x10xf32>
    %149 = vector.shape_cast %148 : vector<1x1x1x1x10xf32> to vector<1x10xf32>
    %c0_372 = arith.constant 0 : index
    %c1_373 = arith.constant 1 : index
    %c0_374 = arith.constant 0 : index
    %c0_375 = arith.constant 0 : index
    %c0_376 = arith.constant 0 : index
    %150 = vector.load %arg21[%c0_372, %c1_373, %c0_374, %c0_375, %c0_376] : memref<2x2x3x1x10xf32, #tpu.memory_space<vmem>>, vector<1x1x1x1x10xf32>
    %151 = vector.shape_cast %150 : vector<1x1x1x1x10xf32> to vector<1x10xf32>
    %c0_377 = arith.constant 0 : index
    %c1_378 = arith.constant 1 : index
    %c1_379 = arith.constant 1 : index
    %c0_380 = arith.constant 0 : index
    %c0_381 = arith.constant 0 : index
    %152 = vector.load %arg21[%c0_377, %c1_378, %c1_379, %c0_380, %c0_381] : memref<2x2x3x1x10xf32, #tpu.memory_space<vmem>>, vector<1x1x1x1x10xf32>
    %153 = vector.shape_cast %152 : vector<1x1x1x1x10xf32> to vector<1x10xf32>
    %c0_382 = arith.constant 0 : index
    %c1_383 = arith.constant 1 : index
    %c2_384 = arith.constant 2 : index
    %c0_385 = arith.constant 0 : index
    %c0_386 = arith.constant 0 : index
    %154 = vector.load %arg21[%c0_382, %c1_383, %c2_384, %c0_385, %c0_386] : memref<2x2x3x1x10xf32, #tpu.memory_space<vmem>>, vector<1x1x1x1x10xf32>
    %155 = vector.shape_cast %154 : vector<1x1x1x1x10xf32> to vector<1x10xf32>
    %c1_387 = arith.constant 1 : index
    %c0_388 = arith.constant 0 : index
    %c0_389 = arith.constant 0 : index
    %c0_390 = arith.constant 0 : index
    %c0_391 = arith.constant 0 : index
    %156 = vector.load %arg17[%c1_387, %c0_388, %c0_389, %c0_390, %c0_391] : memref<2x2x3x10x10xf32, #tpu.memory_space<vmem>>, vector<1x1x1x10x10xf32>
    %157 = vector.shape_cast %156 : vector<1x1x1x10x10xf32> to vector<10x10xf32>
    %c1_392 = arith.constant 1 : index
    %c0_393 = arith.constant 0 : index
    %c1_394 = arith.constant 1 : index
    %c0_395 = arith.constant 0 : index
    %c0_396 = arith.constant 0 : index
    %158 = vector.load %arg17[%c1_392, %c0_393, %c1_394, %c0_395, %c0_396] : memref<2x2x3x10x10xf32, #tpu.memory_space<vmem>>, vector<1x1x1x10x10xf32>
    %159 = vector.shape_cast %158 : vector<1x1x1x10x10xf32> to vector<10x10xf32>
    %c1_397 = arith.constant 1 : index
    %c0_398 = arith.constant 0 : index
    %c2_399 = arith.constant 2 : index
    %c0_400 = arith.constant 0 : index
    %c0_401 = arith.constant 0 : index
    %160 = vector.load %arg17[%c1_397, %c0_398, %c2_399, %c0_400, %c0_401] : memref<2x2x3x10x10xf32, #tpu.memory_space<vmem>>, vector<1x1x1x10x10xf32>
    %161 = vector.shape_cast %160 : vector<1x1x1x10x10xf32> to vector<10x10xf32>
    %c1_402 = arith.constant 1 : index
    %c0_403 = arith.constant 0 : index
    %c0_404 = arith.constant 0 : index
    %c0_405 = arith.constant 0 : index
    %c0_406 = arith.constant 0 : index
    %162 = vector.load %arg18[%c1_402, %c0_403, %c0_404, %c0_405, %c0_406] : memref<2x2x3x10x10xf32, #tpu.memory_space<vmem>>, vector<1x1x1x10x10xf32>
    %163 = vector.shape_cast %162 : vector<1x1x1x10x10xf32> to vector<10x10xf32>
    %c1_407 = arith.constant 1 : index
    %c0_408 = arith.constant 0 : index
    %c1_409 = arith.constant 1 : index
    %c0_410 = arith.constant 0 : index
    %c0_411 = arith.constant 0 : index
    %164 = vector.load %arg18[%c1_407, %c0_408, %c1_409, %c0_410, %c0_411] : memref<2x2x3x10x10xf32, #tpu.memory_space<vmem>>, vector<1x1x1x10x10xf32>
    %165 = vector.shape_cast %164 : vector<1x1x1x10x10xf32> to vector<10x10xf32>
    %c1_412 = arith.constant 1 : index
    %c0_413 = arith.constant 0 : index
    %c2_414 = arith.constant 2 : index
    %c0_415 = arith.constant 0 : index
    %c0_416 = arith.constant 0 : index
    %166 = vector.load %arg18[%c1_412, %c0_413, %c2_414, %c0_415, %c0_416] : memref<2x2x3x10x10xf32, #tpu.memory_space<vmem>>, vector<1x1x1x10x10xf32>
    %167 = vector.shape_cast %166 : vector<1x1x1x10x10xf32> to vector<10x10xf32>
    %c1_417 = arith.constant 1 : index
    %c0_418 = arith.constant 0 : index
    %c0_419 = arith.constant 0 : index
    %c0_420 = arith.constant 0 : index
    %c0_421 = arith.constant 0 : index
    %168 = vector.load %arg19[%c1_417, %c0_418, %c0_419, %c0_420, %c0_421] : memref<2x2x3x10x10xf32, #tpu.memory_space<vmem>>, vector<1x1x1x10x10xf32>
    %169 = vector.shape_cast %168 : vector<1x1x1x10x10xf32> to vector<10x10xf32>
    %c1_422 = arith.constant 1 : index
    %c0_423 = arith.constant 0 : index
    %c1_424 = arith.constant 1 : index
    %c0_425 = arith.constant 0 : index
    %c0_426 = arith.constant 0 : index
    %170 = vector.load %arg19[%c1_422, %c0_423, %c1_424, %c0_425, %c0_426] : memref<2x2x3x10x10xf32, #tpu.memory_space<vmem>>, vector<1x1x1x10x10xf32>
    %171 = vector.shape_cast %170 : vector<1x1x1x10x10xf32> to vector<10x10xf32>
    %c1_427 = arith.constant 1 : index
    %c0_428 = arith.constant 0 : index
    %c2_429 = arith.constant 2 : index
    %c0_430 = arith.constant 0 : index
    %c0_431 = arith.constant 0 : index
    %172 = vector.load %arg19[%c1_427, %c0_428, %c2_429, %c0_430, %c0_431] : memref<2x2x3x10x10xf32, #tpu.memory_space<vmem>>, vector<1x1x1x10x10xf32>
    %173 = vector.shape_cast %172 : vector<1x1x1x10x10xf32> to vector<10x10xf32>
    %c1_432 = arith.constant 1 : index
    %c0_433 = arith.constant 0 : index
    %c0_434 = arith.constant 0 : index
    %c0_435 = arith.constant 0 : index
    %c0_436 = arith.constant 0 : index
    %174 = vector.load %arg20[%c1_432, %c0_433, %c0_434, %c0_435, %c0_436] : memref<2x2x3x1x10xf32, #tpu.memory_space<vmem>>, vector<1x1x1x1x10xf32>
    %175 = vector.shape_cast %174 : vector<1x1x1x1x10xf32> to vector<1x10xf32>
    %c1_437 = arith.constant 1 : index
    %c0_438 = arith.constant 0 : index
    %c1_439 = arith.constant 1 : index
    %c0_440 = arith.constant 0 : index
    %c0_441 = arith.constant 0 : index
    %176 = vector.load %arg20[%c1_437, %c0_438, %c1_439, %c0_440, %c0_441] : memref<2x2x3x1x10xf32, #tpu.memory_space<vmem>>, vector<1x1x1x1x10xf32>
    %177 = vector.shape_cast %176 : vector<1x1x1x1x10xf32> to vector<1x10xf32>
    %c1_442 = arith.constant 1 : index
    %c0_443 = arith.constant 0 : index
    %c2_444 = arith.constant 2 : index
    %c0_445 = arith.constant 0 : index
    %c0_446 = arith.constant 0 : index
    %178 = vector.load %arg20[%c1_442, %c0_443, %c2_444, %c0_445, %c0_446] : memref<2x2x3x1x10xf32, #tpu.memory_space<vmem>>, vector<1x1x1x1x10xf32>
    %179 = vector.shape_cast %178 : vector<1x1x1x1x10xf32> to vector<1x10xf32>
    %c1_447 = arith.constant 1 : index
    %c0_448 = arith.constant 0 : index
    %c0_449 = arith.constant 0 : index
    %c0_450 = arith.constant 0 : index
    %c0_451 = arith.constant 0 : index
    %180 = vector.load %arg21[%c1_447, %c0_448, %c0_449, %c0_450, %c0_451] : memref<2x2x3x1x10xf32, #tpu.memory_space<vmem>>, vector<1x1x1x1x10xf32>
    %181 = vector.shape_cast %180 : vector<1x1x1x1x10xf32> to vector<1x10xf32>
    %c1_452 = arith.constant 1 : index
    %c0_453 = arith.constant 0 : index
    %c1_454 = arith.constant 1 : index
    %c0_455 = arith.constant 0 : index
    %c0_456 = arith.constant 0 : index
    %182 = vector.load %arg21[%c1_452, %c0_453, %c1_454, %c0_455, %c0_456] : memref<2x2x3x1x10xf32, #tpu.memory_space<vmem>>, vector<1x1x1x1x10xf32>
    %183 = vector.shape_cast %182 : vector<1x1x1x1x10xf32> to vector<1x10xf32>
    %c1_457 = arith.constant 1 : index
    %c0_458 = arith.constant 0 : index
    %c2_459 = arith.constant 2 : index
    %c0_460 = arith.constant 0 : index
    %c0_461 = arith.constant 0 : index
    %184 = vector.load %arg21[%c1_457, %c0_458, %c2_459, %c0_460, %c0_461] : memref<2x2x3x1x10xf32, #tpu.memory_space<vmem>>, vector<1x1x1x1x10xf32>
    %185 = vector.shape_cast %184 : vector<1x1x1x1x10xf32> to vector<1x10xf32>
    %c1_462 = arith.constant 1 : index
    %c1_463 = arith.constant 1 : index
    %c0_464 = arith.constant 0 : index
    %c0_465 = arith.constant 0 : index
    %c0_466 = arith.constant 0 : index
    %186 = vector.load %arg17[%c1_462, %c1_463, %c0_464, %c0_465, %c0_466] : memref<2x2x3x10x10xf32, #tpu.memory_space<vmem>>, vector<1x1x1x10x10xf32>
    %187 = vector.shape_cast %186 : vector<1x1x1x10x10xf32> to vector<10x10xf32>
    %c1_467 = arith.constant 1 : index
    %c1_468 = arith.constant 1 : index
    %c1_469 = arith.constant 1 : index
    %c0_470 = arith.constant 0 : index
    %c0_471 = arith.constant 0 : index
    %188 = vector.load %arg17[%c1_467, %c1_468, %c1_469, %c0_470, %c0_471] : memref<2x2x3x10x10xf32, #tpu.memory_space<vmem>>, vector<1x1x1x10x10xf32>
    %189 = vector.shape_cast %188 : vector<1x1x1x10x10xf32> to vector<10x10xf32>
    %c1_472 = arith.constant 1 : index
    %c1_473 = arith.constant 1 : index
    %c2_474 = arith.constant 2 : index
    %c0_475 = arith.constant 0 : index
    %c0_476 = arith.constant 0 : index
    %190 = vector.load %arg17[%c1_472, %c1_473, %c2_474, %c0_475, %c0_476] : memref<2x2x3x10x10xf32, #tpu.memory_space<vmem>>, vector<1x1x1x10x10xf32>
    %191 = vector.shape_cast %190 : vector<1x1x1x10x10xf32> to vector<10x10xf32>
    %c1_477 = arith.constant 1 : index
    %c1_478 = arith.constant 1 : index
    %c0_479 = arith.constant 0 : index
    %c0_480 = arith.constant 0 : index
    %c0_481 = arith.constant 0 : index
    %192 = vector.load %arg18[%c1_477, %c1_478, %c0_479, %c0_480, %c0_481] : memref<2x2x3x10x10xf32, #tpu.memory_space<vmem>>, vector<1x1x1x10x10xf32>
    %193 = vector.shape_cast %192 : vector<1x1x1x10x10xf32> to vector<10x10xf32>
    %c1_482 = arith.constant 1 : index
    %c1_483 = arith.constant 1 : index
    %c1_484 = arith.constant 1 : index
    %c0_485 = arith.constant 0 : index
    %c0_486 = arith.constant 0 : index
    %194 = vector.load %arg18[%c1_482, %c1_483, %c1_484, %c0_485, %c0_486] : memref<2x2x3x10x10xf32, #tpu.memory_space<vmem>>, vector<1x1x1x10x10xf32>
    %195 = vector.shape_cast %194 : vector<1x1x1x10x10xf32> to vector<10x10xf32>
    %c1_487 = arith.constant 1 : index
    %c1_488 = arith.constant 1 : index
    %c2_489 = arith.constant 2 : index
    %c0_490 = arith.constant 0 : index
    %c0_491 = arith.constant 0 : index
    %196 = vector.load %arg18[%c1_487, %c1_488, %c2_489, %c0_490, %c0_491] : memref<2x2x3x10x10xf32, #tpu.memory_space<vmem>>, vector<1x1x1x10x10xf32>
    %197 = vector.shape_cast %196 : vector<1x1x1x10x10xf32> to vector<10x10xf32>
    %c1_492 = arith.constant 1 : index
    %c1_493 = arith.constant 1 : index
    %c0_494 = arith.constant 0 : index
    %c0_495 = arith.constant 0 : index
    %c0_496 = arith.constant 0 : index
    %198 = vector.load %arg19[%c1_492, %c1_493, %c0_494, %c0_495, %c0_496] : memref<2x2x3x10x10xf32, #tpu.memory_space<vmem>>, vector<1x1x1x10x10xf32>
    %199 = vector.shape_cast %198 : vector<1x1x1x10x10xf32> to vector<10x10xf32>
    %c1_497 = arith.constant 1 : index
    %c1_498 = arith.constant 1 : index
    %c1_499 = arith.constant 1 : index
    %c0_500 = arith.constant 0 : index
    %c0_501 = arith.constant 0 : index
    %200 = vector.load %arg19[%c1_497, %c1_498, %c1_499, %c0_500, %c0_501] : memref<2x2x3x10x10xf32, #tpu.memory_space<vmem>>, vector<1x1x1x10x10xf32>
    %201 = vector.shape_cast %200 : vector<1x1x1x10x10xf32> to vector<10x10xf32>
    %c1_502 = arith.constant 1 : index
    %c1_503 = arith.constant 1 : index
    %c2_504 = arith.constant 2 : index
    %c0_505 = arith.constant 0 : index
    %c0_506 = arith.constant 0 : index
    %202 = vector.load %arg19[%c1_502, %c1_503, %c2_504, %c0_505, %c0_506] : memref<2x2x3x10x10xf32, #tpu.memory_space<vmem>>, vector<1x1x1x10x10xf32>
    %203 = vector.shape_cast %202 : vector<1x1x1x10x10xf32> to vector<10x10xf32>
    %c1_507 = arith.constant 1 : index
    %c1_508 = arith.constant 1 : index
    %c0_509 = arith.constant 0 : index
    %c0_510 = arith.constant 0 : index
    %c0_511 = arith.constant 0 : index
    %204 = vector.load %arg20[%c1_507, %c1_508, %c0_509, %c0_510, %c0_511] : memref<2x2x3x1x10xf32, #tpu.memory_space<vmem>>, vector<1x1x1x1x10xf32>
    %205 = vector.shape_cast %204 : vector<1x1x1x1x10xf32> to vector<1x10xf32>
    %c1_512 = arith.constant 1 : index
    %c1_513 = arith.constant 1 : index
    %c1_514 = arith.constant 1 : index
    %c0_515 = arith.constant 0 : index
    %c0_516 = arith.constant 0 : index
    %206 = vector.load %arg20[%c1_512, %c1_513, %c1_514, %c0_515, %c0_516] : memref<2x2x3x1x10xf32, #tpu.memory_space<vmem>>, vector<1x1x1x1x10xf32>
    %207 = vector.shape_cast %206 : vector<1x1x1x1x10xf32> to vector<1x10xf32>
    %c1_517 = arith.constant 1 : index
    %c1_518 = arith.constant 1 : index
    %c2_519 = arith.constant 2 : index
    %c0_520 = arith.constant 0 : index
    %c0_521 = arith.constant 0 : index
    %208 = vector.load %arg20[%c1_517, %c1_518, %c2_519, %c0_520, %c0_521] : memref<2x2x3x1x10xf32, #tpu.memory_space<vmem>>, vector<1x1x1x1x10xf32>
    %209 = vector.shape_cast %208 : vector<1x1x1x1x10xf32> to vector<1x10xf32>
    %c1_522 = arith.constant 1 : index
    %c1_523 = arith.constant 1 : index
    %c0_524 = arith.constant 0 : index
    %c0_525 = arith.constant 0 : index
    %c0_526 = arith.constant 0 : index
    %210 = vector.load %arg21[%c1_522, %c1_523, %c0_524, %c0_525, %c0_526] : memref<2x2x3x1x10xf32, #tpu.memory_space<vmem>>, vector<1x1x1x1x10xf32>
    %211 = vector.shape_cast %210 : vector<1x1x1x1x10xf32> to vector<1x10xf32>
    %c1_527 = arith.constant 1 : index
    %c1_528 = arith.constant 1 : index
    %c1_529 = arith.constant 1 : index
    %c0_530 = arith.constant 0 : index
    %c0_531 = arith.constant 0 : index
    %212 = vector.load %arg21[%c1_527, %c1_528, %c1_529, %c0_530, %c0_531] : memref<2x2x3x1x10xf32, #tpu.memory_space<vmem>>, vector<1x1x1x1x10xf32>
    %213 = vector.shape_cast %212 : vector<1x1x1x1x10xf32> to vector<1x10xf32>
    %c1_532 = arith.constant 1 : index
    %c1_533 = arith.constant 1 : index
    %c2_534 = arith.constant 2 : index
    %c0_535 = arith.constant 0 : index
    %c0_536 = arith.constant 0 : index
    %214 = vector.load %arg21[%c1_532, %c1_533, %c2_534, %c0_535, %c0_536] : memref<2x2x3x1x10xf32, #tpu.memory_space<vmem>>, vector<1x1x1x1x10xf32>
    %215 = vector.shape_cast %214 : vector<1x1x1x1x10xf32> to vector<1x10xf32>
    %c0_537 = arith.constant 0 : index
    %c0_538 = arith.constant 0 : index
    %216 = vector.load %arg1[%c0_537, %c0_538] : memref<16x16xf32, #tpu.memory_space<vmem>>, vector<16x16xf32>
    %c0_539 = arith.constant 0 : index
    %c0_540 = arith.constant 0 : index
    %217 = vector.load %arg2[%c0_539, %c0_540] : memref<1x16xf32, #tpu.memory_space<vmem>>, vector<1x16xf32>
    %c0_541 = arith.constant 0 : index
    %c0_542 = arith.constant 0 : index
    %218 = vector.load %arg3[%c0_541, %c0_542] : memref<16x10xf32, #tpu.memory_space<vmem>>, vector<16x10xf32>
    %c0_543 = arith.constant 0 : index
    %c0_544 = arith.constant 0 : index
    %219 = vector.load %arg4[%c0_543, %c0_544] : memref<1x10xf32, #tpu.memory_space<vmem>>, vector<1x10xf32>
    %c0_545 = arith.constant 0 : index
    %c0_546 = arith.constant 0 : index
    %220 = vector.load %arg5[%c0_545, %c0_546] : memref<10x10xf32, #tpu.memory_space<vmem>>, vector<10x10xf32>
    %c0_547 = arith.constant 0 : index
    %c0_548 = arith.constant 0 : index
    %221 = vector.load %arg6[%c0_547, %c0_548] : memref<1x10xf32, #tpu.memory_space<vmem>>, vector<1x10xf32>
    %c0_549 = arith.constant 0 : index
    %c0_550 = arith.constant 0 : index
    %222 = vector.load %arg12[%c0_549, %c0_550] : memref<10x10xf32, #tpu.memory_space<vmem>>, vector<10x10xf32>
    %c0_551 = arith.constant 0 : index
    %c0_552 = arith.constant 0 : index
    %223 = vector.load %arg13[%c0_551, %c0_552] : memref<10x10xf32, #tpu.memory_space<vmem>>, vector<10x10xf32>
    %c0_553 = arith.constant 0 : index
    %c0_554 = arith.constant 0 : index
    %224 = vector.load %arg14[%c0_553, %c0_554] : memref<1x10xf32, #tpu.memory_space<vmem>>, vector<1x10xf32>
    %c0_555 = arith.constant 0 : index
    %c0_556 = arith.constant 0 : index
    %225 = vector.load %arg15[%c0_555, %c0_556] : memref<10x10xf32, #tpu.memory_space<vmem>>, vector<10x10xf32>
    %c0_557 = arith.constant 0 : index
    %c0_558 = arith.constant 0 : index
    %226 = vector.load %arg16[%c0_557, %c0_558] : memref<1x10xf32, #tpu.memory_space<vmem>>, vector<1x10xf32>
    %c0_559 = arith.constant 0 : index
    %c0_560 = arith.constant 0 : index
    %227 = vector.load %arg22[%c0_559, %c0_560] : memref<10x128xf32, #tpu.memory_space<vmem>>, vector<10x128xf32>
    %c0_561 = arith.constant 0 : index
    %c0_562 = arith.constant 0 : index
    %228 = vector.load %arg23[%c0_561, %c0_562] : memref<10x128xf32, #tpu.memory_space<vmem>>, vector<10x128xf32>
    %c0_563 = arith.constant 0 : index
    %c0_564 = arith.constant 0 : index
    %229 = vector.load %arg24[%c0_563, %c0_564] : memref<1x128xf32, #tpu.memory_space<vmem>>, vector<1x128xf32>
    %cst = arith.constant 0.000000e+00 : f32
    %230 = vector.broadcast %cst : f32 to vector<8x10xf32>
    %c0_i32 = arith.constant 0 : i32
    %c12_i32 = arith.constant 12 : i32
    %231 = arith.addi %c0_i32, %c12_i32 : i32
    %c1_i32 = arith.constant 1 : i32
    scf.for %arg31 = %c0_i32 to %231 step %c1_i32  : i32 {
      %246 = arith.index_cast %arg31 : i32 to index
      %c0_589 = arith.constant 0 : index
      %c0_590 = arith.constant 0 : index
      %247 = vector.load %arg0[%246, %c0_589, %c0_590] : memref<12x8x16xf32, #tpu.memory_space<vmem>>, vector<1x8x16xf32>
      %248 = vector.shape_cast %247 : vector<1x8x16xf32> to vector<8x16xf32>
      %cst_591 = arith.constant dense<0.000000e+00> : vector<8x16xf32>
      %249 = tpu.matmul %248, %216, %cst_591 {dimension_numbers = #tpu.dot_dimension_numbers<[1], [0], [0], [1], [0, 0, 1, 1], [], []>} : vector<8x16xf32>, vector<16x16xf32>, vector<8x16xf32> -> vector<8x16xf32>
      %250 = vector.broadcast %217 : vector<1x16xf32> to vector<8x16xf32>
      %251 = arith.addf %249, %250 : vector<8x16xf32>
      %cst_592 = arith.constant 0.000000e+00 : f32
      %252 = vector.broadcast %cst_592 : f32 to vector<8x16xf32>
      %253 = arith.cmpf ogt, %251, %252 : vector<8x16xf32>
      %cst_593 = arith.constant 0.00999999977 : f32
      %254 = vector.broadcast %cst_593 : f32 to vector<8x16xf32>
      %255 = arith.mulf %254, %251 : vector<8x16xf32>
      %256 = arith.select %253, %251, %255 : vector<8x16xi1>, vector<8x16xf32>
      %cst_594 = arith.constant dense<0.000000e+00> : vector<8x10xf32>
      %257 = tpu.matmul %256, %218, %cst_594 {dimension_numbers = #tpu.dot_dimension_numbers<[1], [0], [0], [1], [0, 0, 1, 1], [], []>} : vector<8x16xf32>, vector<16x10xf32>, vector<8x10xf32> -> vector<8x10xf32>
      %258 = vector.broadcast %219 : vector<1x10xf32> to vector<8x10xf32>
      %259 = arith.addf %257, %258 : vector<8x10xf32>
      %cst_595 = arith.constant 0.000000e+00 : f32
      %260 = vector.broadcast %cst_595 : f32 to vector<8x10xf32>
      %261 = arith.cmpf ogt, %259, %260 : vector<8x10xf32>
      %cst_596 = arith.constant 0.00999999977 : f32
      %262 = vector.broadcast %cst_596 : f32 to vector<8x10xf32>
      %263 = arith.mulf %262, %259 : vector<8x10xf32>
      %264 = arith.select %261, %259, %263 : vector<8x10xi1>, vector<8x10xf32>
      %cst_597 = arith.constant dense<0.000000e+00> : vector<8x10xf32>
      %265 = tpu.matmul %264, %220, %cst_597 {dimension_numbers = #tpu.dot_dimension_numbers<[1], [0], [0], [1], [0, 0, 1, 1], [], []>} : vector<8x10xf32>, vector<10x10xf32>, vector<8x10xf32> -> vector<8x10xf32>
      %266 = vector.broadcast %221 : vector<1x10xf32> to vector<8x10xf32>
      %267 = arith.addf %265, %266 : vector<8x10xf32>
      %268 = math.tanh %267 : vector<8x10xf32>
      %269 = arith.index_cast %arg31 : i32 to index
      %c0_598 = arith.constant 0 : index
      %c0_599 = arith.constant 0 : index
      %270 = vector.load %arg26[%269, %c0_598, %c0_599] : memref<12x8x10xf32, #tpu.memory_space<vmem>>, vector<1x8x10xf32>
      %271 = vector.shape_cast %270 : vector<1x8x10xf32> to vector<8x10xf32>
      %272 = vector.shape_cast %268 : vector<8x10xf32> to vector<1x8x10xf32>
      tpu.vector_store %arg26[%269, %c0_598, %c0_599], %272 {strides = array<i32>} : memref<12x8x10xf32, #tpu.memory_space<vmem>>, vector<1x8x10xf32>,
    }
    %c12_i32_565 = arith.constant 12 : i32
    %c0_i32_566 = arith.constant 0 : i32
    %c12_i32_567 = arith.constant 12 : i32
    %232 = arith.addi %c0_i32_566, %c12_i32_567 : i32
    %c1_i32_568 = arith.constant 1 : i32
    %233 = scf.for %arg31 = %c0_i32_566 to %232 step %c1_i32_568 iter_args(%arg32 = %230) -> (vector<8x10xf32>)  : i32 {
      %246 = arith.index_cast %arg31 : i32 to index
      %c0_589 = arith.constant 0 : index
      %c0_590 = arith.constant 0 : index
      %247 = vector.load %arg26[%246, %c0_589, %c0_590] : memref<12x8x10xf32, #tpu.memory_space<vmem>>, vector<1x8x10xf32>
      %248 = vector.shape_cast %247 : vector<1x8x10xf32> to vector<8x10xf32>
      %cst_591 = arith.constant dense<0.000000e+00> : vector<8x10xf32>
      %249 = tpu.matmul %248, %1, %cst_591 {dimension_numbers = #tpu.dot_dimension_numbers<[1], [0], [0], [1], [0, 0, 1, 1], [], []>} : vector<8x10xf32>, vector<10x10xf32>, vector<8x10xf32> -> vector<8x10xf32>
      %250 = vector.broadcast %13 : vector<1x10xf32> to vector<8x10xf32>
      %251 = arith.addf %249, %250 : vector<8x10xf32>
      %cst_592 = arith.constant dense<0.000000e+00> : vector<8x10xf32>
      %252 = tpu.matmul %arg32, %7, %cst_592 {dimension_numbers = #tpu.dot_dimension_numbers<[1], [0], [0], [1], [0, 0, 1, 1], [], []>} : vector<8x10xf32>, vector<10x10xf32>, vector<8x10xf32> -> vector<8x10xf32>
      %253 = vector.broadcast %19 : vector<1x10xf32> to vector<8x10xf32>
      %254 = arith.addf %252, %253 : vector<8x10xf32>
      %255 = arith.addf %251, %254 : vector<8x10xf32>
      %256 = arith.negf %255 : vector<8x10xf32>
      %257 = math.exp %256 : vector<8x10xf32>
      %cst_593 = arith.constant 1.000000e+00 : f32
      %258 = vector.broadcast %cst_593 : f32 to vector<8x10xf32>
      %259 = arith.addf %258, %257 : vector<8x10xf32>
      %260 = arith.divf %258, %259 : vector<8x10xf32>
      %cst_594 = arith.constant dense<0.000000e+00> : vector<8x10xf32>
      %261 = tpu.matmul %248, %3, %cst_594 {dimension_numbers = #tpu.dot_dimension_numbers<[1], [0], [0], [1], [0, 0, 1, 1], [], []>} : vector<8x10xf32>, vector<10x10xf32>, vector<8x10xf32> -> vector<8x10xf32>
      %262 = vector.broadcast %15 : vector<1x10xf32> to vector<8x10xf32>
      %263 = arith.addf %261, %262 : vector<8x10xf32>
      %cst_595 = arith.constant dense<0.000000e+00> : vector<8x10xf32>
      %264 = tpu.matmul %arg32, %9, %cst_595 {dimension_numbers = #tpu.dot_dimension_numbers<[1], [0], [0], [1], [0, 0, 1, 1], [], []>} : vector<8x10xf32>, vector<10x10xf32>, vector<8x10xf32> -> vector<8x10xf32>
      %265 = vector.broadcast %21 : vector<1x10xf32> to vector<8x10xf32>
      %266 = arith.addf %264, %265 : vector<8x10xf32>
      %267 = arith.addf %263, %266 : vector<8x10xf32>
      %268 = arith.negf %267 : vector<8x10xf32>
      %269 = math.exp %268 : vector<8x10xf32>
      %cst_596 = arith.constant 1.000000e+00 : f32
      %270 = vector.broadcast %cst_596 : f32 to vector<8x10xf32>
      %271 = arith.addf %270, %269 : vector<8x10xf32>
      %272 = arith.divf %270, %271 : vector<8x10xf32>
      %cst_597 = arith.constant dense<0.000000e+00> : vector<8x10xf32>
      %273 = tpu.matmul %248, %5, %cst_597 {dimension_numbers = #tpu.dot_dimension_numbers<[1], [0], [0], [1], [0, 0, 1, 1], [], []>} : vector<8x10xf32>, vector<10x10xf32>, vector<8x10xf32> -> vector<8x10xf32>
      %274 = vector.broadcast %17 : vector<1x10xf32> to vector<8x10xf32>
      %275 = arith.addf %273, %274 : vector<8x10xf32>
      %cst_598 = arith.constant dense<0.000000e+00> : vector<8x10xf32>
      %276 = tpu.matmul %arg32, %11, %cst_598 {dimension_numbers = #tpu.dot_dimension_numbers<[1], [0], [0], [1], [0, 0, 1, 1], [], []>} : vector<8x10xf32>, vector<10x10xf32>, vector<8x10xf32> -> vector<8x10xf32>
      %277 = vector.broadcast %23 : vector<1x10xf32> to vector<8x10xf32>
      %278 = arith.addf %276, %277 : vector<8x10xf32>
      %279 = arith.mulf %260, %278 : vector<8x10xf32>
      %280 = arith.addf %275, %279 : vector<8x10xf32>
      %281 = math.tanh %280 : vector<8x10xf32>
      %cst_599 = arith.constant 1.000000e+00 : f32
      %282 = vector.broadcast %cst_599 : f32 to vector<8x10xf32>
      %283 = arith.subf %282, %272 : vector<8x10xf32>
      %284 = arith.mulf %283, %281 : vector<8x10xf32>
      %285 = arith.mulf %272, %arg32 : vector<8x10xf32>
      %286 = arith.addf %284, %285 : vector<8x10xf32>
      %287 = arith.index_cast %arg31 : i32 to index
      %c0_600 = arith.constant 0 : index
      %c0_601 = arith.constant 0 : index
      %288 = vector.load %arg27[%287, %c0_600, %c0_601] : memref<12x8x10xf32, #tpu.memory_space<vmem>>, vector<1x8x10xf32>
      %289 = vector.shape_cast %288 : vector<1x8x10xf32> to vector<8x10xf32>
      %290 = vector.shape_cast %286 : vector<8x10xf32> to vector<1x8x10xf32>
      tpu.vector_store %arg27[%287, %c0_600, %c0_601], %290 {strides = array<i32>} : memref<12x8x10xf32, #tpu.memory_space<vmem>>, vector<1x8x10xf32>,
      scf.yield %286 : vector<8x10xf32>
    }
    %c12_i32_569 = arith.constant 12 : i32
    %c0_i32_570 = arith.constant 0 : i32
    %c12_i32_571 = arith.constant 12 : i32
    %234 = arith.addi %c0_i32_570, %c12_i32_571 : i32
    %c1_i32_572 = arith.constant 1 : i32
    %235 = scf.for %arg31 = %c0_i32_570 to %234 step %c1_i32_572 iter_args(%arg32 = %230) -> (vector<8x10xf32>)  : i32 {
      %c11_i32_589 = arith.constant 11 : i32
      %246 = arith.subi %c11_i32_589, %arg31 : i32
      %247 = arith.index_cast %246 : i32 to index
      %c0_590 = arith.constant 0 : index
      %c0_591 = arith.constant 0 : index
      %248 = vector.load %arg26[%247, %c0_590, %c0_591] : memref<12x8x10xf32, #tpu.memory_space<vmem>>, vector<1x8x10xf32>
      %249 = vector.shape_cast %248 : vector<1x8x10xf32> to vector<8x10xf32>
      %cst_592 = arith.constant dense<0.000000e+00> : vector<8x10xf32>
      %250 = tpu.matmul %249, %25, %cst_592 {dimension_numbers = #tpu.dot_dimension_numbers<[1], [0], [0], [1], [0, 0, 1, 1], [], []>} : vector<8x10xf32>, vector<10x10xf32>, vector<8x10xf32> -> vector<8x10xf32>
      %251 = vector.broadcast %37 : vector<1x10xf32> to vector<8x10xf32>
      %252 = arith.addf %250, %251 : vector<8x10xf32>
      %cst_593 = arith.constant dense<0.000000e+00> : vector<8x10xf32>
      %253 = tpu.matmul %arg32, %31, %cst_593 {dimension_numbers = #tpu.dot_dimension_numbers<[1], [0], [0], [1], [0, 0, 1, 1], [], []>} : vector<8x10xf32>, vector<10x10xf32>, vector<8x10xf32> -> vector<8x10xf32>
      %254 = vector.broadcast %43 : vector<1x10xf32> to vector<8x10xf32>
      %255 = arith.addf %253, %254 : vector<8x10xf32>
      %256 = arith.addf %252, %255 : vector<8x10xf32>
      %257 = arith.negf %256 : vector<8x10xf32>
      %258 = math.exp %257 : vector<8x10xf32>
      %cst_594 = arith.constant 1.000000e+00 : f32
      %259 = vector.broadcast %cst_594 : f32 to vector<8x10xf32>
      %260 = arith.addf %259, %258 : vector<8x10xf32>
      %261 = arith.divf %259, %260 : vector<8x10xf32>
      %cst_595 = arith.constant dense<0.000000e+00> : vector<8x10xf32>
      %262 = tpu.matmul %249, %27, %cst_595 {dimension_numbers = #tpu.dot_dimension_numbers<[1], [0], [0], [1], [0, 0, 1, 1], [], []>} : vector<8x10xf32>, vector<10x10xf32>, vector<8x10xf32> -> vector<8x10xf32>
      %263 = vector.broadcast %39 : vector<1x10xf32> to vector<8x10xf32>
      %264 = arith.addf %262, %263 : vector<8x10xf32>
      %cst_596 = arith.constant dense<0.000000e+00> : vector<8x10xf32>
      %265 = tpu.matmul %arg32, %33, %cst_596 {dimension_numbers = #tpu.dot_dimension_numbers<[1], [0], [0], [1], [0, 0, 1, 1], [], []>} : vector<8x10xf32>, vector<10x10xf32>, vector<8x10xf32> -> vector<8x10xf32>
      %266 = vector.broadcast %45 : vector<1x10xf32> to vector<8x10xf32>
      %267 = arith.addf %265, %266 : vector<8x10xf32>
      %268 = arith.addf %264, %267 : vector<8x10xf32>
      %269 = arith.negf %268 : vector<8x10xf32>
      %270 = math.exp %269 : vector<8x10xf32>
      %cst_597 = arith.constant 1.000000e+00 : f32
      %271 = vector.broadcast %cst_597 : f32 to vector<8x10xf32>
      %272 = arith.addf %271, %270 : vector<8x10xf32>
      %273 = arith.divf %271, %272 : vector<8x10xf32>
      %cst_598 = arith.constant dense<0.000000e+00> : vector<8x10xf32>
      %274 = tpu.matmul %249, %29, %cst_598 {dimension_numbers = #tpu.dot_dimension_numbers<[1], [0], [0], [1], [0, 0, 1, 1], [], []>} : vector<8x10xf32>, vector<10x10xf32>, vector<8x10xf32> -> vector<8x10xf32>
      %275 = vector.broadcast %41 : vector<1x10xf32> to vector<8x10xf32>
      %276 = arith.addf %274, %275 : vector<8x10xf32>
      %cst_599 = arith.constant dense<0.000000e+00> : vector<8x10xf32>
      %277 = tpu.matmul %arg32, %35, %cst_599 {dimension_numbers = #tpu.dot_dimension_numbers<[1], [0], [0], [1], [0, 0, 1, 1], [], []>} : vector<8x10xf32>, vector<10x10xf32>, vector<8x10xf32> -> vector<8x10xf32>
      %278 = vector.broadcast %47 : vector<1x10xf32> to vector<8x10xf32>
      %279 = arith.addf %277, %278 : vector<8x10xf32>
      %280 = arith.mulf %261, %279 : vector<8x10xf32>
      %281 = arith.addf %276, %280 : vector<8x10xf32>
      %282 = math.tanh %281 : vector<8x10xf32>
      %cst_600 = arith.constant 1.000000e+00 : f32
      %283 = vector.broadcast %cst_600 : f32 to vector<8x10xf32>
      %284 = arith.subf %283, %273 : vector<8x10xf32>
      %285 = arith.mulf %284, %282 : vector<8x10xf32>
      %286 = arith.mulf %273, %arg32 : vector<8x10xf32>
      %287 = arith.addf %285, %286 : vector<8x10xf32>
      %288 = arith.index_cast %246 : i32 to index
      %c0_601 = arith.constant 0 : index
      %c0_602 = arith.constant 0 : index
      %289 = vector.load %arg28[%288, %c0_601, %c0_602] : memref<12x8x10xf32, #tpu.memory_space<vmem>>, vector<1x8x10xf32>
      %290 = vector.shape_cast %289 : vector<1x8x10xf32> to vector<8x10xf32>
      %291 = vector.shape_cast %287 : vector<8x10xf32> to vector<1x8x10xf32>
      tpu.vector_store %arg28[%288, %c0_601, %c0_602], %291 {strides = array<i32>} : memref<12x8x10xf32, #tpu.memory_space<vmem>>, vector<1x8x10xf32>,
      scf.yield %287 : vector<8x10xf32>
    }
    %c12_i32_573 = arith.constant 12 : i32
    %c0_i32_574 = arith.constant 0 : i32
    %c12_i32_575 = arith.constant 12 : i32
    %236 = arith.addi %c0_i32_574, %c12_i32_575 : i32
    %c1_i32_576 = arith.constant 1 : i32
    %237 = scf.for %arg31 = %c0_i32_574 to %236 step %c1_i32_576 iter_args(%arg32 = %230) -> (vector<8x10xf32>)  : i32 {
      %246 = arith.index_cast %arg31 : i32 to index
      %c0_589 = arith.constant 0 : index
      %c0_590 = arith.constant 0 : index
      %247 = vector.load %arg28[%246, %c0_589, %c0_590] : memref<12x8x10xf32, #tpu.memory_space<vmem>>, vector<1x8x10xf32>
      %248 = vector.shape_cast %247 : vector<1x8x10xf32> to vector<8x10xf32>
      %249 = arith.index_cast %arg31 : i32 to index
      %c0_591 = arith.constant 0 : index
      %c0_592 = arith.constant 0 : index
      %250 = vector.load %arg27[%249, %c0_591, %c0_592] : memref<12x8x10xf32, #tpu.memory_space<vmem>>, vector<1x8x10xf32>
      %251 = vector.shape_cast %250 : vector<1x8x10xf32> to vector<8x10xf32>
      %cst_593 = arith.constant dense<0.000000e+00> : vector<8x10xf32>
      %252 = tpu.matmul %251, %49, %cst_593 {dimension_numbers = #tpu.dot_dimension_numbers<[1], [0], [0], [1], [0, 0, 1, 1], [], []>} : vector<8x10xf32>, vector<10x10xf32>, vector<8x10xf32> -> vector<8x10xf32>
      %cst_594 = arith.constant dense<0.000000e+00> : vector<8x10xf32>
      %253 = tpu.matmul %248, %55, %cst_594 {dimension_numbers = #tpu.dot_dimension_numbers<[1], [0], [0], [1], [0, 0, 1, 1], [], []>} : vector<8x10xf32>, vector<10x10xf32>, vector<8x10xf32> -> vector<8x10xf32>
      %254 = arith.addf %252, %253 : vector<8x10xf32>
      %255 = vector.broadcast %67 : vector<1x10xf32> to vector<8x10xf32>
      %256 = arith.addf %254, %255 : vector<8x10xf32>
      %cst_595 = arith.constant dense<0.000000e+00> : vector<8x10xf32>
      %257 = tpu.matmul %arg32, %61, %cst_595 {dimension_numbers = #tpu.dot_dimension_numbers<[1], [0], [0], [1], [0, 0, 1, 1], [], []>} : vector<8x10xf32>, vector<10x10xf32>, vector<8x10xf32> -> vector<8x10xf32>
      %258 = vector.broadcast %73 : vector<1x10xf32> to vector<8x10xf32>
      %259 = arith.addf %257, %258 : vector<8x10xf32>
      %260 = arith.addf %256, %259 : vector<8x10xf32>
      %261 = arith.negf %260 : vector<8x10xf32>
      %262 = math.exp %261 : vector<8x10xf32>
      %cst_596 = arith.constant 1.000000e+00 : f32
      %263 = vector.broadcast %cst_596 : f32 to vector<8x10xf32>
      %264 = arith.addf %263, %262 : vector<8x10xf32>
      %265 = arith.divf %263, %264 : vector<8x10xf32>
      %cst_597 = arith.constant dense<0.000000e+00> : vector<8x10xf32>
      %266 = tpu.matmul %251, %51, %cst_597 {dimension_numbers = #tpu.dot_dimension_numbers<[1], [0], [0], [1], [0, 0, 1, 1], [], []>} : vector<8x10xf32>, vector<10x10xf32>, vector<8x10xf32> -> vector<8x10xf32>
      %cst_598 = arith.constant dense<0.000000e+00> : vector<8x10xf32>
      %267 = tpu.matmul %248, %57, %cst_598 {dimension_numbers = #tpu.dot_dimension_numbers<[1], [0], [0], [1], [0, 0, 1, 1], [], []>} : vector<8x10xf32>, vector<10x10xf32>, vector<8x10xf32> -> vector<8x10xf32>
      %268 = arith.addf %266, %267 : vector<8x10xf32>
      %269 = vector.broadcast %69 : vector<1x10xf32> to vector<8x10xf32>
      %270 = arith.addf %268, %269 : vector<8x10xf32>
      %cst_599 = arith.constant dense<0.000000e+00> : vector<8x10xf32>
      %271 = tpu.matmul %arg32, %63, %cst_599 {dimension_numbers = #tpu.dot_dimension_numbers<[1], [0], [0], [1], [0, 0, 1, 1], [], []>} : vector<8x10xf32>, vector<10x10xf32>, vector<8x10xf32> -> vector<8x10xf32>
      %272 = vector.broadcast %75 : vector<1x10xf32> to vector<8x10xf32>
      %273 = arith.addf %271, %272 : vector<8x10xf32>
      %274 = arith.addf %270, %273 : vector<8x10xf32>
      %275 = arith.negf %274 : vector<8x10xf32>
      %276 = math.exp %275 : vector<8x10xf32>
      %cst_600 = arith.constant 1.000000e+00 : f32
      %277 = vector.broadcast %cst_600 : f32 to vector<8x10xf32>
      %278 = arith.addf %277, %276 : vector<8x10xf32>
      %279 = arith.divf %277, %278 : vector<8x10xf32>
      %cst_601 = arith.constant dense<0.000000e+00> : vector<8x10xf32>
      %280 = tpu.matmul %251, %53, %cst_601 {dimension_numbers = #tpu.dot_dimension_numbers<[1], [0], [0], [1], [0, 0, 1, 1], [], []>} : vector<8x10xf32>, vector<10x10xf32>, vector<8x10xf32> -> vector<8x10xf32>
      %cst_602 = arith.constant dense<0.000000e+00> : vector<8x10xf32>
      %281 = tpu.matmul %248, %59, %cst_602 {dimension_numbers = #tpu.dot_dimension_numbers<[1], [0], [0], [1], [0, 0, 1, 1], [], []>} : vector<8x10xf32>, vector<10x10xf32>, vector<8x10xf32> -> vector<8x10xf32>
      %282 = arith.addf %280, %281 : vector<8x10xf32>
      %283 = vector.broadcast %71 : vector<1x10xf32> to vector<8x10xf32>
      %284 = arith.addf %282, %283 : vector<8x10xf32>
      %cst_603 = arith.constant dense<0.000000e+00> : vector<8x10xf32>
      %285 = tpu.matmul %arg32, %65, %cst_603 {dimension_numbers = #tpu.dot_dimension_numbers<[1], [0], [0], [1], [0, 0, 1, 1], [], []>} : vector<8x10xf32>, vector<10x10xf32>, vector<8x10xf32> -> vector<8x10xf32>
      %286 = vector.broadcast %77 : vector<1x10xf32> to vector<8x10xf32>
      %287 = arith.addf %285, %286 : vector<8x10xf32>
      %288 = arith.mulf %265, %287 : vector<8x10xf32>
      %289 = arith.addf %284, %288 : vector<8x10xf32>
      %290 = math.tanh %289 : vector<8x10xf32>
      %cst_604 = arith.constant 1.000000e+00 : f32
      %291 = vector.broadcast %cst_604 : f32 to vector<8x10xf32>
      %292 = arith.subf %291, %279 : vector<8x10xf32>
      %293 = arith.mulf %292, %290 : vector<8x10xf32>
      %294 = arith.mulf %279, %arg32 : vector<8x10xf32>
      %295 = arith.addf %293, %294 : vector<8x10xf32>
      scf.yield %295 : vector<8x10xf32>
    }
    %c12_i32_577 = arith.constant 12 : i32
    %c0_i32_578 = arith.constant 0 : i32
    %c12_i32_579 = arith.constant 12 : i32
    %238 = arith.addi %c0_i32_578, %c12_i32_579 : i32
    %c1_i32_580 = arith.constant 1 : i32
    %239 = scf.for %arg31 = %c0_i32_578 to %238 step %c1_i32_580 iter_args(%arg32 = %230) -> (vector<8x10xf32>)  : i32 {
      %c11_i32_589 = arith.constant 11 : i32
      %246 = arith.subi %c11_i32_589, %arg31 : i32
      %247 = arith.index_cast %246 : i32 to index
      %c0_590 = arith.constant 0 : index
      %c0_591 = arith.constant 0 : index
      %248 = vector.load %arg28[%247, %c0_590, %c0_591] : memref<12x8x10xf32, #tpu.memory_space<vmem>>, vector<1x8x10xf32>
      %249 = vector.shape_cast %248 : vector<1x8x10xf32> to vector<8x10xf32>
      %250 = arith.index_cast %246 : i32 to index
      %c0_592 = arith.constant 0 : index
      %c0_593 = arith.constant 0 : index
      %251 = vector.load %arg27[%250, %c0_592, %c0_593] : memref<12x8x10xf32, #tpu.memory_space<vmem>>, vector<1x8x10xf32>
      %252 = vector.shape_cast %251 : vector<1x8x10xf32> to vector<8x10xf32>
      %cst_594 = arith.constant dense<0.000000e+00> : vector<8x10xf32>
      %253 = tpu.matmul %252, %79, %cst_594 {dimension_numbers = #tpu.dot_dimension_numbers<[1], [0], [0], [1], [0, 0, 1, 1], [], []>} : vector<8x10xf32>, vector<10x10xf32>, vector<8x10xf32> -> vector<8x10xf32>
      %cst_595 = arith.constant dense<0.000000e+00> : vector<8x10xf32>
      %254 = tpu.matmul %249, %85, %cst_595 {dimension_numbers = #tpu.dot_dimension_numbers<[1], [0], [0], [1], [0, 0, 1, 1], [], []>} : vector<8x10xf32>, vector<10x10xf32>, vector<8x10xf32> -> vector<8x10xf32>
      %255 = arith.addf %253, %254 : vector<8x10xf32>
      %256 = vector.broadcast %97 : vector<1x10xf32> to vector<8x10xf32>
      %257 = arith.addf %255, %256 : vector<8x10xf32>
      %cst_596 = arith.constant dense<0.000000e+00> : vector<8x10xf32>
      %258 = tpu.matmul %arg32, %91, %cst_596 {dimension_numbers = #tpu.dot_dimension_numbers<[1], [0], [0], [1], [0, 0, 1, 1], [], []>} : vector<8x10xf32>, vector<10x10xf32>, vector<8x10xf32> -> vector<8x10xf32>
      %259 = vector.broadcast %103 : vector<1x10xf32> to vector<8x10xf32>
      %260 = arith.addf %258, %259 : vector<8x10xf32>
      %261 = arith.addf %257, %260 : vector<8x10xf32>
      %262 = arith.negf %261 : vector<8x10xf32>
      %263 = math.exp %262 : vector<8x10xf32>
      %cst_597 = arith.constant 1.000000e+00 : f32
      %264 = vector.broadcast %cst_597 : f32 to vector<8x10xf32>
      %265 = arith.addf %264, %263 : vector<8x10xf32>
      %266 = arith.divf %264, %265 : vector<8x10xf32>
      %cst_598 = arith.constant dense<0.000000e+00> : vector<8x10xf32>
      %267 = tpu.matmul %252, %81, %cst_598 {dimension_numbers = #tpu.dot_dimension_numbers<[1], [0], [0], [1], [0, 0, 1, 1], [], []>} : vector<8x10xf32>, vector<10x10xf32>, vector<8x10xf32> -> vector<8x10xf32>
      %cst_599 = arith.constant dense<0.000000e+00> : vector<8x10xf32>
      %268 = tpu.matmul %249, %87, %cst_599 {dimension_numbers = #tpu.dot_dimension_numbers<[1], [0], [0], [1], [0, 0, 1, 1], [], []>} : vector<8x10xf32>, vector<10x10xf32>, vector<8x10xf32> -> vector<8x10xf32>
      %269 = arith.addf %267, %268 : vector<8x10xf32>
      %270 = vector.broadcast %99 : vector<1x10xf32> to vector<8x10xf32>
      %271 = arith.addf %269, %270 : vector<8x10xf32>
      %cst_600 = arith.constant dense<0.000000e+00> : vector<8x10xf32>
      %272 = tpu.matmul %arg32, %93, %cst_600 {dimension_numbers = #tpu.dot_dimension_numbers<[1], [0], [0], [1], [0, 0, 1, 1], [], []>} : vector<8x10xf32>, vector<10x10xf32>, vector<8x10xf32> -> vector<8x10xf32>
      %273 = vector.broadcast %105 : vector<1x10xf32> to vector<8x10xf32>
      %274 = arith.addf %272, %273 : vector<8x10xf32>
      %275 = arith.addf %271, %274 : vector<8x10xf32>
      %276 = arith.negf %275 : vector<8x10xf32>
      %277 = math.exp %276 : vector<8x10xf32>
      %cst_601 = arith.constant 1.000000e+00 : f32
      %278 = vector.broadcast %cst_601 : f32 to vector<8x10xf32>
      %279 = arith.addf %278, %277 : vector<8x10xf32>
      %280 = arith.divf %278, %279 : vector<8x10xf32>
      %cst_602 = arith.constant dense<0.000000e+00> : vector<8x10xf32>
      %281 = tpu.matmul %252, %83, %cst_602 {dimension_numbers = #tpu.dot_dimension_numbers<[1], [0], [0], [1], [0, 0, 1, 1], [], []>} : vector<8x10xf32>, vector<10x10xf32>, vector<8x10xf32> -> vector<8x10xf32>
      %cst_603 = arith.constant dense<0.000000e+00> : vector<8x10xf32>
      %282 = tpu.matmul %249, %89, %cst_603 {dimension_numbers = #tpu.dot_dimension_numbers<[1], [0], [0], [1], [0, 0, 1, 1], [], []>} : vector<8x10xf32>, vector<10x10xf32>, vector<8x10xf32> -> vector<8x10xf32>
      %283 = arith.addf %281, %282 : vector<8x10xf32>
      %284 = vector.broadcast %101 : vector<1x10xf32> to vector<8x10xf32>
      %285 = arith.addf %283, %284 : vector<8x10xf32>
      %cst_604 = arith.constant dense<0.000000e+00> : vector<8x10xf32>
      %286 = tpu.matmul %arg32, %95, %cst_604 {dimension_numbers = #tpu.dot_dimension_numbers<[1], [0], [0], [1], [0, 0, 1, 1], [], []>} : vector<8x10xf32>, vector<10x10xf32>, vector<8x10xf32> -> vector<8x10xf32>
      %287 = vector.broadcast %107 : vector<1x10xf32> to vector<8x10xf32>
      %288 = arith.addf %286, %287 : vector<8x10xf32>
      %289 = arith.mulf %266, %288 : vector<8x10xf32>
      %290 = arith.addf %285, %289 : vector<8x10xf32>
      %291 = math.tanh %290 : vector<8x10xf32>
      %cst_605 = arith.constant 1.000000e+00 : f32
      %292 = vector.broadcast %cst_605 : f32 to vector<8x10xf32>
      %293 = arith.subf %292, %280 : vector<8x10xf32>
      %294 = arith.mulf %293, %291 : vector<8x10xf32>
      %295 = arith.mulf %280, %arg32 : vector<8x10xf32>
      %296 = arith.addf %294, %295 : vector<8x10xf32>
      scf.yield %296 : vector<8x10xf32>
    }
    %c12_i32_581 = arith.constant 12 : i32
    %cst_582 = arith.constant 0.000000e+00 : f32
    %240 = vector.broadcast %cst_582 : f32 to vector<8x128xf32>
    %c0_583 = arith.constant 0 : index
    %c0_584 = arith.constant 0 : index
    %c0_585 = arith.constant 0 : index
    %241 = vector.load %arg25[%c0_583, %c0_584, %c0_585] : memref<12x8x128xf32, #tpu.memory_space<vmem>>, vector<1x8x128xf32>
    %242 = vector.shape_cast %241 : vector<1x8x128xf32> to vector<8x128xf32>
    %243 = vector.shape_cast %240 : vector<8x128xf32> to vector<1x8x128xf32>
    tpu.vector_store %arg25[%c0_583, %c0_584, %c0_585], %243 {strides = array<i32>} : memref<12x8x128xf32, #tpu.memory_space<vmem>>, vector<1x8x128xf32>,
    %c1_i32_586 = arith.constant 1 : i32
    %c11_i32 = arith.constant 11 : i32
    %244 = arith.addi %c1_i32_586, %c11_i32 : i32
    %c1_i32_587 = arith.constant 1 : i32
    %245:6 = scf.for %arg31 = %c1_i32_586 to %244 step %c1_i32_587 iter_args(%arg32 = %230, %arg33 = %230, %arg34 = %233, %arg35 = %235, %arg36 = %237, %arg37 = %239) -> (vector<8x10xf32>, vector<8x10xf32>, vector<8x10xf32>, vector<8x10xf32>, vector<8x10xf32>, vector<8x10xf32>)  : i32 {
      %cst_589 = arith.constant dense<0.000000e+00> : vector<8x10xf32>
      %246 = tpu.matmul %arg32, %222, %cst_589 {dimension_numbers = #tpu.dot_dimension_numbers<[1], [0], [0], [1], [0, 0, 1, 1], [], []>} : vector<8x10xf32>, vector<10x10xf32>, vector<8x10xf32> -> vector<8x10xf32>
      %cst_590 = arith.constant dense<0.000000e+00> : vector<8x10xf32>
      %247 = tpu.matmul %arg33, %223, %cst_590 {dimension_numbers = #tpu.dot_dimension_numbers<[1], [0], [0], [1], [0, 0, 1, 1], [], []>} : vector<8x10xf32>, vector<10x10xf32>, vector<8x10xf32> -> vector<8x10xf32>
      %248 = arith.addf %246, %247 : vector<8x10xf32>
      %249 = vector.broadcast %224 : vector<1x10xf32> to vector<8x10xf32>
      %250 = arith.addf %248, %249 : vector<8x10xf32>
      %cst_591 = arith.constant 0.000000e+00 : f32
      %251 = vector.broadcast %cst_591 : f32 to vector<8x10xf32>
      %252 = arith.cmpf ogt, %250, %251 : vector<8x10xf32>
      %cst_592 = arith.constant 0.00999999977 : f32
      %253 = vector.broadcast %cst_592 : f32 to vector<8x10xf32>
      %254 = arith.mulf %253, %250 : vector<8x10xf32>
      %255 = arith.select %252, %250, %254 : vector<8x10xi1>, vector<8x10xf32>
      %cst_593 = arith.constant dense<0.000000e+00> : vector<8x10xf32>
      %256 = tpu.matmul %255, %225, %cst_593 {dimension_numbers = #tpu.dot_dimension_numbers<[1], [0], [0], [1], [0, 0, 1, 1], [], []>} : vector<8x10xf32>, vector<10x10xf32>, vector<8x10xf32> -> vector<8x10xf32>
      %257 = vector.broadcast %226 : vector<1x10xf32> to vector<8x10xf32>
      %258 = arith.addf %256, %257 : vector<8x10xf32>
      %cst_594 = arith.constant 0.000000e+00 : f32
      %259 = vector.broadcast %cst_594 : f32 to vector<8x10xf32>
      %260 = arith.cmpf ogt, %258, %259 : vector<8x10xf32>
      %cst_595 = arith.constant 0.00999999977 : f32
      %261 = vector.broadcast %cst_595 : f32 to vector<8x10xf32>
      %262 = arith.mulf %261, %258 : vector<8x10xf32>
      %263 = arith.select %260, %258, %262 : vector<8x10xi1>, vector<8x10xf32>
      %cst_596 = arith.constant dense<0.000000e+00> : vector<8x10xf32>
      %264 = tpu.matmul %263, %109, %cst_596 {dimension_numbers = #tpu.dot_dimension_numbers<[1], [0], [0], [1], [0, 0, 1, 1], [], []>} : vector<8x10xf32>, vector<10x10xf32>, vector<8x10xf32> -> vector<8x10xf32>
      %265 = vector.broadcast %121 : vector<1x10xf32> to vector<8x10xf32>
      %266 = arith.addf %264, %265 : vector<8x10xf32>
      %cst_597 = arith.constant dense<0.000000e+00> : vector<8x10xf32>
      %267 = tpu.matmul %arg34, %115, %cst_597 {dimension_numbers = #tpu.dot_dimension_numbers<[1], [0], [0], [1], [0, 0, 1, 1], [], []>} : vector<8x10xf32>, vector<10x10xf32>, vector<8x10xf32> -> vector<8x10xf32>
      %268 = vector.broadcast %127 : vector<1x10xf32> to vector<8x10xf32>
      %269 = arith.addf %267, %268 : vector<8x10xf32>
      %270 = arith.addf %266, %269 : vector<8x10xf32>
      %271 = arith.negf %270 : vector<8x10xf32>
      %272 = math.exp %271 : vector<8x10xf32>
      %cst_598 = arith.constant 1.000000e+00 : f32
      %273 = vector.broadcast %cst_598 : f32 to vector<8x10xf32>
      %274 = arith.addf %273, %272 : vector<8x10xf32>
      %275 = arith.divf %273, %274 : vector<8x10xf32>
      %cst_599 = arith.constant dense<0.000000e+00> : vector<8x10xf32>
      %276 = tpu.matmul %263, %111, %cst_599 {dimension_numbers = #tpu.dot_dimension_numbers<[1], [0], [0], [1], [0, 0, 1, 1], [], []>} : vector<8x10xf32>, vector<10x10xf32>, vector<8x10xf32> -> vector<8x10xf32>
      %277 = vector.broadcast %123 : vector<1x10xf32> to vector<8x10xf32>
      %278 = arith.addf %276, %277 : vector<8x10xf32>
      %cst_600 = arith.constant dense<0.000000e+00> : vector<8x10xf32>
      %279 = tpu.matmul %arg34, %117, %cst_600 {dimension_numbers = #tpu.dot_dimension_numbers<[1], [0], [0], [1], [0, 0, 1, 1], [], []>} : vector<8x10xf32>, vector<10x10xf32>, vector<8x10xf32> -> vector<8x10xf32>
      %280 = vector.broadcast %129 : vector<1x10xf32> to vector<8x10xf32>
      %281 = arith.addf %279, %280 : vector<8x10xf32>
      %282 = arith.addf %278, %281 : vector<8x10xf32>
      %283 = arith.negf %282 : vector<8x10xf32>
      %284 = math.exp %283 : vector<8x10xf32>
      %cst_601 = arith.constant 1.000000e+00 : f32
      %285 = vector.broadcast %cst_601 : f32 to vector<8x10xf32>
      %286 = arith.addf %285, %284 : vector<8x10xf32>
      %287 = arith.divf %285, %286 : vector<8x10xf32>
      %cst_602 = arith.constant dense<0.000000e+00> : vector<8x10xf32>
      %288 = tpu.matmul %263, %113, %cst_602 {dimension_numbers = #tpu.dot_dimension_numbers<[1], [0], [0], [1], [0, 0, 1, 1], [], []>} : vector<8x10xf32>, vector<10x10xf32>, vector<8x10xf32> -> vector<8x10xf32>
      %289 = vector.broadcast %125 : vector<1x10xf32> to vector<8x10xf32>
      %290 = arith.addf %288, %289 : vector<8x10xf32>
      %cst_603 = arith.constant dense<0.000000e+00> : vector<8x10xf32>
      %291 = tpu.matmul %arg34, %119, %cst_603 {dimension_numbers = #tpu.dot_dimension_numbers<[1], [0], [0], [1], [0, 0, 1, 1], [], []>} : vector<8x10xf32>, vector<10x10xf32>, vector<8x10xf32> -> vector<8x10xf32>
      %292 = vector.broadcast %131 : vector<1x10xf32> to vector<8x10xf32>
      %293 = arith.addf %291, %292 : vector<8x10xf32>
      %294 = arith.mulf %275, %293 : vector<8x10xf32>
      %295 = arith.addf %290, %294 : vector<8x10xf32>
      %296 = math.tanh %295 : vector<8x10xf32>
      %cst_604 = arith.constant 1.000000e+00 : f32
      %297 = vector.broadcast %cst_604 : f32 to vector<8x10xf32>
      %298 = arith.subf %297, %287 : vector<8x10xf32>
      %299 = arith.mulf %298, %296 : vector<8x10xf32>
      %300 = arith.mulf %287, %arg34 : vector<8x10xf32>
      %301 = arith.addf %299, %300 : vector<8x10xf32>
      %cst_605 = arith.constant dense<0.000000e+00> : vector<8x10xf32>
      %302 = tpu.matmul %263, %133, %cst_605 {dimension_numbers = #tpu.dot_dimension_numbers<[1], [0], [0], [1], [0, 0, 1, 1], [], []>} : vector<8x10xf32>, vector<10x10xf32>, vector<8x10xf32> -> vector<8x10xf32>
      %303 = vector.broadcast %145 : vector<1x10xf32> to vector<8x10xf32>
      %304 = arith.addf %302, %303 : vector<8x10xf32>
      %cst_606 = arith.constant dense<0.000000e+00> : vector<8x10xf32>
      %305 = tpu.matmul %arg35, %139, %cst_606 {dimension_numbers = #tpu.dot_dimension_numbers<[1], [0], [0], [1], [0, 0, 1, 1], [], []>} : vector<8x10xf32>, vector<10x10xf32>, vector<8x10xf32> -> vector<8x10xf32>
      %306 = vector.broadcast %151 : vector<1x10xf32> to vector<8x10xf32>
      %307 = arith.addf %305, %306 : vector<8x10xf32>
      %308 = arith.addf %304, %307 : vector<8x10xf32>
      %309 = arith.negf %308 : vector<8x10xf32>
      %310 = math.exp %309 : vector<8x10xf32>
      %cst_607 = arith.constant 1.000000e+00 : f32
      %311 = vector.broadcast %cst_607 : f32 to vector<8x10xf32>
      %312 = arith.addf %311, %310 : vector<8x10xf32>
      %313 = arith.divf %311, %312 : vector<8x10xf32>
      %cst_608 = arith.constant dense<0.000000e+00> : vector<8x10xf32>
      %314 = tpu.matmul %263, %135, %cst_608 {dimension_numbers = #tpu.dot_dimension_numbers<[1], [0], [0], [1], [0, 0, 1, 1], [], []>} : vector<8x10xf32>, vector<10x10xf32>, vector<8x10xf32> -> vector<8x10xf32>
      %315 = vector.broadcast %147 : vector<1x10xf32> to vector<8x10xf32>
      %316 = arith.addf %314, %315 : vector<8x10xf32>
      %cst_609 = arith.constant dense<0.000000e+00> : vector<8x10xf32>
      %317 = tpu.matmul %arg35, %141, %cst_609 {dimension_numbers = #tpu.dot_dimension_numbers<[1], [0], [0], [1], [0, 0, 1, 1], [], []>} : vector<8x10xf32>, vector<10x10xf32>, vector<8x10xf32> -> vector<8x10xf32>
      %318 = vector.broadcast %153 : vector<1x10xf32> to vector<8x10xf32>
      %319 = arith.addf %317, %318 : vector<8x10xf32>
      %320 = arith.addf %316, %319 : vector<8x10xf32>
      %321 = arith.negf %320 : vector<8x10xf32>
      %322 = math.exp %321 : vector<8x10xf32>
      %cst_610 = arith.constant 1.000000e+00 : f32
      %323 = vector.broadcast %cst_610 : f32 to vector<8x10xf32>
      %324 = arith.addf %323, %322 : vector<8x10xf32>
      %325 = arith.divf %323, %324 : vector<8x10xf32>
      %cst_611 = arith.constant dense<0.000000e+00> : vector<8x10xf32>
      %326 = tpu.matmul %263, %137, %cst_611 {dimension_numbers = #tpu.dot_dimension_numbers<[1], [0], [0], [1], [0, 0, 1, 1], [], []>} : vector<8x10xf32>, vector<10x10xf32>, vector<8x10xf32> -> vector<8x10xf32>
      %327 = vector.broadcast %149 : vector<1x10xf32> to vector<8x10xf32>
      %328 = arith.addf %326, %327 : vector<8x10xf32>
      %cst_612 = arith.constant dense<0.000000e+00> : vector<8x10xf32>
      %329 = tpu.matmul %arg35, %143, %cst_612 {dimension_numbers = #tpu.dot_dimension_numbers<[1], [0], [0], [1], [0, 0, 1, 1], [], []>} : vector<8x10xf32>, vector<10x10xf32>, vector<8x10xf32> -> vector<8x10xf32>
      %330 = vector.broadcast %155 : vector<1x10xf32> to vector<8x10xf32>
      %331 = arith.addf %329, %330 : vector<8x10xf32>
      %332 = arith.mulf %313, %331 : vector<8x10xf32>
      %333 = arith.addf %328, %332 : vector<8x10xf32>
      %334 = math.tanh %333 : vector<8x10xf32>
      %cst_613 = arith.constant 1.000000e+00 : f32
      %335 = vector.broadcast %cst_613 : f32 to vector<8x10xf32>
      %336 = arith.subf %335, %325 : vector<8x10xf32>
      %337 = arith.mulf %336, %334 : vector<8x10xf32>
      %338 = arith.mulf %325, %arg35 : vector<8x10xf32>
      %339 = arith.addf %337, %338 : vector<8x10xf32>
      %cst_614 = arith.constant dense<0.000000e+00> : vector<8x10xf32>
      %340 = tpu.matmul %301, %157, %cst_614 {dimension_numbers = #tpu.dot_dimension_numbers<[1], [0], [0], [1], [0, 0, 1, 1], [], []>} : vector<8x10xf32>, vector<10x10xf32>, vector<8x10xf32> -> vector<8x10xf32>
      %cst_615 = arith.constant dense<0.000000e+00> : vector<8x10xf32>
      %341 = tpu.matmul %339, %163, %cst_615 {dimension_numbers = #tpu.dot_dimension_numbers<[1], [0], [0], [1], [0, 0, 1, 1], [], []>} : vector<8x10xf32>, vector<10x10xf32>, vector<8x10xf32> -> vector<8x10xf32>
      %342 = arith.addf %340, %341 : vector<8x10xf32>
      %343 = vector.broadcast %175 : vector<1x10xf32> to vector<8x10xf32>
      %344 = arith.addf %342, %343 : vector<8x10xf32>
      %cst_616 = arith.constant dense<0.000000e+00> : vector<8x10xf32>
      %345 = tpu.matmul %arg36, %169, %cst_616 {dimension_numbers = #tpu.dot_dimension_numbers<[1], [0], [0], [1], [0, 0, 1, 1], [], []>} : vector<8x10xf32>, vector<10x10xf32>, vector<8x10xf32> -> vector<8x10xf32>
      %346 = vector.broadcast %181 : vector<1x10xf32> to vector<8x10xf32>
      %347 = arith.addf %345, %346 : vector<8x10xf32>
      %348 = arith.addf %344, %347 : vector<8x10xf32>
      %349 = arith.negf %348 : vector<8x10xf32>
      %350 = math.exp %349 : vector<8x10xf32>
      %cst_617 = arith.constant 1.000000e+00 : f32
      %351 = vector.broadcast %cst_617 : f32 to vector<8x10xf32>
      %352 = arith.addf %351, %350 : vector<8x10xf32>
      %353 = arith.divf %351, %352 : vector<8x10xf32>
      %cst_618 = arith.constant dense<0.000000e+00> : vector<8x10xf32>
      %354 = tpu.matmul %301, %159, %cst_618 {dimension_numbers = #tpu.dot_dimension_numbers<[1], [0], [0], [1], [0, 0, 1, 1], [], []>} : vector<8x10xf32>, vector<10x10xf32>, vector<8x10xf32> -> vector<8x10xf32>
      %cst_619 = arith.constant dense<0.000000e+00> : vector<8x10xf32>
      %355 = tpu.matmul %339, %165, %cst_619 {dimension_numbers = #tpu.dot_dimension_numbers<[1], [0], [0], [1], [0, 0, 1, 1], [], []>} : vector<8x10xf32>, vector<10x10xf32>, vector<8x10xf32> -> vector<8x10xf32>
      %356 = arith.addf %354, %355 : vector<8x10xf32>
      %357 = vector.broadcast %177 : vector<1x10xf32> to vector<8x10xf32>
      %358 = arith.addf %356, %357 : vector<8x10xf32>
      %cst_620 = arith.constant dense<0.000000e+00> : vector<8x10xf32>
      %359 = tpu.matmul %arg36, %171, %cst_620 {dimension_numbers = #tpu.dot_dimension_numbers<[1], [0], [0], [1], [0, 0, 1, 1], [], []>} : vector<8x10xf32>, vector<10x10xf32>, vector<8x10xf32> -> vector<8x10xf32>
      %360 = vector.broadcast %183 : vector<1x10xf32> to vector<8x10xf32>
      %361 = arith.addf %359, %360 : vector<8x10xf32>
      %362 = arith.addf %358, %361 : vector<8x10xf32>
      %363 = arith.negf %362 : vector<8x10xf32>
      %364 = math.exp %363 : vector<8x10xf32>
      %cst_621 = arith.constant 1.000000e+00 : f32
      %365 = vector.broadcast %cst_621 : f32 to vector<8x10xf32>
      %366 = arith.addf %365, %364 : vector<8x10xf32>
      %367 = arith.divf %365, %366 : vector<8x10xf32>
      %cst_622 = arith.constant dense<0.000000e+00> : vector<8x10xf32>
      %368 = tpu.matmul %301, %161, %cst_622 {dimension_numbers = #tpu.dot_dimension_numbers<[1], [0], [0], [1], [0, 0, 1, 1], [], []>} : vector<8x10xf32>, vector<10x10xf32>, vector<8x10xf32> -> vector<8x10xf32>
      %cst_623 = arith.constant dense<0.000000e+00> : vector<8x10xf32>
      %369 = tpu.matmul %339, %167, %cst_623 {dimension_numbers = #tpu.dot_dimension_numbers<[1], [0], [0], [1], [0, 0, 1, 1], [], []>} : vector<8x10xf32>, vector<10x10xf32>, vector<8x10xf32> -> vector<8x10xf32>
      %370 = arith.addf %368, %369 : vector<8x10xf32>
      %371 = vector.broadcast %179 : vector<1x10xf32> to vector<8x10xf32>
      %372 = arith.addf %370, %371 : vector<8x10xf32>
      %cst_624 = arith.constant dense<0.000000e+00> : vector<8x10xf32>
      %373 = tpu.matmul %arg36, %173, %cst_624 {dimension_numbers = #tpu.dot_dimension_numbers<[1], [0], [0], [1], [0, 0, 1, 1], [], []>} : vector<8x10xf32>, vector<10x10xf32>, vector<8x10xf32> -> vector<8x10xf32>
      %374 = vector.broadcast %185 : vector<1x10xf32> to vector<8x10xf32>
      %375 = arith.addf %373, %374 : vector<8x10xf32>
      %376 = arith.mulf %353, %375 : vector<8x10xf32>
      %377 = arith.addf %372, %376 : vector<8x10xf32>
      %378 = math.tanh %377 : vector<8x10xf32>
      %cst_625 = arith.constant 1.000000e+00 : f32
      %379 = vector.broadcast %cst_625 : f32 to vector<8x10xf32>
      %380 = arith.subf %379, %367 : vector<8x10xf32>
      %381 = arith.mulf %380, %378 : vector<8x10xf32>
      %382 = arith.mulf %367, %arg36 : vector<8x10xf32>
      %383 = arith.addf %381, %382 : vector<8x10xf32>
      %cst_626 = arith.constant dense<0.000000e+00> : vector<8x10xf32>
      %384 = tpu.matmul %301, %187, %cst_626 {dimension_numbers = #tpu.dot_dimension_numbers<[1], [0], [0], [1], [0, 0, 1, 1], [], []>} : vector<8x10xf32>, vector<10x10xf32>, vector<8x10xf32> -> vector<8x10xf32>
      %cst_627 = arith.constant dense<0.000000e+00> : vector<8x10xf32>
      %385 = tpu.matmul %339, %193, %cst_627 {dimension_numbers = #tpu.dot_dimension_numbers<[1], [0], [0], [1], [0, 0, 1, 1], [], []>} : vector<8x10xf32>, vector<10x10xf32>, vector<8x10xf32> -> vector<8x10xf32>
      %386 = arith.addf %384, %385 : vector<8x10xf32>
      %387 = vector.broadcast %205 : vector<1x10xf32> to vector<8x10xf32>
      %388 = arith.addf %386, %387 : vector<8x10xf32>
      %cst_628 = arith.constant dense<0.000000e+00> : vector<8x10xf32>
      %389 = tpu.matmul %arg37, %199, %cst_628 {dimension_numbers = #tpu.dot_dimension_numbers<[1], [0], [0], [1], [0, 0, 1, 1], [], []>} : vector<8x10xf32>, vector<10x10xf32>, vector<8x10xf32> -> vector<8x10xf32>
      %390 = vector.broadcast %211 : vector<1x10xf32> to vector<8x10xf32>
      %391 = arith.addf %389, %390 : vector<8x10xf32>
      %392 = arith.addf %388, %391 : vector<8x10xf32>
      %393 = arith.negf %392 : vector<8x10xf32>
      %394 = math.exp %393 : vector<8x10xf32>
      %cst_629 = arith.constant 1.000000e+00 : f32
      %395 = vector.broadcast %cst_629 : f32 to vector<8x10xf32>
      %396 = arith.addf %395, %394 : vector<8x10xf32>
      %397 = arith.divf %395, %396 : vector<8x10xf32>
      %cst_630 = arith.constant dense<0.000000e+00> : vector<8x10xf32>
      %398 = tpu.matmul %301, %189, %cst_630 {dimension_numbers = #tpu.dot_dimension_numbers<[1], [0], [0], [1], [0, 0, 1, 1], [], []>} : vector<8x10xf32>, vector<10x10xf32>, vector<8x10xf32> -> vector<8x10xf32>
      %cst_631 = arith.constant dense<0.000000e+00> : vector<8x10xf32>
      %399 = tpu.matmul %339, %195, %cst_631 {dimension_numbers = #tpu.dot_dimension_numbers<[1], [0], [0], [1], [0, 0, 1, 1], [], []>} : vector<8x10xf32>, vector<10x10xf32>, vector<8x10xf32> -> vector<8x10xf32>
      %400 = arith.addf %398, %399 : vector<8x10xf32>
      %401 = vector.broadcast %207 : vector<1x10xf32> to vector<8x10xf32>
      %402 = arith.addf %400, %401 : vector<8x10xf32>
      %cst_632 = arith.constant dense<0.000000e+00> : vector<8x10xf32>
      %403 = tpu.matmul %arg37, %201, %cst_632 {dimension_numbers = #tpu.dot_dimension_numbers<[1], [0], [0], [1], [0, 0, 1, 1], [], []>} : vector<8x10xf32>, vector<10x10xf32>, vector<8x10xf32> -> vector<8x10xf32>
      %404 = vector.broadcast %213 : vector<1x10xf32> to vector<8x10xf32>
      %405 = arith.addf %403, %404 : vector<8x10xf32>
      %406 = arith.addf %402, %405 : vector<8x10xf32>
      %407 = arith.negf %406 : vector<8x10xf32>
      %408 = math.exp %407 : vector<8x10xf32>
      %cst_633 = arith.constant 1.000000e+00 : f32
      %409 = vector.broadcast %cst_633 : f32 to vector<8x10xf32>
      %410 = arith.addf %409, %408 : vector<8x10xf32>
      %411 = arith.divf %409, %410 : vector<8x10xf32>
      %cst_634 = arith.constant dense<0.000000e+00> : vector<8x10xf32>
      %412 = tpu.matmul %301, %191, %cst_634 {dimension_numbers = #tpu.dot_dimension_numbers<[1], [0], [0], [1], [0, 0, 1, 1], [], []>} : vector<8x10xf32>, vector<10x10xf32>, vector<8x10xf32> -> vector<8x10xf32>
      %cst_635 = arith.constant dense<0.000000e+00> : vector<8x10xf32>
      %413 = tpu.matmul %339, %197, %cst_635 {dimension_numbers = #tpu.dot_dimension_numbers<[1], [0], [0], [1], [0, 0, 1, 1], [], []>} : vector<8x10xf32>, vector<10x10xf32>, vector<8x10xf32> -> vector<8x10xf32>
      %414 = arith.addf %412, %413 : vector<8x10xf32>
      %415 = vector.broadcast %209 : vector<1x10xf32> to vector<8x10xf32>
      %416 = arith.addf %414, %415 : vector<8x10xf32>
      %cst_636 = arith.constant dense<0.000000e+00> : vector<8x10xf32>
      %417 = tpu.matmul %arg37, %203, %cst_636 {dimension_numbers = #tpu.dot_dimension_numbers<[1], [0], [0], [1], [0, 0, 1, 1], [], []>} : vector<8x10xf32>, vector<10x10xf32>, vector<8x10xf32> -> vector<8x10xf32>
      %418 = vector.broadcast %215 : vector<1x10xf32> to vector<8x10xf32>
      %419 = arith.addf %417, %418 : vector<8x10xf32>
      %420 = arith.mulf %397, %419 : vector<8x10xf32>
      %421 = arith.addf %416, %420 : vector<8x10xf32>
      %422 = math.tanh %421 : vector<8x10xf32>
      %cst_637 = arith.constant 1.000000e+00 : f32
      %423 = vector.broadcast %cst_637 : f32 to vector<8x10xf32>
      %424 = arith.subf %423, %411 : vector<8x10xf32>
      %425 = arith.mulf %424, %422 : vector<8x10xf32>
      %426 = arith.mulf %411, %arg37 : vector<8x10xf32>
      %427 = arith.addf %425, %426 : vector<8x10xf32>
      %cst_638 = arith.constant dense<0.000000e+00> : vector<8x128xf32>
      %428 = tpu.matmul %383, %227, %cst_638 {dimension_numbers = #tpu.dot_dimension_numbers<[1], [0], [0], [1], [0, 0, 1, 1], [], []>} : vector<8x10xf32>, vector<10x128xf32>, vector<8x128xf32> -> vector<8x128xf32>
      %cst_639 = arith.constant dense<0.000000e+00> : vector<8x128xf32>
      %429 = tpu.matmul %427, %228, %cst_639 {dimension_numbers = #tpu.dot_dimension_numbers<[1], [0], [0], [1], [0, 0, 1, 1], [], []>} : vector<8x10xf32>, vector<10x128xf32>, vector<8x128xf32> -> vector<8x128xf32>
      %430 = arith.addf %428, %429 : vector<8x128xf32>
      %431 = vector.broadcast %229 : vector<1x128xf32> to vector<8x128xf32>
      %432 = arith.addf %430, %431 : vector<8x128xf32>
      %433 = arith.index_cast %arg31 : i32 to index
      %c0_640 = arith.constant 0 : index
      %c0_641 = arith.constant 0 : index
      %434 = vector.load %arg25[%433, %c0_640, %c0_641] : memref<12x8x128xf32, #tpu.memory_space<vmem>>, vector<1x8x128xf32>
      %435 = vector.shape_cast %434 : vector<1x8x128xf32> to vector<8x128xf32>
      %436 = vector.shape_cast %432 : vector<8x128xf32> to vector<1x8x128xf32>
      tpu.vector_store %arg25[%433, %c0_640, %c0_641], %436 {strides = array<i32>} : memref<12x8x128xf32, #tpu.memory_space<vmem>>, vector<1x8x128xf32>,
      scf.yield %383, %427, %301, %339, %383, %427 : vector<8x10xf32>, vector<8x10xf32>, vector<8x10xf32>, vector<8x10xf32>, vector<8x10xf32>, vector<8x10xf32>
    }
    %c11_i32_588 = arith.constant 11 : i32
    return
  }
}

</mosaic_0001>

<bundles_post_ra>
// kernel: tpu_custom_call.1
= control target key start
LH: loop header
LB: loop body
LE: loop exit
PB: predicated region body
PF: predicated region fallthrough
CT: control target
= control target key end

     0   :  { %s9738_s0 = inlined_call_operand.vmem [shape: f32[12,8,16], index: 0, kind: input, shape index: {}]   ;;  %s9739_s1 = inlined_call_operand.vmem [shape: f32[16,16], index: 1, kind: input, shape index: {}]   ;;  %s9740_s2 = inlined_call_operand.vmem [shape: f32[1,16], index: 2, kind: input, shape index: {}]   ;;  %s9741_s3 = inlined_call_operand.vmem [shape: f32[16,10], index: 3, kind: input, shape index: {}]   ;;  %s9742_s4 = inlined_call_operand.vmem [shape: f32[1,10], index: 4, kind: input, shape index: {}]   ;;  %s9743_s5 = inlined_call_operand.vmem [shape: f32[10,10], index: 5, kind: input, shape index: {}]   ;;  %s9744_s6 = inlined_call_operand.vmem [shape: f32[1,10], index: 6, kind: input, shape index: {}]   ;;  %s9745_s7 = inlined_call_operand.vmem [shape: f32[2,2,3,10,10], index: 7, kind: input, shape index: {}]   ;;  %s9746_s8 = inlined_call_operand.vmem [shape: f32[2,2,3,10,10], index: 8, kind: input, shape index: {}]   ;;  %s9747_s9 = inlined_call_operand.vmem [shape: f32[2,2,3,10,10], index: 9, kind: input, shape index: {}]   ;;  %s9748_s10 = inlined_call_operand.vmem [shape: f32[2,2,3,1,10], index: 10, kind: input, shape index: {}]   ;;  %s9749_s11 = inlined_call_operand.vmem [shape: f32[2,2,3,1,10], index: 11, kind: input, shape index: {}]   ;;  %s9750_s12 = inlined_call_operand.vmem [shape: f32[10,10], index: 12, kind: input, shape index: {}]   ;;  %s9751_s13 = inlined_call_operand.vmem [shape: f32[10,10], index: 13, kind: input, shape index: {}]   ;;  %s9752_s14 = inlined_call_operand.vmem [shape: f32[1,10], index: 14, kind: input, shape index: {}]   ;;  %s9753_s15 = inlined_call_operand.vmem [shape: f32[10,10], index: 15, kind: input, shape index: {}]   ;;  %s9754_s16 = inlined_call_operand.vmem [shape: f32[1,10], index: 16, kind: input, shape index: {}]   ;;  %s9755_s17 = inlined_call_operand.vmem [shape: f32[2,2,3,10,10], index: 17, kind: input, shape index: {}]   ;;  %s9756_s18 = inlined_call_operand.vmem [shape: f32[2,2,3,10,10], index: 18, kind: input, shape index: {}]   ;;  %s9757_s19 = inlined_call_operand.vmem [shape: f32[2,2,3,10,10], index: 19, kind: input, shape index: {}]   ;;  %s9758_s20 = inlined_call_operand.vmem [shape: f32[2,2,3,1,10], index: 20, kind: input, shape index: {}]   ;;  %s9759_s21 = inlined_call_operand.vmem [shape: f32[2,2,3,1,10], index: 21, kind: input, shape index: {}]   ;;  %s9760_s22 = inlined_call_operand.vmem [shape: f32[10,128], index: 22, kind: input, shape index: {}]   ;;  %s9761_s23 = inlined_call_operand.vmem [shape: f32[10,128], index: 23, kind: input, shape index: {}]   ;;  %s9762_s24 = inlined_call_operand.vmem [shape: f32[1,128], index: 24, kind: input, shape index: {}]   ;;  %s9763_s25 = inlined_call_operand.hbm [shape: f32[12,8,128], index: 25, kind: output, shape index: {}]  }
   0x1   :  { %9770 = sst [smem:[#allocation151_spill]] %s9738_s0 }
   0x2   :  { %9771 = sst [smem:[#allocation152_spill]] %s9739_s1 }
   0x3   :  { %9772 = sst [smem:[#allocation153_spill]] %s9740_s2 }
   0x4   :  { %9773 = sst [smem:[#allocation154_spill]] %s9741_s3 }
   0x5   :  { %9774 = sst [smem:[#allocation155_spill]] %s9742_s4 }
   0x6   :  { %9775 = sst [smem:[#allocation156_spill]] %s9743_s5 }
   0x7   :  { %9776 = sst [smem:[#allocation157_spill]] %s9744_s6 }
   0x8   :  { %9777 = sst [smem:[#allocation158_spill]] %s9745_s7 }
   0x9   :  { %9778 = sst [smem:[#allocation159_spill]] %s9746_s8 }
   0xa   :  { %9779 = sst [smem:[#allocation160_spill]] %s9747_s9 }
   0xb   :  { %30 = vsyncpa [#allocation8], 0  ;;  %s9780_s6 = sld [smem:[#allocation158_spill]]  ;;  %s9785_s29 = sld [smem:[#allocation160_spill]]  ;;  %v8108_v12 = vld [vmem:[%s9748_s10] ss:$0 sm:$0xff] }
   0xc   :  { %v8113_v13 = vld [vmem:[%s9748_s10 + $0x1] ss:$0 sm:$0xff]  ;;  %v8118_v14 = vld [vmem:[%s9748_s10 + $0x2] ss:$0 sm:$0xff]  ;;  %v8123_v15 = vld [vmem:[%s9749_s11] ss:$0 sm:$0xff] }
   0xd   :  { %v8128_v16 = vld [vmem:[%s9749_s11 + $0x1] ss:$0 sm:$0xff]  ;;  %v8133_v17 = vld [vmem:[%s9749_s11 + $0x2] ss:$0 sm:$0xff]  ;;  %v8198_v30 = vld [vmem:[%s9748_s10 + $0x3] ss:$0 sm:$0xff] }
   0xe   :  { %v8203_v31 = vld [vmem:[%s9748_s10 + $0x4] ss:$0 sm:$0xff]  ;;  %v8208_v32 = vld [vmem:[%s9748_s10 + $0x5] ss:$0 sm:$0xff]  ;;  %v8213_v33 = vld [vmem:[%s9749_s11 + $0x3] ss:$0 sm:$0xff] }
   0xf   :  { %v8218_v34 = vld [vmem:[%s9749_s11 + $0x4] ss:$0 sm:$0xff]  ;;  %v8223_v35 = vld [vmem:[%s9749_s11 + $0x5] ss:$0 sm:$0xff]  ;;  %s9788_s27 = sld [smem:[#allocation159_spill]]  ;;  %s9912_s3 = sld [smem:[#allocation155_spill]] }
  0x10   :  { %v8318_v54 = vld [vmem:[%s9748_s10 + $0x6] ss:$0 sm:$0xff]  ;;  %v8323_v55 = vld [vmem:[%s9748_s10 + $0x7] ss:$0 sm:$0xff]  ;;  %v8328_v56 = vld [vmem:[%s9748_s10 + $0x8] ss:$0 sm:$0xff] }
  0x11   :  { %v8048_v0 = vld [vmem:[%s9780_s6] sm:$0xff]  ;;  %v8053_v1 = vld [vmem:[%s9780_s6 + $0x8] sm:$0x3]  ;;  %v8058_v2 = vld [vmem:[%s9780_s6 + $0x10] sm:$0xff]  ;;  %9793 = vst [vmem:[#allocation20_spill] sm:$0xff] %v8318_v54  ;;  %s9916_s9 = sld [smem:[#allocation157_spill]] }
  0x12   :  { %9781 = vst [vmem:[#allocation10_spill] sm:$0xff] %v8048_v0  ;;  %9782 = vst [vmem:[#allocation11_spill] sm:$0xff] %v8053_v1  ;;  %v8063_v3 = vld [vmem:[%s9780_s6 + $0x18] sm:$0x3]  ;;  %v8068_v4 = vld [vmem:[%s9780_s6 + $0x20] sm:$0xff] }
  0x13   :  { %9783 = vst [vmem:[#allocation12_spill] sm:$0xff] %v8058_v2  ;;  %9784 = vst [vmem:[#allocation13_spill] sm:$0xff] %v8063_v3  ;;  %v8073_v5 = vld [vmem:[%s9780_s6 + $0x28] sm:$0x3]  ;;  %v8078_v6 = vld [vmem:[%s9785_s29] sm:$0xff] }
  0x14   :  { %v8083_v7 = vld [vmem:[%s9785_s29 + $0x8] sm:$0x3]  ;;  %v8088_v8 = vld [vmem:[%s9785_s29 + $0x10] sm:$0xff]  ;;  %v8093_v9 = vld [vmem:[%s9785_s29 + $0x18] sm:$0x3]  ;;  %9794 = vst [vmem:[#allocation21_spill] sm:$0xff] %v8323_v55 }
  0x15   :  { %v8098_v10 = vld [vmem:[%s9785_s29 + $0x20] sm:$0xff]  ;;  %v8103_v11 = vld [vmem:[%s9785_s29 + $0x28] sm:$0x3]  ;;  %v8138_v18 = vld [vmem:[%s9780_s6 + $0x30] sm:$0xff]  ;;  %9795 = vst [vmem:[#allocation22_spill] sm:$0xff] %v8328_v56 }
  0x16   :  { %v8143_v19 = vld [vmem:[%s9780_s6 + $0x38] sm:$0x3]  ;;  %v8148_v20 = vld [vmem:[%s9780_s6 + $0x40] sm:$0xff]  ;;  %v8153_v21 = vld [vmem:[%s9780_s6 + $0x48] sm:$0x3] }
  0x17   :  { %v8158_v22 = vld [vmem:[%s9780_s6 + $0x50] sm:$0xff]  ;;  %v8163_v23 = vld [vmem:[%s9780_s6 + $0x58] sm:$0x3]  ;;  %v8178_v26 = vld [vmem:[%s9785_s29 + $0x40] sm:$0xff] }
  0x18   :  { %v8168_v24 = vld [vmem:[%s9785_s29 + $0x30] sm:$0xff]  ;;  %v8173_v25 = vld [vmem:[%s9785_s29 + $0x38] sm:$0x3]  ;;  %v8183_v27 = vld [vmem:[%s9785_s29 + $0x48] sm:$0x3] }
  0x19   :  { %v8188_v28 = vld [vmem:[%s9785_s29 + $0x50] sm:$0xff]  ;;  %v8193_v29 = vld [vmem:[%s9785_s29 + $0x58] sm:$0x3]  ;;  %v8228_v36 = vld [vmem:[%s9780_s6 + $0x60] sm:$0xff] }
  0x1a   :  { %v8233_v37 = vld [vmem:[%s9780_s6 + $0x68] sm:$0x3]  ;;  %v8238_v38 = vld [vmem:[%s9780_s6 + $0x70] sm:$0xff]  ;;  %v8243_v39 = vld [vmem:[%s9780_s6 + $0x78] sm:$0x3] }
  0x1b   :  { %v8248_v40 = vld [vmem:[%s9780_s6 + $0x80] sm:$0xff]  ;;  %v8253_v41 = vld [vmem:[%s9780_s6 + $0x88] sm:$0x3]  ;;  %v8268_v44 = vld [vmem:[%s9788_s27 + $0x70] sm:$0xff] }
  0x1c   :  { %9786 = vst [vmem:[#allocation14_spill] sm:$0xff] %v8248_v40  ;;  %9787 = vst [vmem:[#allocation15_spill] sm:$0xff] %v8253_v41  ;;  %v8258_v42 = vld [vmem:[%s9788_s27 + $0x60] sm:$0xff]  ;;  %v8263_v43 = vld [vmem:[%s9788_s27 + $0x68] sm:$0x3] }
  0x1d   :  { %v8273_v45 = vld [vmem:[%s9788_s27 + $0x78] sm:$0x3]  ;;  %v8278_v46 = vld [vmem:[%s9788_s27 + $0x80] sm:$0xff]  ;;  %v8283_v47 = vld [vmem:[%s9788_s27 + $0x88] sm:$0x3] }
  0x1e   :  { %9789 = vst [vmem:[#allocation16_spill] sm:$0xff] %v8278_v46  ;;  %9790 = vst [vmem:[#allocation17_spill] sm:$0xff] %v8283_v47  ;;  %v8288_v48 = vld [vmem:[%s9785_s29 + $0x60] sm:$0xff]  ;;  %v8293_v49 = vld [vmem:[%s9785_s29 + $0x68] sm:$0x3] }
  0x1f   :  { %v8298_v50 = vld [vmem:[%s9785_s29 + $0x70] sm:$0xff]  ;;  %v8303_v51 = vld [vmem:[%s9785_s29 + $0x78] sm:$0x3]  ;;  %v8308_v52 = vld [vmem:[%s9785_s29 + $0x80] sm:$0xff] }
  0x20   :  { %9791 = vst [vmem:[#allocation18_spill] sm:$0xff] %v8308_v52  ;;  %v8313_v53 = vld [vmem:[%s9785_s29 + $0x88] sm:$0x3]  ;;  %v8333_v57 = vld [vmem:[%s9749_s11 + $0x6] ss:$0 sm:$0xff]  ;;  %v8348_v60 = vld [vmem:[%s9780_s6 + $0x90] sm:$0xff] }
  0x21   :  { %9792 = vst [vmem:[#allocation19_spill] sm:$0xff] %v8313_v53  ;;  %9796 = vst [vmem:[#allocation23_spill] sm:$0xff] %v8333_v57  ;;  %v8338_v58 = vld [vmem:[%s9749_s11 + $0x7] ss:$0 sm:$0xff]  ;;  %v8343_v59 = vld [vmem:[%s9749_s11 + $0x8] ss:$0 sm:$0xff] }
  0x22   :  { %9797 = vst [vmem:[#allocation24_spill] sm:$0xff] %v8338_v58  ;;  %9798 = vst [vmem:[#allocation25_spill] sm:$0xff] %v8343_v59  ;;  %v8353_v61 = vld [vmem:[%s9780_s6 + $0x98] sm:$0x3]  ;;  %v8358_v62 = vld [vmem:[%s9780_s6 + $0xa0] sm:$0xff] }
  0x23   :  { %9799 = vst [vmem:[#allocation26_spill] sm:$0xff] %v8348_v60  ;;  %9800 = vst [vmem:[#allocation27_spill] sm:$0xff] %v8353_v61  ;;  %v8363_v63 = vld [vmem:[%s9780_s6 + $0xa8] sm:$0x3]  ;;  %v8368_v56 = vld [vmem:[%s9780_s6 + $0xb0] sm:$0xff] }
  0x24   :  { %9801 = vst [vmem:[#allocation28_spill] sm:$0xff] %v8358_v62  ;;  %9802 = vst [vmem:[#allocation29_spill] sm:$0xff] %v8363_v63  ;;  %v8373_v60 = vld [vmem:[%s9780_s6 + $0xb8] sm:$0x3]  ;;  %v8378_v61 = vld [vmem:[%s9788_s27 + $0x90] sm:$0xff] }
  0x25   :  { %9803 = vst [vmem:[#allocation30_spill] sm:$0xff] %v8368_v56  ;;  %9804 = vst [vmem:[#allocation31_spill] sm:$0xff] %v8373_v60  ;;  %v8383_v62 = vld [vmem:[%s9788_s27 + $0x98] sm:$0x3]  ;;  %v8388_v63 = vld [vmem:[%s9788_s27 + $0xa0] sm:$0xff] }
  0x26   :  { %9805 = vst [vmem:[#allocation32_spill] sm:$0xff] %v8378_v61  ;;  %9806 = vst [vmem:[#allocation33_spill] sm:$0xff] %v8383_v62  ;;  %v8393_v56 = vld [vmem:[%s9788_s27 + $0xa8] sm:$0x3]  ;;  %v8398_v60 = vld [vmem:[%s9788_s27 + $0xb0] sm:$0xff] }
  0x27   :  { %9807 = vst [vmem:[#allocation34_spill] sm:$0xff] %v8388_v63  ;;  %9808 = vst [vmem:[#allocation35_spill] sm:$0xff] %v8393_v56  ;;  %v8403_v61 = vld [vmem:[%s9788_s27 + $0xb8] sm:$0x3]  ;;  %v8408_v62 = vld [vmem:[%s9785_s29 + $0x90] sm:$0xff]  ;;  %s9910_s27 = sld [smem:[#allocation153_spill]] }
  0x28   :  { %9809 = vst [vmem:[#allocation36_spill] sm:$0xff] %v8398_v60  ;;  %9810 = vst [vmem:[#allocation37_spill] sm:$0xff] %v8403_v61  ;;  %v8413_v63 = vld [vmem:[%s9785_s29 + $0x98] sm:$0x3]  ;;  %v8418_v56 = vld [vmem:[%s9785_s29 + $0xa0] sm:$0xff] }
  0x29   :  { %9811 = vst [vmem:[#allocation38_spill] sm:$0xff] %v8408_v62  ;;  %9812 = vst [vmem:[#allocation39_spill] sm:$0xff] %v8413_v63  ;;  %v8423_v60 = vld [vmem:[%s9785_s29 + $0xa8] sm:$0x3]  ;;  %v8428_v61 = vld [vmem:[%s9785_s29 + $0xb0] sm:$0xff] }
  0x2a   :  { %9813 = vst [vmem:[#allocation40_spill] sm:$0xff] %v8418_v56  ;;  %9814 = vst [vmem:[#allocation41_spill] sm:$0xff] %v8423_v60  ;;  %v8433_v62 = vld [vmem:[%s9785_s29 + $0xb8] sm:$0x3]  ;;  %v8438_v63 = vld [vmem:[%s9748_s10 + $0x9] ss:$0 sm:$0xff] }
  0x2b   :  { %9815 = vst [vmem:[#allocation42_spill] sm:$0xff] %v8428_v61  ;;  %9816 = vst [vmem:[#allocation43_spill] sm:$0xff] %v8433_v62  ;;  %v8443_v56 = vld [vmem:[%s9748_s10 + $0xa] ss:$0 sm:$0xff]  ;;  %v8448_v60 = vld [vmem:[%s9748_s10 + $0xb] ss:$0 sm:$0xff] }
  0x2c   :  { %9817 = vst [vmem:[#allocation44_spill] sm:$0xff] %v8438_v63  ;;  %9818 = vst [vmem:[#allocation45_spill] sm:$0xff] %v8443_v56  ;;  %v8453_v61 = vld [vmem:[%s9749_s11 + $0x9] ss:$0 sm:$0xff]  ;;  %v8458_v62 = vld [vmem:[%s9749_s11 + $0xa] ss:$0 sm:$0xff] }
  0x2d   :  { %9819 = vst [vmem:[#allocation46_spill] sm:$0xff] %v8448_v60  ;;  %9820 = vst [vmem:[#allocation47_spill] sm:$0xff] %v8453_v61  ;;  %v8463_v63 = vld [vmem:[%s9749_s11 + $0xb] ss:$0 sm:$0xff]  ;;  %v8468_v56 = vld [vmem:[%s9755_s17] sm:$0xff]  ;;  %s9907_s29 = sld [smem:[#allocation152_spill]] }
  0x2e   :  { %9821 = vst [vmem:[#allocation48_spill] sm:$0xff] %v8458_v62  ;;  %9822 = vst [vmem:[#allocation49_spill] sm:$0xff] %v8463_v63  ;;  %v8473_v60 = vld [vmem:[%s9755_s17 + $0x8] sm:$0x3]  ;;  %v8478_v61 = vld [vmem:[%s9755_s17 + $0x10] sm:$0xff]  ;;  %s9911_s10 = sld [smem:[#allocation154_spill]] }
  0x2f   :  { %9823 = vst [vmem:[#allocation50_spill] sm:$0xff] %v8468_v56  ;;  %9824 = vst [vmem:[#allocation51_spill] sm:$0xff] %v8473_v60  ;;  %v8483_v62 = vld [vmem:[%s9755_s17 + $0x18] sm:$0x3]  ;;  %v8488_v63 = vld [vmem:[%s9755_s17 + $0x20] sm:$0xff] }
  0x30   :  { %9825 = vst [vmem:[#allocation52_spill] sm:$0xff] %v8478_v61  ;;  %9826 = vst [vmem:[#allocation53_spill] sm:$0xff] %v8483_v62  ;;  %v8493_v56 = vld [vmem:[%s9755_s17 + $0x28] sm:$0x3]  ;;  %v8498_v60 = vld [vmem:[%s9757_s19] sm:$0xff] }
  0x31   :  { %9827 = vst [vmem:[#allocation54_spill] sm:$0xff] %v8488_v63  ;;  %9828 = vst [vmem:[#allocation55_spill] sm:$0xff] %v8493_v56  ;;  %v8503_v61 = vld [vmem:[%s9757_s19 + $0x8] sm:$0x3]  ;;  %v8508_v62 = vld [vmem:[%s9757_s19 + $0x10] sm:$0xff] }
  0x32   :  { %9829 = vst [vmem:[#allocation56_spill] sm:$0xff] %v8498_v60  ;;  %9830 = vst [vmem:[#allocation57_spill] sm:$0xff] %v8503_v61  ;;  %v8513_v63 = vld [vmem:[%s9757_s19 + $0x18] sm:$0x3]  ;;  %v8518_v56 = vld [vmem:[%s9757_s19 + $0x20] sm:$0xff] }
  0x33   :  { %9831 = vst [vmem:[#allocation58_spill] sm:$0xff] %v8508_v62  ;;  %9832 = vst [vmem:[#allocation59_spill] sm:$0xff] %v8513_v63  ;;  %v8523_v60 = vld [vmem:[%s9757_s19 + $0x28] sm:$0x3]  ;;  %v8528_v61 = vld [vmem:[%s9758_s20] ss:$0 sm:$0xff] }
  0x34   :  { %9833 = vst [vmem:[#allocation60_spill] sm:$0xff] %v8518_v56  ;;  %9834 = vst [vmem:[#allocation61_spill] sm:$0xff] %v8523_v60  ;;  %v8533_v62 = vld [vmem:[%s9758_s20 + $0x1] ss:$0 sm:$0xff]  ;;  %v8538_v63 = vld [vmem:[%s9758_s20 + $0x2] ss:$0 sm:$0xff] }
  0x35   :  { %9835 = vst [vmem:[#allocation62_spill] sm:$0xff] %v8528_v61  ;;  %9836 = vst [vmem:[#allocation63_spill] sm:$0xff] %v8533_v62  ;;  %v8543_v56 = vld [vmem:[%s9759_s21] ss:$0 sm:$0xff]  ;;  %v8548_v60 = vld [vmem:[%s9759_s21 + $0x1] ss:$0 sm:$0xff] }
  0x36   :  { %9837 = vst [vmem:[#allocation64_spill] sm:$0xff] %v8538_v63  ;;  %9838 = vst [vmem:[#allocation65_spill] sm:$0xff] %v8543_v56  ;;  %v8553_v61 = vld [vmem:[%s9759_s21 + $0x2] ss:$0 sm:$0xff]  ;;  %v8558_v62 = vld [vmem:[%s9755_s17 + $0x30] sm:$0xff] }
  0x37   :  { %9839 = vst [vmem:[#allocation66_spill] sm:$0xff] %v8548_v60  ;;  %9840 = vst [vmem:[#allocation67_spill] sm:$0xff] %v8553_v61  ;;  %v8563_v63 = vld [vmem:[%s9755_s17 + $0x38] sm:$0x3]  ;;  %v8568_v56 = vld [vmem:[%s9755_s17 + $0x40] sm:$0xff] }
  0x38   :  { %9841 = vst [vmem:[#allocation68_spill] sm:$0xff] %v8558_v62  ;;  %9842 = vst [vmem:[#allocation69_spill] sm:$0xff] %v8563_v63  ;;  %v8573_v60 = vld [vmem:[%s9755_s17 + $0x48] sm:$0x3]  ;;  %v8578_v61 = vld [vmem:[%s9755_s17 + $0x50] sm:$0xff] }
  0x39   :  { %9843 = vst [vmem:[#allocation70_spill] sm:$0xff] %v8568_v56  ;;  %9844 = vst [vmem:[#allocation71_spill] sm:$0xff] %v8573_v60  ;;  %v8583_v62 = vld [vmem:[%s9755_s17 + $0x58] sm:$0x3]  ;;  %v8588_v63 = vld [vmem:[%s9757_s19 + $0x30] sm:$0xff] }
  0x3a   :  { %9845 = vst [vmem:[#allocation72_spill] sm:$0xff] %v8578_v61  ;;  %9846 = vst [vmem:[#allocation73_spill] sm:$0xff] %v8583_v62  ;;  %v8593_v56 = vld [vmem:[%s9757_s19 + $0x38] sm:$0x3]  ;;  %v8598_v60 = vld [vmem:[%s9757_s19 + $0x40] sm:$0xff] }
  0x3b   :  { %9847 = vst [vmem:[#allocation74_spill] sm:$0xff] %v8588_v63  ;;  %9848 = vst [vmem:[#allocation75_spill] sm:$0xff] %v8593_v56  ;;  %v8603_v61 = vld [vmem:[%s9757_s19 + $0x48] sm:$0x3]  ;;  %v8608_v62 = vld [vmem:[%s9757_s19 + $0x50] sm:$0xff] }
  0x3c   :  { %9849 = vst [vmem:[#allocation76_spill] sm:$0xff] %v8598_v60  ;;  %9850 = vst [vmem:[#allocation77_spill] sm:$0xff] %v8603_v61  ;;  %v8613_v63 = vld [vmem:[%s9757_s19 + $0x58] sm:$0x3]  ;;  %v8618_v56 = vld [vmem:[%s9758_s20 + $0x3] ss:$0 sm:$0xff] }
  0x3d   :  { %9851 = vst [vmem:[#allocation78_spill] sm:$0xff] %v8608_v62  ;;  %9852 = vst [vmem:[#allocation79_spill] sm:$0xff] %v8613_v63  ;;  %v8623_v60 = vld [vmem:[%s9758_s20 + $0x4] ss:$0 sm:$0xff]  ;;  %v8628_v61 = vld [vmem:[%s9758_s20 + $0x5] ss:$0 sm:$0xff] }
  0x3e   :  { %9853 = vst [vmem:[#allocation80_spill] sm:$0xff] %v8618_v56  ;;  %9854 = vst [vmem:[#allocation81_spill] sm:$0xff] %v8623_v60  ;;  %v8633_v62 = vld [vmem:[%s9759_s21 + $0x3] ss:$0 sm:$0xff]  ;;  %v8638_v63 = vld [vmem:[%s9759_s21 + $0x4] ss:$0 sm:$0xff] }
  0x3f   :  { %9855 = vst [vmem:[#allocation82_spill] sm:$0xff] %v8628_v61  ;;  %9856 = vst [vmem:[#allocation83_spill] sm:$0xff] %v8633_v62  ;;  %v8643_v56 = vld [vmem:[%s9759_s21 + $0x5] ss:$0 sm:$0xff]  ;;  %v8653_v61 = vld [vmem:[%s9755_s17 + $0x68] sm:$0x3] }
  0x40   :  { %9857 = vst [vmem:[#allocation84_spill] sm:$0xff] %v8638_v63  ;;  %9858 = vst [vmem:[#allocation85_spill] sm:$0xff] %v8643_v56  ;;  %v8648_v60 = vld [vmem:[%s9755_s17 + $0x60] sm:$0xff]  ;;  %v8658_v62 = vld [vmem:[%s9755_s17 + $0x70] sm:$0xff] }
  0x41   :  { %9859 = vst [vmem:[#allocation86_spill] sm:$0xff] %v8648_v60  ;;  %9860 = vst [vmem:[#allocation87_spill] sm:$0xff] %v8653_v61  ;;  %v8663_v63 = vld [vmem:[%s9755_s17 + $0x78] sm:$0x3]  ;;  %v8668_v56 = vld [vmem:[%s9755_s17 + $0x80] sm:$0xff] }
  0x42   :  { %9861 = vst [vmem:[#allocation88_spill] sm:$0xff] %v8658_v62  ;;  %9862 = vst [vmem:[#allocation89_spill] sm:$0xff] %v8663_v63  ;;  %v8673_v60 = vld [vmem:[%s9755_s17 + $0x88] sm:$0x3]  ;;  %v8678_v61 = vld [vmem:[%s9756_s18 + $0x60] sm:$0xff] }
  0x43   :  { %9863 = vst [vmem:[#allocation90_spill] sm:$0xff] %v8668_v56  ;;  %9864 = vst [vmem:[#allocation91_spill] sm:$0xff] %v8673_v60  ;;  %v8683_v62 = vld [vmem:[%s9756_s18 + $0x68] sm:$0x3]  ;;  %v8688_v63 = vld [vmem:[%s9756_s18 + $0x70] sm:$0xff] }
  0x44   :  { %9865 = vst [vmem:[#allocation92_spill] sm:$0xff] %v8678_v61  ;;  %9866 = vst [vmem:[#allocation93_spill] sm:$0xff] %v8683_v62  ;;  %v8693_v56 = vld [vmem:[%s9756_s18 + $0x78] sm:$0x3]  ;;  %v8698_v60 = vld [vmem:[%s9756_s18 + $0x80] sm:$0xff] }
  0x45   :  { %9867 = vst [vmem:[#allocation94_spill] sm:$0xff] %v8688_v63  ;;  %9868 = vst [vmem:[#allocation95_spill] sm:$0xff] %v8693_v56  ;;  %v8703_v61 = vld [vmem:[%s9756_s18 + $0x88] sm:$0x3]  ;;  %v8708_v62 = vld [vmem:[%s9757_s19 + $0x60] sm:$0xff] }
  0x46   :  { %9869 = vst [vmem:[#allocation96_spill] sm:$0xff] %v8698_v60  ;;  %9870 = vst [vmem:[#allocation97_spill] sm:$0xff] %v8703_v61  ;;  %v8713_v63 = vld [vmem:[%s9757_s19 + $0x68] sm:$0x3]  ;;  %v8718_v56 = vld [vmem:[%s9757_s19 + $0x70] sm:$0xff] }
  0x47   :  { %9871 = vst [vmem:[#allocation98_spill] sm:$0xff] %v8708_v62  ;;  %9872 = vst [vmem:[#allocation99_spill] sm:$0xff] %v8713_v63  ;;  %v8723_v60 = vld [vmem:[%s9757_s19 + $0x78] sm:$0x3]  ;;  %v8728_v61 = vld [vmem:[%s9757_s19 + $0x80] sm:$0xff] }
  0x48   :  { %9873 = vst [vmem:[#allocation100_spill] sm:$0xff] %v8718_v56  ;;  %9874 = vst [vmem:[#allocation101_spill] sm:$0xff] %v8723_v60  ;;  %v8733_v62 = vld [vmem:[%s9757_s19 + $0x88] sm:$0x3]  ;;  %v8738_v63 = vld [vmem:[%s9758_s20 + $0x6] ss:$0 sm:$0xff] }
  0x49   :  { %9875 = vst [vmem:[#allocation102_spill] sm:$0xff] %v8728_v61  ;;  %9876 = vst [vmem:[#allocation103_spill] sm:$0xff] %v8733_v62  ;;  %v8743_v56 = vld [vmem:[%s9758_s20 + $0x7] ss:$0 sm:$0xff]  ;;  %v8748_v60 = vld [vmem:[%s9758_s20 + $0x8] ss:$0 sm:$0xff] }
  0x4a   :  { %9877 = vst [vmem:[#allocation104_spill] sm:$0xff] %v8738_v63  ;;  %9878 = vst [vmem:[#allocation105_spill] sm:$0xff] %v8743_v56  ;;  %v8753_v61 = vld [vmem:[%s9759_s21 + $0x6] ss:$0 sm:$0xff]  ;;  %v8758_v62 = vld [vmem:[%s9759_s21 + $0x7] ss:$0 sm:$0xff] }
  0x4b   :  { %9879 = vst [vmem:[#allocation106_spill] sm:$0xff] %v8748_v60  ;;  %9880 = vst [vmem:[#allocation107_spill] sm:$0xff] %v8753_v61  ;;  %v8763_v63 = vld [vmem:[%s9759_s21 + $0x8] ss:$0 sm:$0xff]  ;;  %v8768_v56 = vld [vmem:[%s9755_s17 + $0x90] sm:$0xff] }
  0x4c   :  { %9881 = vst [vmem:[#allocation108_spill] sm:$0xff] %v8758_v62  ;;  %9882 = vst [vmem:[#allocation109_spill] sm:$0xff] %v8763_v63  ;;  %v8773_v60 = vld [vmem:[%s9755_s17 + $0x98] sm:$0x3]  ;;  %v8778_v61 = vld [vmem:[%s9755_s17 + $0xa0] sm:$0xff] }
  0x4d   :  { %9883 = vst [vmem:[#allocation110_spill] sm:$0xff] %v8768_v56  ;;  %9884 = vst [vmem:[#allocation111_spill] sm:$0xff] %v8773_v60  ;;  %v8783_v62 = vld [vmem:[%s9755_s17 + $0xa8] sm:$0x3]  ;;  %v8788_v63 = vld [vmem:[%s9755_s17 + $0xb0] sm:$0xff] }
  0x4e   :  { %9885 = vst [vmem:[#allocation112_spill] sm:$0xff] %v8778_v61  ;;  %9886 = vst [vmem:[#allocation113_spill] sm:$0xff] %v8783_v62  ;;  %v8793_v56 = vld [vmem:[%s9755_s17 + $0xb8] sm:$0x3]  ;;  %v8798_v60 = vld [vmem:[%s9756_s18 + $0x90] sm:$0xff] }
  0x4f   :  { %9887 = vst [vmem:[#allocation114_spill] sm:$0xff] %v8788_v63  ;;  %9888 = vst [vmem:[#allocation115_spill] sm:$0xff] %v8793_v56  ;;  %v8803_v61 = vld [vmem:[%s9756_s18 + $0x98] sm:$0x3]  ;;  %v8808_v62 = vld [vmem:[%s9756_s18 + $0xa0] sm:$0xff] }
  0x50   :  { %9889 = vst [vmem:[#allocation116_spill] sm:$0xff] %v8798_v60  ;;  %9890 = vst [vmem:[#allocation117_spill] sm:$0xff] %v8803_v61  ;;  %v8813_v63 = vld [vmem:[%s9756_s18 + $0xa8] sm:$0x3]  ;;  %v8818_v56 = vld [vmem:[%s9756_s18 + $0xb0] sm:$0xff] }
  0x51   :  { %9891 = vst [vmem:[#allocation118_spill] sm:$0xff] %v8808_v62  ;;  %9892 = vst [vmem:[#allocation119_spill] sm:$0xff] %v8813_v63  ;;  %v8823_v60 = vld [vmem:[%s9756_s18 + $0xb8] sm:$0x3]  ;;  %v8828_v61 = vld [vmem:[%s9757_s19 + $0x90] sm:$0xff] }
  0x52   :  { %9893 = vst [vmem:[#allocation120_spill] sm:$0xff] %v8818_v56  ;;  %9894 = vst [vmem:[#allocation121_spill] sm:$0xff] %v8823_v60  ;;  %v8833_v62 = vld [vmem:[%s9757_s19 + $0x98] sm:$0x3]  ;;  %v8838_v63 = vld [vmem:[%s9757_s19 + $0xa0] sm:$0xff] }
  0x53   :  { %9895 = vst [vmem:[#allocation122_spill] sm:$0xff] %v8828_v61  ;;  %9896 = vst [vmem:[#allocation123_spill] sm:$0xff] %v8833_v62  ;;  %v8843_v56 = vld [vmem:[%s9757_s19 + $0xa8] sm:$0x3]  ;;  %v8848_v60 = vld [vmem:[%s9757_s19 + $0xb0] sm:$0xff] }
  0x54   :  { %9897 = vst [vmem:[#allocation124_spill] sm:$0xff] %v8838_v63  ;;  %9898 = vst [vmem:[#allocation125_spill] sm:$0xff] %v8843_v56  ;;  %v8853_v61 = vld [vmem:[%s9757_s19 + $0xb8] sm:$0x3]  ;;  %v8858_v62 = vld [vmem:[%s9758_s20 + $0x9] ss:$0 sm:$0xff] }
  0x55   :  { %9899 = vst [vmem:[#allocation126_spill] sm:$0xff] %v8848_v60  ;;  %9900 = vst [vmem:[#allocation127_spill] sm:$0xff] %v8853_v61  ;;  %v8863_v63 = vld [vmem:[%s9758_s20 + $0xa] ss:$0 sm:$0xff]  ;;  %v8868_v56 = vld [vmem:[%s9758_s20 + $0xb] ss:$0 sm:$0xff] }
  0x56   :  { %9901 = vst [vmem:[#allocation128_spill] sm:$0xff] %v8858_v62  ;;  %9902 = vst [vmem:[#allocation129_spill] sm:$0xff] %v8863_v63  ;;  %v8873_v60 = vld [vmem:[%s9759_s21 + $0x9] ss:$0 sm:$0xff]  ;;  %v8878_v61 = vld [vmem:[%s9759_s21 + $0xa] ss:$0 sm:$0xff] }
  0x57   :  { %9903 = vst [vmem:[#allocation130_spill] sm:$0xff] %v8868_v56  ;;  %9904 = vst [vmem:[#allocation131_spill] sm:$0xff] %v8873_v60  ;;  %v8883_v62 = vld [vmem:[%s9759_s21 + $0xb] ss:$0 sm:$0xff]  ;;  %v8888_v63 = vld [vmem:[%s9907_s29] sm:$0xff]  ;;  %s9913_s19 = sld [smem:[#allocation156_spill]] }
  0x58   :  { %9905 = vst [vmem:[#allocation132_spill] sm:$0xff] %v8878_v61  ;;  %9906 = vst [vmem:[#allocation133_spill] sm:$0xff] %v8883_v62  ;;  %v8893_v56 = vld [vmem:[%s9907_s29 + $0x8] sm:$0xff]  ;;  %v8898_v60 = vld [vmem:[%s9910_s27] ss:$0 sm:$0xff] }
  0x59   :  { %9908 = vst [vmem:[#allocation134_spill] sm:$0xff] %v8888_v63  ;;  %9909 = vst [vmem:[#allocation135_spill] sm:$0xff] %v8893_v56  ;;  %v8903_v61 = vld [vmem:[%s9911_s10] sm:$0xff]  ;;  %v8908_v62 = vld [vmem:[%s9911_s10 + $0x8] sm:$0xff] }
  0x5a   :  { %v8913_v59 = vld [vmem:[%s9912_s3] ss:$0 sm:$0xff]  ;;  %v8938_v53 = vld [vmem:[%s9750_s12 + $0x8] sm:$0x3] }
  0x5b   :  { %v8928_v57 = vld [vmem:[%s9916_s9] ss:$0 sm:$0xff]  ;;  %9918 = vst [vmem:[#allocation139_spill] sm:$0xff] %v8938_v53  ;;  %v8948_v41 = vld [vmem:[%s9751_s13 + $0x8] sm:$0x3]  ;;  %s8995_s9 = smov 0  }
  0x5c   :  { %v8933_v54 = vld [vmem:[%s9750_s12] sm:$0xff]  ;;  %9920 = vst [vmem:[#allocation141_spill] sm:$0xff] %v8948_v41  ;;  %v8963_v53 = vld [vmem:[%s9753_s15 + $0x8] sm:$0x3] }
  0x5d   :  { %v8918_v58 = vld [vmem:[%s9913_s19] sm:$0xff]  ;;  %v8923_v55 = vld [vmem:[%s9913_s19 + $0x8] sm:$0x3]  ;;  %9917 = vst [vmem:[#allocation138_spill] sm:$0xff] %v8933_v54  ;;  %9923 = vst [vmem:[#allocation144_spill] sm:$0xff] %v8963_v53 }
  0x5e   :  { %9914 = vst [vmem:[#allocation136_spill] sm:$0xff] %v8918_v58  ;;  %9915 = vst [vmem:[#allocation137_spill] sm:$0xff] %v8923_v55  ;;  %v8943_v52 = vld [vmem:[%s9751_s13] sm:$0xff]  ;;  %v8988_v53 = vld [vmem:[%s9761_s23 + $0x8] sm:$0x3] }
  0x5f   :  { %9919 = vst [vmem:[#allocation140_spill] sm:$0xff] %v8943_v52  ;;  %v8953_v40 = vld [vmem:[%s9752_s14] ss:$0 sm:$0xff]  ;;  %9928 = vst [vmem:[#allocation149_spill] sm:$0xff] %v8988_v53 }
  0x60   :  { %9921 = vst [vmem:[#allocation142_spill] sm:$0xff] %v8953_v40  ;;  %v8958_v54 = vld [vmem:[%s9753_s15] sm:$0xff]  ;;  %v8978_v40 = vld [vmem:[%s9760_s22 + $0x8] sm:$0x3] }
  0x61   :  { %9922 = vst [vmem:[#allocation143_spill] sm:$0xff] %v8958_v54  ;;  %v8968_v52 = vld [vmem:[%s9754_s16] ss:$0 sm:$0xff]  ;;  %9926 = vst [vmem:[#allocation147_spill] sm:$0xff] %v8978_v40 }
  0x62   :  { %9924 = vst [vmem:[#allocation145_spill] sm:$0xff] %v8968_v52  ;;  %v8973_v41 = vld [vmem:[%s9760_s22] sm:$0xff] }
  0x63   :  { %9925 = vst [vmem:[#allocation146_spill] sm:$0xff] %v8973_v41  ;;  %v8983_v54 = vld [vmem:[%s9761_s23] sm:$0xff] }
  0x64   :  { %9927 = vst [vmem:[#allocation148_spill] sm:$0xff] %v8983_v54  ;;  %v8993_v52 = vld [vmem:[%s9762_s24] ss:$0 sm:$0xff] }
  0x65   :  { %9929 = vst [vmem:[#allocation150_spill] sm:$0xff] %v8993_v52 }
  0x66 LB: > { %v9930_v63 = vld [vmem:[#allocation134_spill] sm:$0xff]  ;;  %v9931_v56 = vld [vmem:[#allocation135_spill] sm:$0xff]  ;;  %v7892_v40 = vmov 0.0|0.0   ;;  %vm7893_vm0 = vmmov 0   ;;  %v7894_v53 = vmov 0.0   ;;  %s6267_s22 = sshll.u32 %s7830_s9, 3  ;;  %s7830_s9 = sphi %s8995_s9, %s376_s9  }
  0x67   : > { %v7158_v54 = vpack.c.bf16 %v9931_v56, %v9930_v63  ;;  %7157 = vmatprep.subr.bf16.mxu0 %v7892_v40  ;;  %6685 = vmatprep.mubr.msk.f32.mxu0 %vm7893_vm0, %v7894_v53  ;;  %vm386_vm1 = vcmask 130048   ;;  %s9932_s29 = sld [smem:[#allocation151_spill]]  ;;  %v7161_v56 = vpack.c.bf16 %v8908_v62, %v8903_v61  ;;  %vm555_vm3 = vcmask 1041408   ;;  %v9933_v58 = vld [vmem:[#allocation136_spill] sm:$0xff]  ;;  %v9934_v55 = vld [vmem:[#allocation137_spill] sm:$0xff]  ;;  %s630_s5 = scalar_lea.vmem [#allocation2], %s6267_s22 }
  0x68   : > { %7160 = vmatprep.subr.bf16.mxu1 %v7892_v40  ;;  %6692 = vmatprep.mubr.msk.f32.mxu1 %vm7893_vm0, %v7894_v53  ;;  %vm7895_vm4 = vmmov 1   ;;  %vm551_vm7 = vcmask 80896   ;;  %s376_s9 = sadd.s32 1, %s7830_s9  }
  0x69   : > { %7159 = vmatpush3.bf16.msra.mxu0 %v7158_v54  ;;  %7162 = vmatpush3.bf16.msra.mxu1 %v7161_v56  ;;  %vm9015_vm5 = vmpackc.low %vm555_vm3, %vm7895_vm4  ;;  %p373_p0 = scmp.ge.s32.totalorder %s376_s9, 12  }
  0x6a   : > { %7163 = vmatprep.subr.bf16.mxu0 %v7892_v40  ;;  %v7164_v40 = vpack.c.bf16 %v9934_v55, %v9933_v58  ;;  %s9032_s18 = smov (%p373_p0), 0  }
  0x6d   : > { %s378_s20 = scalar_lea.vmem %s9932_s29, %s6267_s22 }
  0x6e   : > { %v379_v52 = vld [vmem:[%s378_s20] sm:$0xff] }
  0x6f   : > { %6686 = vmatmul.mubr.msk.f32.vlgmr.msra.gmra.mrb[0].mxu0 %vm386_vm1, %v379_v52 }
  0x70   : > { %6699 = vmatprep.mubr.msk.f32.mxu0 %vm7893_vm0, %v7894_v53  ;;  %7166 = vmatpush3.bf16.msk.msra.mxu0 %vm9015_vm5, %v7164_v40  ;;  %v9030_v40 = vmov (%p373_p0), 0.0  }
 0x142   : > { %v456_v63 = vpop.f32.mrb[0].mxu0 }
 0x143   : > { %v457_v54 = vadd.f32 %v8898_v60, %v456_v63  ;;  %v6687_v41 = vpop.f32.mrb[1].mxu0 }
 0x145   : > { %vm460_vm2 = vcmp.gt.f32.partialorder %v457_v54, 0.0  ;;  %v461_v47 = vmul.f32 0.01, %v457_v54 }
 0x147   : > { %v462_v46 = vsel %vm460_vm2, %v457_v54, %v461_v47 }
 0x148   : > { %6693 = vmatmul.mubr.msk.f32.vlgmr.msra.gmra.mrb[0].mxu1 %vm386_vm1, %v462_v46 }
 0x21b   : > { %v538_v53 = vpop.f32.mrb[0].mxu1 }
 0x21c   : > { %v539_v41 = vadd.f32 %v8913_v59, %v538_v53  ;;  %v6694_v56 = vpop.f32.mrb[1].mxu1 }
 0x21e   : > { %vm542_vm6 = vcmp.gt.f32.partialorder %v539_v41, 0.0  ;;  %v543_v47 = vmul.f32 0.01, %v539_v41 }
 0x220   : > { %v544_v46 = vsel %vm542_vm6, %v539_v41, %v543_v47 }
 0x221   : > { %6700 = vmatmul.mubr.msk.f32.vlgmr.msra.gmra.mrb[2].mxu0 %vm551_vm7, %v544_v46 }
 0x2f4   : > { %v625_v63 = vpop.f32.mrb[2].mxu0 }
 0x2f5   : > { %v626_v54 = vadd.f32 %v8928_v57, %v625_v63  ;;  %v6701_v55 = vpop.f32.mrb[3].mxu0 }
 0x2f7   : > { %7658 = vtanh.f32 %v626_v54 }
 0x2fc   :  { %375 = sbr.rel (!%p373_p0) target bundleno = 102 (0x66), region = 273 }
 0x301   : > { %v7659_v58 = vpop.eup %7658 }
 0x302   : > { %631 = vst.msk [vmem:[%s630_s5] sm:$0xff] %vm551_vm7, %v7659_v58 }
 0x303 LB: > { %v9937_v0 = vld [vmem:[#allocation10_spill] sm:$0xff]  ;;  %v9938_v1 = vld [vmem:[#allocation11_spill] sm:$0xff]  ;;  %v7896_v58 = vmov 0.0|0.0   ;;  %vm7897_vm8 = vmmov 0   ;;  %v7898_v57 = vmov 0.0   ;;  %v9939_v2 = vld [vmem:[#allocation12_spill] sm:$0xff]  ;;  %v7172_v60 = vpack.c.bf16 %v8083_v7, %v8078_v6  ;;  %s7838_s18 = sphi %s9032_s18, %s637_s18   ;;  %v7834_v40 = vphi %v9030_v40, %v9942_v40  }
 0x304   : > { %v7168_v55 = vpack.c.bf16 %v9938_v1, %v9937_v0  ;;  %7167 = vmatprep.subr.bf16.mxu0 %v7896_v58  ;;  %6706 = vmatprep.mubr.msk.f32.mxu0 %vm7897_vm8, %v7898_v57  ;;  %v9940_v3 = vld [vmem:[#allocation13_spill] sm:$0xff]  ;;  %s6275_s0 = sshll.u32 %s7838_s18, 3  ;;  %v7180_v61 = vpack.c.bf16 %v8093_v9, %v8088_v8  ;;  %v7184_v53 = vpack.c.bf16 %v8073_v5, %v8068_v4  ;;  %s637_s18 = sadd.s32 1, %s7838_s18  }
 0x305   : > { %v7176_v59 = vpack.c.bf16 %v9940_v3, %v9939_v2  ;;  %7175 = vmatprep.subr.bf16.mxu1 %v7896_v58  ;;  %s640_s27 = scalar_lea.vmem [#allocation2], %s6275_s0  ;;  %6720 = vmatprep.mubr.msk.f32.mxu1 %vm7897_vm8, %v7898_v57  ;;  %v7188_v41 = vpack.c.bf16 %v8103_v11, %v8098_v10  ;;  %v7427_v56 = vadd.f32 %v8123_v15, %v8108_v12  ;;  %s1145_s2 = scalar_lea.vmem [#allocation3], %s6275_s0 }
 0x306   : > { %7170 = vmatpush3.bf16.msk.msra.mxu0 %vm9015_vm5, %v7168_v55  ;;  %v7429_v46 = vadd.f32 %v8128_v16, %v8113_v13  ;;  %p634_p1 = scmp.ge.s32.totalorder %s637_s18, 12  }
 0x307   : > { %7171 = vmatprep.subr.bf16.mxu0 %v7896_v58  ;;  %7178 = vmatpush3.bf16.msk.msra.mxu1 %vm9015_vm5, %v7176_v59  ;;  %s9103_s6 = smov (%p634_p1), 0  }
 0x308   : > { %7179 = vmatprep.subr.bf16.mxu1 %v7896_v58 }
 0x309   : > { %v641_v62 = vld [vmem:[%s640_s27] sm:$0xff] }
 0x30a   : > { %6707 = vmatmul.mubr.msk.f32.vlgmr.msra.gmra.mrb[0].mxu0 %vm551_vm7, %v641_v62  ;;  %6721 = vmatmul.mubr.msk.f32.vlgmr.msra.gmra.mrb[0].mxu1 %vm551_vm7, %v641_v62 }
 0x30b   : > { %7174 = vmatpush3.bf16.msk.msra.mxu0 %vm9015_vm5, %v7172_v60  ;;  %6713 = vmatprep.mubr.msk.f32.mxu0 %vm7897_vm8, %v7898_v57 }
 0x30c   : > { %7182 = vmatpush3.bf16.msk.msra.mxu1 %vm9015_vm5, %v7180_v61  ;;  %6727 = vmatprep.mubr.msk.f32.mxu1 %vm7897_vm8, %v7898_v57 }
 0x30d   : > { %7187 = vmatprep.subr.bf16.mxu1 %v7896_v58  ;;  %7183 = vmatprep.subr.bf16.mxu0 %v7896_v58 }
 0x312   : > { %6714 = vmatmul.mubr.msk.f32.vlgmr.msra.gmra.mrb[0].mxu0 %vm551_vm7, %v7834_v40  ;;  %6728 = vmatmul.mubr.msk.f32.vlgmr.msra.gmra.mrb[0].mxu1 %vm551_vm7, %v7834_v40 }
 0x313   : > { %7186 = vmatpush3.bf16.msk.msra.mxu0 %vm9015_vm5, %v7184_v53  ;;  %7190 = vmatpush3.bf16.msk.msra.mxu1 %vm9015_vm5, %v7188_v41 }
 0x314   : > { %6741 = vmatprep.mubr.msk.f32.mxu1 %vm7897_vm8, %v7898_v57  ;;  %6734 = vmatprep.mubr.msk.f32.mxu0 %vm7897_vm8, %v7898_v57 }
 0x316   : > { %6735 = vmatmul.mubr.msk.f32.vlgmr.msra.gmra.mrb[2].mxu0 %vm551_vm7, %v641_v62  ;;  %6742 = vmatmul.mubr.msk.f32.vlgmr.msra.gmra.mrb[2].mxu1 %vm551_vm7, %v7834_v40 }
 0x3e5   : > { %v804_v47 = vpop.f32.mrb[0].mxu0  ;;  %v969_v55 = vpop.f32.mrb[0].mxu1 }
 0x3e6   : > { %v7428_v63 = vadd.f32 %v7427_v56, %v804_v47  ;;  %v6715_v54 = vpop.f32.mrb[1].mxu0  ;;  %v6729_v58 = vpop.f32.mrb[1].mxu1  ;;  %v7430_v60 = vadd.f32 %v7429_v46, %v969_v55 }
 0x3e8   : > { %v6282_v59 = vmul.f32 -1.442695, %v7428_v63  ;;  %v6289_v41 = vmul.f32 -1.442695, %v7430_v60 }
 0x3e9   : > { %v1055_v61 = vpop.f32.mrb[2].mxu0  ;;  %v1134_v57 = vpop.f32.mrb[2].mxu1 }
 0x3ea   : > { %7660 = vpow2.f32 %v6282_v59  ;;  %v6736_v62 = vpop.f32.mrb[3].mxu0  ;;  %v6743_v53 = vpop.f32.mrb[3].mxu1  ;;  %v1135_v56 = vadd.f32 %v8133_v17, %v1134_v57  ;;  %v1056_v47 = vadd.f32 %v8118_v14, %v1055_v61 }
 0x3eb   : > { %7662 = vpow2.f32 %v6289_v41 }
 0x3f4   : > { %v7661_v0 = vpop.eup %7660 }
 0x3f5   : > { %v812_v1 = vadd.f32 1.0, %v7661_v0  ;;  %v7663_v2 = vpop.eup %7662 }
 0x3f6   : > { %v977_v3 = vadd.f32 1.0, %v7663_v2 }
 0x3f7   : > { %7664 = vrcp.f32 %v812_v1  ;;  %v9101_v1 = vmov (%p634_p1), 0.0  }
 0x3f8   : > { %7666 = vrcp.f32 %v977_v3 }
 0x401   : > { %v7665_v54 = vpop.eup %7664 }
 0x402   : > { %v1138_v46 = vmul.f32 %v7665_v54, %v1135_v56  ;;  %v7667_v55 = vpop.eup %7666 }
 0x403   : > { %v1141_v58 = vsub.f32 1.0, %v7667_v55  ;;  %v1143_v60 = vmul.f32 %v7834_v40, %v7667_v55 }
 0x404   : > { %v1139_v63 = vadd.f32 %v1138_v46, %v1056_v47 }
 0x406   : > { %7668 = vtanh.f32 %v1139_v63 }
 0x410   : > { %v7669_v59 = vpop.eup %7668  ;;  %636 = sbr.rel (!%p634_p1) target bundleno = 771 (0x303), region = 284 }
 0x411   : > { %v1142_v62 = vmul.f32 %v7669_v59, %v1141_v58 }
 0x413   : > { %v9089_v40 = vadd.f32 %v1143_v60, %v1142_v62  }
 0x415   : > { %v9941_v0 = vmov %v9089_v40 }
 0x416   : > { %1146 = vst.msk [vmem:[%s1145_s2] sm:$0xff] %vm551_vm7, %v9941_v0  ;;  %v9942_v40 = vmov %v9941_v0 }
 0x417 LB: > { %v7192_v2 = vpack.c.bf16 %v8143_v19, %v8138_v18  ;;  %v7899_v3 = vmov 0.0|0.0   ;;  %vm7900_vm9 = vmmov 0   ;;  %v7901_v40 = vmov 0.0   ;;  %s1154_s10 = ssub.s32 11, %s7846_s6  ;;  %s1152_s6 = sadd.s32 1, %s7846_s6   ;;  %s7846_s6 = sphi %s9103_s6, %s1152_s6   ;;  %v7842_v1 = vphi %v9101_v1, %v9944_v1  }
 0x418   : > { %7191 = vmatprep.subr.bf16.mxu0 %v7899_v3  ;;  %6748 = vmatprep.mubr.msk.f32.mxu0 %vm7900_vm9, %v7901_v40  ;;  %v7200_v4 = vpack.c.bf16 %v8153_v21, %v8148_v20  ;;  %s9119_s21 = sshll.u32 %s1154_s10, 3  ;;  %v7196_v5 = vpack.c.bf16 %v8173_v25, %v8168_v24  ;;  %v7204_v6 = vpack.c.bf16 %v8183_v27, %v8178_v26  ;;  %p1149_p2 = scmp.ge.s32.totalorder %s1152_s6, 12  }
 0x419   : > { %7194 = vmatpush3.bf16.msk.msra.mxu0 %vm9015_vm5, %v7192_v2  ;;  %7199 = vmatprep.subr.bf16.mxu1 %v7899_v3  ;;  %s1156_s30 = scalar_lea.vmem [#allocation2], %s9119_s21  ;;  %v7212_v8 = vpack.c.bf16 %v8193_v29, %v8188_v28  ;;  %v7208_v9 = vpack.c.bf16 %v8163_v23, %v8158_v22  ;;  %v7435_v10 = vadd.f32 %v8213_v33, %v8198_v30  ;;  %s1661_s17 = scalar_lea.vmem [#allocation4], %s9119_s21 }
 0x41a   : > { %7195 = vmatprep.subr.bf16.mxu0 %v7899_v3  ;;  %7202 = vmatpush3.bf16.msk.msra.mxu1 %vm9015_vm5, %v7200_v4  ;;  %v1157_v7 = vld [vmem:[%s1156_s30] sm:$0xff]  ;;  %v7437_v13 = vadd.f32 %v8218_v34, %v8203_v31  ;;  %s9174_s12 = smov (%p1149_p2), 0  }
 0x41b   : > { %6762 = vmatprep.mubr.msk.f32.mxu1 %vm7900_vm9, %v7901_v40  ;;  %7203 = vmatprep.subr.bf16.mxu1 %v7899_v3 }
 0x41c   : > { %6749 = vmatmul.mubr.msk.f32.vlgmr.msra.gmra.mrb[0].mxu0 %vm551_vm7, %v1157_v7 }
 0x41d   : > { %6763 = vmatmul.mubr.msk.f32.vlgmr.msra.gmra.mrb[0].mxu1 %vm551_vm7, %v1157_v7  ;;  %7198 = vmatpush3.bf16.msk.msra.mxu0 %vm9015_vm5, %v7196_v5 }
 0x41e   : > { %6755 = vmatprep.mubr.msk.f32.mxu0 %vm7900_vm9, %v7901_v40  ;;  %7206 = vmatpush3.bf16.msk.msra.mxu1 %vm9015_vm5, %v7204_v6 }
 0x41f   : > { %6769 = vmatprep.mubr.msk.f32.mxu1 %vm7900_vm9, %v7901_v40  ;;  %7211 = vmatprep.subr.bf16.mxu1 %v7899_v3 }
 0x420   : > { %7207 = vmatprep.subr.bf16.mxu0 %v7899_v3 }
 0x424   : > { %6756 = vmatmul.mubr.msk.f32.vlgmr.msra.gmra.mrb[0].mxu0 %vm551_vm7, %v7842_v1 }
 0x425   : > { %6770 = vmatmul.mubr.msk.f32.vlgmr.msra.gmra.mrb[0].mxu1 %vm551_vm7, %v7842_v1  ;;  %7210 = vmatpush3.bf16.msk.msra.mxu0 %vm9015_vm5, %v7208_v9 }
 0x426   : > { %7214 = vmatpush3.bf16.msk.msra.mxu1 %vm9015_vm5, %v7212_v8  ;;  %6783 = vmatprep.mubr.msk.f32.mxu1 %vm7900_vm9, %v7901_v40  ;;  %v9172_v8 = vmov (%p1149_p2), 0.0  }
 0x427   : > { %6776 = vmatprep.mubr.msk.f32.mxu0 %vm7900_vm9, %v7901_v40 }
 0x428   : > { %6777 = vmatmul.mubr.msk.f32.vlgmr.msra.gmra.mrb[2].mxu0 %vm551_vm7, %v1157_v7 }
 0x429   : > { %6784 = vmatmul.mubr.msk.f32.vlgmr.msra.gmra.mrb[2].mxu1 %vm551_vm7, %v7842_v1 }
 0x4f7   : > { %v1320_v11 = vpop.f32.mrb[0].mxu0 }
 0x4f8   : > { %v1485_v12 = vpop.f32.mrb[0].mxu1  ;;  %v7436_v14 = vadd.f32 %v7435_v10, %v1320_v11  ;;  %v6757_v15 = vpop.f32.mrb[1].mxu0 }
 0x4f9   : > { %v6771_v16 = vpop.f32.mrb[1].mxu1  ;;  %v7438_v61 = vadd.f32 %v7437_v13, %v1485_v12 }
 0x4fa   : > { %v6303_v17 = vmul.f32 -1.442695, %v7436_v14 }
 0x4fb   : > { %v1571_v53 = vpop.f32.mrb[2].mxu0  ;;  %v6310_v47 = vmul.f32 -1.442695, %v7438_v61 }
 0x4fc   : > { %v1650_v57 = vpop.f32.mrb[2].mxu1  ;;  %7670 = vpow2.f32 %v6303_v17  ;;  %v6778_v56 = vpop.f32.mrb[3].mxu0  ;;  %v1572_v59 = vadd.f32 %v8208_v32, %v1571_v53 }
 0x4fd   : > { %v6785_v41 = vpop.f32.mrb[3].mxu1  ;;  %7672 = vpow2.f32 %v6310_v47  ;;  %v1651_v58 = vadd.f32 %v8223_v35, %v1650_v57 }
 0x506   : > { %v7671_v54 = vpop.eup %7670 }
 0x507   : > { %v1328_v46 = vadd.f32 1.0, %v7671_v54  ;;  %v7673_v63 = vpop.eup %7672 }
 0x508   : > { %v1493_v55 = vadd.f32 1.0, %v7673_v63 }
 0x509   : > { %7674 = vrcp.f32 %v1328_v46 }
 0x50a   : > { %7676 = vrcp.f32 %v1493_v55 }
 0x513   : > { %v7675_v60 = vpop.eup %7674 }
 0x514   : > { %v1654_v62 = vmul.f32 %v7675_v60, %v1651_v58  ;;  %v7677_v3 = vpop.eup %7676 }
 0x515   : > { %v1657_v40 = vsub.f32 1.0, %v7677_v3  ;;  %v1659_v5 = vmul.f32 %v7842_v1, %v7677_v3 }
 0x516   : > { %v1655_v2 = vadd.f32 %v1654_v62, %v1572_v59 }
 0x518   : > { %7678 = vtanh.f32 %v1655_v2 }
 0x522   : > { %v7679_v4 = vpop.eup %7678  ;;  %1151 = sbr.rel (!%p1149_p2) target bundleno = 1047 (0x417), region = 295 }
 0x523   : > { %v1658_v6 = vmul.f32 %v7679_v4, %v1657_v40 }
 0x525   : > { %v9161_v1 = vadd.f32 %v1659_v5, %v1658_v6  }
 0x527   : > { %v9943_v7 = vmov %v9161_v1 }
 0x528   : > { %1662 = vst.msk [vmem:[%s1661_s17] sm:$0xff] %vm551_vm7, %v9943_v7  ;;  %v9944_v1 = vmov %v9943_v7 }
 0x529 LB: > { %v7216_v1 = vpack.c.bf16 %v8263_v43, %v8258_v42  ;;  %v7228_v9 = vpack.c.bf16 %v8273_v45, %v8268_v44  ;;  %v7902_v10 = vmov 0.0|0.0   ;;  %s6317_s7 = sshll.u32 %s7854_s12, 3  ;;  %v7220_v18 = vpack.c.bf16 %v8233_v37, %v8228_v36  ;;  %v9945_v25 = vld [vmem:[#allocation16_spill] sm:$0xff]  ;;  %v9946_v26 = vld [vmem:[#allocation17_spill] sm:$0xff]  ;;  %v9947_v28 = vld [vmem:[#allocation14_spill] sm:$0xff]  ;;  %s1668_s12 = sadd.s32 1, %s7854_s12   ;;  %s7854_s12 = sphi %s9174_s12, %s1668_s12   ;;  %v7850_v8 = vphi %v9172_v8, %v9958_v8  }
 0x52a   : > { %7215 = vmatprep.subr.bf16.mxu0 %v7902_v10  ;;  %7227 = vmatprep.subr.bf16.mxu1 %v7902_v10  ;;  %v7232_v19 = vpack.c.bf16 %v8243_v39, %v8238_v38  ;;  %vm7903_vm10 = vmmov 0   ;;  %v7904_v20 = vmov 0.0   ;;  %s1671_s3 = scalar_lea.vmem [#allocation4], %s6317_s7  ;;  %s1673_s26 = scalar_lea.vmem [#allocation3], %s6317_s7  ;;  %v7224_v23 = vpack.c.bf16 %v8293_v49, %v8288_v48  ;;  %v9948_v29 = vld [vmem:[#allocation15_spill] sm:$0xff]  ;;  %v9949_v31 = vld [vmem:[#allocation18_spill] sm:$0xff] }
 0x52b   : > { %7218 = vmatpush3.bf16.msk.msra.mxu0 %vm9015_vm5, %v7216_v1  ;;  %7230 = vmatpush3.bf16.msk.msra.mxu1 %vm9015_vm5, %v7228_v9  ;;  %v1674_v22 = vld [vmem:[%s1673_s26] sm:$0xff]  ;;  %v7236_v24 = vpack.c.bf16 %v8303_v51, %v8298_v50  ;;  %v7240_v27 = vpack.c.bf16 %v9946_v26, %v9945_v25  ;;  %v7244_v30 = vpack.c.bf16 %v9948_v29, %v9947_v28  ;;  %v9950_v32 = vld [vmem:[#allocation19_spill] sm:$0xff]  ;;  %v9951_v34 = vld [vmem:[#allocation20_spill] sm:$0xff]  ;;  %p1665_p3 = scmp.ge.s32.totalorder %s1668_s12, 12  }
 0x52c   : > { %6790 = vmatprep.mubr.msk.f32.mxu0 %vm7903_vm10, %v7904_v20  ;;  %6811 = vmatprep.mubr.msk.f32.mxu1 %vm7903_vm10, %v7904_v20  ;;  %v7248_v33 = vpack.c.bf16 %v9950_v32, %v9949_v31  ;;  %v9952_v35 = vld [vmem:[#allocation23_spill] sm:$0xff]  ;;  %v9953_v14 = vld [vmem:[#allocation21_spill] sm:$0xff]  ;;  %v9954_v15 = vld [vmem:[#allocation24_spill] sm:$0xff]  ;;  %s9257_s13 = smov (%p1665_p3), 0  }
 0x52d   : > { %7219 = vmatprep.subr.bf16.mxu0 %v7902_v10  ;;  %7231 = vmatprep.subr.bf16.mxu1 %v7902_v10  ;;  %v7443_v11 = vadd.f32 %v9952_v35, %v9951_v34  ;;  %v7445_v16 = vadd.f32 %v9954_v15, %v9953_v14  ;;  %v9955_v40 = vld [vmem:[#allocation25_spill] sm:$0xff]  ;;  %v9956_v6 = vld [vmem:[#allocation22_spill] sm:$0xff] }
 0x52f   : > { %v1672_v21 = vld [vmem:[%s1671_s3] sm:$0xff] }
 0x530   : > { %6791 = vmatmul.mubr.msk.f32.vlgmr.msra.gmra.mrb[0].mxu0 %vm551_vm7, %v1672_v21  ;;  %6812 = vmatmul.mubr.msk.f32.vlgmr.msra.gmra.mrb[0].mxu1 %vm551_vm7, %v1672_v21 }
 0x531   : > { %7222 = vmatpush3.bf16.msk.msra.mxu0 %vm9015_vm5, %v7220_v18  ;;  %7234 = vmatpush3.bf16.msk.msra.mxu1 %vm9015_vm5, %v7232_v19 }
 0x532   : > { %6797 = vmatprep.mubr.msk.f32.mxu0 %vm7903_vm10, %v7904_v20  ;;  %6818 = vmatprep.mubr.msk.f32.mxu1 %vm7903_vm10, %v7904_v20 }
 0x533   : > { %7223 = vmatprep.subr.bf16.mxu0 %v7902_v10  ;;  %7235 = vmatprep.subr.bf16.mxu1 %v7902_v10 }
 0x538   : > { %6798 = vmatmul.mubr.msk.f32.vlgmr.msra.gmra.mrb[0].mxu0 %vm551_vm7, %v1674_v22  ;;  %6819 = vmatmul.mubr.msk.f32.vlgmr.msra.gmra.mrb[0].mxu1 %vm551_vm7, %v1674_v22 }
 0x539   : > { %7226 = vmatpush3.bf16.msk.msra.mxu0 %vm9015_vm5, %v7224_v23  ;;  %7238 = vmatpush3.bf16.msk.msra.mxu1 %vm9015_vm5, %v7236_v24  ;;  %v9255_v24 = vmov (%p1665_p3), 0.0  }
 0x53a   : > { %6804 = vmatprep.mubr.msk.f32.mxu0 %vm7903_vm10, %v7904_v20  ;;  %6825 = vmatprep.mubr.msk.f32.mxu1 %vm7903_vm10, %v7904_v20 }
 0x53b   : > { %7239 = vmatprep.subr.bf16.mxu0 %v7902_v10  ;;  %7243 = vmatprep.subr.bf16.mxu1 %v7902_v10 }
 0x540   : > { %6805 = vmatmul.mubr.msk.f32.vlgmr.msra.gmra.mrb[0].mxu0 %vm551_vm7, %v7850_v8  ;;  %6826 = vmatmul.mubr.msk.f32.vlgmr.msra.gmra.mrb[0].mxu1 %vm551_vm7, %v7850_v8 }
 0x541   : > { %7242 = vmatpush3.bf16.msk.msra.mxu0 %vm9015_vm5, %v7240_v27  ;;  %7246 = vmatpush3.bf16.msk.msra.mxu1 %vm9015_vm5, %v7244_v30 }
 0x542   : > { %6832 = vmatprep.mubr.msk.f32.mxu0 %vm7903_vm10, %v7904_v20  ;;  %6839 = vmatprep.mubr.msk.f32.mxu1 %vm7903_vm10, %v7904_v20 }
 0x543   : > { %7247 = vmatprep.subr.bf16.mxu0 %v7902_v10 }
 0x544   : > { %6833 = vmatmul.mubr.msk.f32.vlgmr.msra.gmra.mrb[2].mxu0 %vm551_vm7, %v1672_v21  ;;  %6840 = vmatmul.mubr.msk.f32.vlgmr.msra.gmra.mrb[2].mxu1 %vm551_vm7, %v1674_v22 }
 0x545   : > { %7250 = vmatpush3.bf16.msk.msra.mxu0 %vm9015_vm5, %v7248_v33  ;;  %6846 = vmatprep.mubr.msk.f32.mxu0 %vm7903_vm10, %v7904_v20 }
 0x548   : > { %6847 = vmatmul.mubr.msk.f32.vlgmr.msra.gmra.mrb[4].mxu0 %vm551_vm7, %v7850_v8 }
 0x613   : > { %v1914_v12 = vpop.f32.mrb[0].mxu0  ;;  %v2153_v13 = vpop.f32.mrb[0].mxu1 }
 0x614   : > { %v7444_v17 = vadd.f32 %v7443_v11, %v1914_v12  ;;  %v6806_v61 = vpop.f32.mrb[1].mxu0  ;;  %v6827_v57 = vpop.f32.mrb[1].mxu1  ;;  %v7446_v41 = vadd.f32 %v7445_v16, %v2153_v13 }
 0x616   : > { %v6326_v53 = vmul.f32 -1.442695, %v7444_v17  ;;  %v6335_v55 = vmul.f32 -1.442695, %v7446_v41 }
 0x617   : > { %v2233_v56 = vpop.f32.mrb[2].mxu0  ;;  %v2306_v47 = vpop.f32.mrb[2].mxu1 }
 0x618   : > { %7680 = vpow2.f32 %v6326_v53  ;;  %v6834_v54 = vpop.f32.mrb[3].mxu0  ;;  %v2307_v46 = vadd.f32 %v2306_v47, %v2233_v56  ;;  %v6841_v63 = vpop.f32.mrb[3].mxu1 }
 0x619   : > { %7682 = vpow2.f32 %v6335_v55 }
 0x61a   : > { %v2316_v1 = vadd.f32 %v9956_v6, %v2307_v46 }
 0x61b   : > { %v2392_v58 = vpop.f32.mrb[4].mxu0 }
 0x61c   : > { %v6848_v59 = vpop.f32.mrb[5].mxu0  ;;  %v2393_v4 = vadd.f32 %v9955_v40, %v2392_v58 }
 0x622   : > { %v7681_v60 = vpop.eup %7680 }
 0x623   : > { %v1922_v62 = vadd.f32 1.0, %v7681_v60  ;;  %v7683_v2 = vpop.eup %7682 }
 0x624   : > { %v2161_v3 = vadd.f32 1.0, %v7683_v2 }
 0x625   : > { %7684 = vrcp.f32 %v1922_v62 }
 0x626   : > { %7686 = vrcp.f32 %v2161_v3 }
 0x62f   : > { %v7685_v5 = vpop.eup %7684 }
 0x630   : > { %v2396_v9 = vmul.f32 %v7685_v5, %v2393_v4  ;;  %v7687_v18 = vpop.eup %7686 }
 0x631   : > { %v2399_v19 = vsub.f32 1.0, %v7687_v18  ;;  %v2401_v21 = vmul.f32 %v7850_v8, %v7687_v18 }
 0x632   : > { %v2397_v10 = vadd.f32 %v2396_v9, %v2316_v1 }
 0x634   : > { %7688 = vtanh.f32 %v2397_v10 }
 0x63e   : > { %v7689_v20 = vpop.eup %7688  ;;  %1667 = sbr.rel (!%p1665_p3) target bundleno = 1321 (0x529), region = 306 }
 0x63f   : > { %v2400_v22 = vmul.f32 %v7689_v20, %v2399_v19 }
 0x641   : > { %v9247_v8 = vadd.f32 %v2401_v21, %v2400_v22  }
 0x643   : > { %v9957_v23 = vmov %v9247_v8 }
 0x644   : > { %v9958_v8 = vmov %v9957_v23 }
 0x645 LB: > { %v9959_v8 = vld [vmem:[#allocation32_spill] sm:$0xff]  ;;  %v9960_v25 = vld [vmem:[#allocation33_spill] sm:$0xff]  ;;  %v9961_v27 = vld [vmem:[#allocation34_spill] sm:$0xff]  ;;  %v7905_v30 = vmov 0.0|0.0   ;;  %s2410_s1 = ssub.s32 11, %s7862_s13  ;;  %vm7906_vm11 = vmmov 0   ;;  %s7862_s13 = sphi %s9257_s13, %s2408_s13   ;;  %v7858_v24 = vphi %v9255_v24, %v9983_v24  }
 0x646   : > { %v7252_v26 = vpack.c.bf16 %v9960_v25, %v9959_v8  ;;  %v9962_v28 = vld [vmem:[#allocation35_spill] sm:$0xff]  ;;  %7251 = vmatprep.subr.bf16.mxu0 %v7905_v30  ;;  %7263 = vmatprep.subr.bf16.mxu1 %v7905_v30  ;;  %v7907_v36 = vmov 0.0   ;;  %s6344_s14 = sshll.u32 %s2410_s1, 3  ;;  %v9963_v37 = vld [vmem:[#allocation26_spill] sm:$0xff]  ;;  %v9965_v42 = vld [vmem:[#allocation28_spill] sm:$0xff]  ;;  %s2408_s13 = sadd.s32 1, %s7862_s13  }
 0x647   : > { %v7264_v29 = vpack.c.bf16 %v9962_v28, %v9961_v27  ;;  %6853 = vmatprep.mubr.msk.f32.mxu0 %vm7906_vm11, %v7907_v36  ;;  %v9964_v38 = vld [vmem:[#allocation27_spill] sm:$0xff]  ;;  %v9966_v43 = vld [vmem:[#allocation29_spill] sm:$0xff]  ;;  %6874 = vmatprep.mubr.msk.f32.mxu1 %vm7906_vm11, %v7907_v36  ;;  %s2412_s19 = scalar_lea.vmem [#allocation4], %s6344_s14  ;;  %s2414_s11 = scalar_lea.vmem [#allocation3], %s6344_s14  ;;  %v9967_v49 = vld [vmem:[#allocation38_spill] sm:$0xff] }
 0x648   : > { %7254 = vmatpush3.bf16.msk.msra.mxu0 %vm9015_vm5, %v7252_v26  ;;  %v7256_v39 = vpack.c.bf16 %v9964_v38, %v9963_v37  ;;  %v7268_v44 = vpack.c.bf16 %v9966_v43, %v9965_v42  ;;  %v2413_v45 = vld [vmem:[%s2412_s19] sm:$0xff]  ;;  %v9968_v50 = vld [vmem:[#allocation39_spill] sm:$0xff]  ;;  %v9969_v31 = vld [vmem:[#allocation40_spill] sm:$0xff]  ;;  %p2405_p4 = scmp.ge.s32.totalorder %s2408_s13, 12  }
 0x649   : > { %7266 = vmatpush3.bf16.msk.msra.mxu1 %vm9015_vm5, %v7264_v29  ;;  %7255 = vmatprep.subr.bf16.mxu0 %v7905_v30  ;;  %v2415_v48 = vld [vmem:[%s2414_s11] sm:$0xff]  ;;  %v7260_v51 = vpack.c.bf16 %v9968_v50, %v9967_v49  ;;  %v9970_v32 = vld [vmem:[#allocation41_spill] sm:$0xff]  ;;  %v9971_v34 = vld [vmem:[#allocation36_spill] sm:$0xff]  ;;  %v9348_v42 = vmov (%p2405_p4), 0.0   ;;  %s9350_s8 = smov (%p2405_p4), 1  }
 0x64a   : > { %7267 = vmatprep.subr.bf16.mxu1 %v7905_v30  ;;  %v7272_v33 = vpack.c.bf16 %v9970_v32, %v9969_v31  ;;  %v9972_v35 = vld [vmem:[#allocation37_spill] sm:$0xff]  ;;  %v9973_v12 = vld [vmem:[#allocation30_spill] sm:$0xff]  ;;  %v9974_v13 = vld [vmem:[#allocation31_spill] sm:$0xff] }
 0x64b   : > { %6854 = vmatmul.mubr.msk.f32.vlgmr.msra.gmra.mrb[0].mxu0 %vm551_vm7, %v2413_v45  ;;  %v7276_v11 = vpack.c.bf16 %v9972_v35, %v9971_v34  ;;  %v7280_v14 = vpack.c.bf16 %v9974_v13, %v9973_v12  ;;  %v9975_v15 = vld [vmem:[#allocation42_spill] sm:$0xff]  ;;  %v9976_v16 = vld [vmem:[#allocation43_spill] sm:$0xff]  ;;  %v9977_v61 = vld [vmem:[#allocation44_spill] sm:$0xff] }
 0x64c   : > { %6875 = vmatmul.mubr.msk.f32.vlgmr.msra.gmra.mrb[0].mxu1 %vm551_vm7, %v2413_v45  ;;  %7258 = vmatpush3.bf16.msk.msra.mxu0 %vm9015_vm5, %v7256_v39  ;;  %v7284_v17 = vpack.c.bf16 %v9976_v16, %v9975_v15  ;;  %v9978_v57 = vld [vmem:[#allocation47_spill] sm:$0xff]  ;;  %v9979_v47 = vld [vmem:[#allocation45_spill] sm:$0xff]  ;;  %v9980_v54 = vld [vmem:[#allocation48_spill] sm:$0xff]  ;;  %v7908_v39 = vmov (%p2405_p4), 0.0  }
 0x64d   : > { %7270 = vmatpush3.bf16.msk.msra.mxu1 %vm9015_vm5, %v7268_v44  ;;  %6860 = vmatprep.mubr.msk.f32.mxu0 %vm7906_vm11, %v7907_v36  ;;  %v7455_v53 = vadd.f32 %v9978_v57, %v9977_v61  ;;  %v7457_v46 = vadd.f32 %v9980_v54, %v9979_v47  ;;  %v9981_v20 = vld [vmem:[#allocation49_spill] sm:$0xff]  ;;  %v9982_v8 = vld [vmem:[#allocation46_spill] sm:$0xff]  ;;  %3144 = vst [vmem:[#allocation7] sm:$0xff] (%p2405_p4), %v7908_v39 }
 0x64e   : > { %7259 = vmatprep.subr.bf16.mxu0 %v7905_v30  ;;  %6881 = vmatprep.mubr.msk.f32.mxu1 %vm7906_vm11, %v7907_v36 }
 0x64f   : > { %7271 = vmatprep.subr.bf16.mxu1 %v7905_v30 }
 0x653   : > { %6861 = vmatmul.mubr.msk.f32.vlgmr.msra.gmra.mrb[0].mxu0 %vm551_vm7, %v2415_v48 }
 0x654   : > { %6882 = vmatmul.mubr.msk.f32.vlgmr.msra.gmra.mrb[0].mxu1 %vm551_vm7, %v2415_v48  ;;  %7262 = vmatpush3.bf16.msk.msra.mxu0 %vm9015_vm5, %v7260_v51 }
 0x655   : > { %7274 = vmatpush3.bf16.msk.msra.mxu1 %vm9015_vm5, %v7272_v33  ;;  %6867 = vmatprep.mubr.msk.f32.mxu0 %vm7906_vm11, %v7907_v36 }
 0x656   : > { %6888 = vmatprep.mubr.msk.f32.mxu1 %vm7906_vm11, %v7907_v36  ;;  %7275 = vmatprep.subr.bf16.mxu0 %v7905_v30 }
 0x657   : > { %7279 = vmatprep.subr.bf16.mxu1 %v7905_v30 }
 0x65b   : > { %6868 = vmatmul.mubr.msk.f32.vlgmr.msra.gmra.mrb[0].mxu0 %vm551_vm7, %v7858_v24 }
 0x65c   : > { %6889 = vmatmul.mubr.msk.f32.vlgmr.msra.gmra.mrb[0].mxu1 %vm551_vm7, %v7858_v24  ;;  %7278 = vmatpush3.bf16.msk.msra.mxu0 %vm9015_vm5, %v7276_v11 }
 0x65d   : > { %7282 = vmatpush3.bf16.msk.msra.mxu1 %vm9015_vm5, %v7280_v14  ;;  %6895 = vmatprep.mubr.msk.f32.mxu0 %vm7906_vm11, %v7907_v36 }
 0x65e   : > { %6902 = vmatprep.mubr.msk.f32.mxu1 %vm7906_vm11, %v7907_v36  ;;  %7283 = vmatprep.subr.bf16.mxu0 %v7905_v30 }
 0x65f   : > { %6896 = vmatmul.mubr.msk.f32.vlgmr.msra.gmra.mrb[2].mxu0 %vm551_vm7, %v2413_v45 }
 0x660   : > { %6903 = vmatmul.mubr.msk.f32.vlgmr.msra.gmra.mrb[2].mxu1 %vm551_vm7, %v2415_v48  ;;  %7286 = vmatpush3.bf16.msk.msra.mxu0 %vm9015_vm5, %v7284_v17 }
 0x661   : > { %6909 = vmatprep.mubr.msk.f32.mxu0 %vm7906_vm11, %v7907_v36 }
 0x663   : > { %6910 = vmatmul.mubr.msk.f32.vlgmr.msra.gmra.mrb[4].mxu0 %vm551_vm7, %v7858_v24 }
 0x72e   : > { %v2655_v41 = vpop.f32.mrb[0].mxu0 }
 0x72f   : > { %v2894_v56 = vpop.f32.mrb[0].mxu1  ;;  %v7456_v63 = vadd.f32 %v7455_v53, %v2655_v41  ;;  %v6869_v55 = vpop.f32.mrb[1].mxu0 }
 0x730   : > { %v6890_v58 = vpop.f32.mrb[1].mxu1  ;;  %v7458_v60 = vadd.f32 %v7457_v46, %v2894_v56 }
 0x731   : > { %v6353_v59 = vmul.f32 -1.442695, %v7456_v63 }
 0x732   : > { %v2974_v62 = vpop.f32.mrb[2].mxu0  ;;  %v6362_v5 = vmul.f32 -1.442695, %v7458_v60 }
 0x733   : > { %v3047_v2 = vpop.f32.mrb[2].mxu1  ;;  %7690 = vpow2.f32 %v6353_v59  ;;  %v6897_v3 = vpop.f32.mrb[3].mxu0 }
 0x734   : > { %v3048_v40 = vadd.f32 %v3047_v2, %v2974_v62  ;;  %v6904_v4 = vpop.f32.mrb[3].mxu1  ;;  %7692 = vpow2.f32 %v6362_v5 }
 0x736   : > { %v3133_v6 = vpop.f32.mrb[4].mxu0  ;;  %v3057_v25 = vadd.f32 %v9982_v8, %v3048_v40 }
 0x737   : > { %v6911_v1 = vpop.f32.mrb[5].mxu0  ;;  %v3134_v21 = vadd.f32 %v9981_v20, %v3133_v6 }
 0x73d   : > { %v7691_v9 = vpop.eup %7690 }
 0x73e   : > { %v2663_v10 = vadd.f32 1.0, %v7691_v9  ;;  %v7693_v18 = vpop.eup %7692 }
 0x73f   : > { %v2902_v19 = vadd.f32 1.0, %v7693_v18 }
 0x740   : > { %7694 = vrcp.f32 %v2663_v10 }
 0x741   : > { %7696 = vrcp.f32 %v2902_v19 }
 0x74a   : > { %v7695_v22 = vpop.eup %7694 }
 0x74b   : > { %v3137_v26 = vmul.f32 %v7695_v22, %v3134_v21  ;;  %v7697_v28 = vpop.eup %7696 }
 0x74c   : > { %v3140_v29 = vsub.f32 1.0, %v7697_v28  ;;  %v3142_v36 = vmul.f32 %v7858_v24, %v7697_v28 }
 0x74d   : > { %v3138_v27 = vadd.f32 %v3137_v26, %v3057_v25 }
 0x74f   : > { %7698 = vtanh.f32 %v3138_v27 }
 0x758   :  { %2407 = sbr.rel (!%p2405_p4) target bundleno = 1605 (0x645), region = 317 }
 0x759   : > { %v7699_v30 = vpop.eup %7698 }
 0x75a   : > { %v3141_v37 = vmul.f32 %v7699_v30, %v3140_v29 }
 0x75c   : > { %v3143_v38 = vadd.f32 %v3142_v36, %v3141_v37  }
 0x75e   : > { %v9983_v24 = vmov %v3143_v38 }
 0x75f   :  { %v9346_v24 = vmov 0.0  }
 0x760 LB: > { %v9984_v43 = vld [vmem:[#allocation140_spill] sm:$0xff]  ;;  %v9985_v44 = vld [vmem:[#allocation141_spill] sm:$0xff]  ;;  %v9986_v48 = vld [vmem:[#allocation138_spill] sm:$0xff]  ;;  %v7909_v51 = vmov 0.0|0.0   ;;  %vm7910_vm12 = vmmov 0   ;;  %v7911_v31 = vmov 0.0   ;;  %s7890_s8 = sphi %s9350_s8, %s3150_s8   ;;  %v7886_v42 = vphi %v9348_v42, %v10084_v42   ;;  %v7882_v24 = vphi %v9346_v24, %v10083_v24   ;;  %v7878_v0 = vphi %v9941_v0, %v9526_v0   ;;  %v7874_v7 = vphi %v9943_v7, %v9533_v7   ;;  %v7870_v23 = vphi %v9957_v23, %v10082_v23   ;;  %v7866_v38 = vphi %v3143_v38, %v10081_v38  }
 0x761   : > { %v7288_v45 = vpack.c.bf16 %v9985_v44, %v9984_v43  ;;  %v9987_v49 = vld [vmem:[#allocation139_spill] sm:$0xff]  ;;  %7287 = vmatprep.subr.bf16.mxu0 %v7909_v51  ;;  %7291 = vmatprep.subr.bf16.mxu1 %v7909_v51  ;;  %v9989_v33 = vld [vmem:[#allocation144_spill] sm:$0xff]  ;;  %v9990_v15 = vld [vmem:[#allocation142_spill] sm:$0xff]  ;;  %s6476_s15 = sshll.u32 %s7890_s8, 3  ;;  %s3150_s8 = sadd.s32 1, %s7890_s8  }
 0x762   : > { %v7292_v50 = vpack.c.bf16 %v9987_v49, %v9986_v48  ;;  %6916 = vmatprep.mubr.msk.f32.mxu0 %vm7910_vm12, %v7911_v31  ;;  %6923 = vmatprep.mubr.msk.f32.mxu1 %vm7910_vm12, %v7911_v31  ;;  %v9988_v32 = vld [vmem:[#allocation143_spill] sm:$0xff]  ;;  %v9991_v57 = vld [vmem:[#allocation50_spill] sm:$0xff]  ;;  %v9993_v56 = vld [vmem:[#allocation52_spill] sm:$0xff]  ;;  %s6011_s4 = scalar_lea.vmem [#allocation7], %s6476_s15  ;;  %p3147_p5 = scmp.ge.s32.totalorder %s3150_s8, 12  }
 0x763   : > { %7290 = vmatpush3.bf16.msk.msra.mxu0 %vm9015_vm5, %v7288_v45  ;;  %v7296_v34 = vpack.c.bf16 %v9989_v33, %v9988_v32  ;;  %v9992_v53 = vld [vmem:[#allocation51_spill] sm:$0xff]  ;;  %v9994_v47 = vld [vmem:[#allocation53_spill] sm:$0xff]  ;;  %v9996_v60 = vld [vmem:[#allocation56_spill] sm:$0xff]  ;;  %s7912_s16 = smov (%p3147_p5), [#allocation7]  }
 0x764   : > { %7294 = vmatpush3.bf16.msk.msra.mxu1 %vm9015_vm5, %v7292_v50  ;;  %7295 = vmatprep.subr.bf16.mxu0 %v7909_v51  ;;  %v7300_v41 = vpack.c.bf16 %v9992_v53, %v9991_v57  ;;  %v7308_v54 = vpack.c.bf16 %v9994_v47, %v9993_v56  ;;  %v9995_v63 = vld [vmem:[#allocation145_spill] sm:$0xff]  ;;  %v9998_v3 = vld [vmem:[#allocation58_spill] sm:$0xff]  ;;  %v9999_v40 = vld [vmem:[#allocation59_spill] sm:$0xff]  ;;  %s6018_s28 = sshll.u32 (%p3147_p5), %s7912_s16, 4  ;;  %s6019_s28 = int_to_ptr.vmem [resolvable:$true] %s6018_s28 }
 0x765   : > { %7299 = vmatprep.subr.bf16.mxu1 %v7909_v51  ;;  %v9997_v62 = vld [vmem:[#allocation57_spill] sm:$0xff]  ;;  %v7312_v4 = vpack.c.bf16 %v9999_v40, %v9998_v3  ;;  %v10000_v6 = vld [vmem:[#allocation54_spill] sm:$0xff]  ;;  %v10001_v1 = vld [vmem:[#allocation55_spill] sm:$0xff]  ;;  %s7740_s9 = scalar_lea.vmem (%p3147_p5), %s6019_s28, 1536  ;;  %p7745_p7 = scmp.lt.s32.totalorder (%p3147_p5), %s6019_s28, %s6019_s28 }
 0x766   : > { %6917 = vmatmul.mubr.msk.f32.vlgmr.msra.gmra.mrb[0].mxu0 %vm551_vm7, %v7882_v24  ;;  %v7304_v2 = vpack.c.bf16 %v9997_v62, %v9996_v60  ;;  %v7316_v9 = vpack.c.bf16 %v10001_v1, %v10000_v6  ;;  %v10002_v10 = vld [vmem:[#allocation60_spill] sm:$0xff]  ;;  %v10003_v18 = vld [vmem:[#allocation61_spill] sm:$0xff]  ;;  %v10006_v8 = vld [vmem:[#allocation70_spill] sm:$0xff]  ;;  %p7741_p6 = scmp.ne.s32.totalorder (%p3147_p5), %s6019_s28, %s7740_s9  ;;  %p7746_p8 = scmp.lt.s32.totalorder (%p3147_p5), %s7740_s9, %s7740_s9 }
 0x767   : > { %6924 = vmatmul.mubr.msk.f32.vlgmr.msra.gmra.mrb[0].mxu1 %vm551_vm7, %v7886_v42  ;;  %6930 = vmatprep.mubr.msk.f32.mxu0 %vm7910_vm12, %v7911_v31  ;;  %v7320_v19 = vpack.c.bf16 %v10003_v18, %v10002_v10  ;;  %v10004_v20 = vld [vmem:[#allocation68_spill] sm:$0xff]  ;;  %v10005_v21 = vld [vmem:[#allocation69_spill] sm:$0xff]  ;;  %v10007_v25 = vld [vmem:[#allocation71_spill] sm:$0xff] }
 0x768   : > { %6937 = vmatprep.mubr.msk.f32.mxu1 %vm7910_vm12, %v7911_v31  ;;  %7298 = vmatpush3.bf16.msk.msra.mxu0 %vm9015_vm5, %v7296_v34  ;;  %v7324_v22 = vpack.c.bf16 %v10005_v21, %v10004_v20  ;;  %v7332_v26 = vpack.c.bf16 %v10007_v25, %v10006_v8  ;;  %v10008_v27 = vld [vmem:[#allocation74_spill] sm:$0xff]  ;;  %v10009_v28 = vld [vmem:[#allocation75_spill] sm:$0xff]  ;;  %v10010_v30 = vld [vmem:[#allocation76_spill] sm:$0xff]  ;;  %p7747_p9 = por (%p3147_p5), %p7746_p8, %p7745_p7 }
 0x769   : > { %7307 = vmatprep.subr.bf16.mxu0 %v7909_v51  ;;  %7302 = vmatpush3.bf16.msk.msra.mxu1 %vm9015_vm5, %v7300_v41  ;;  %v7328_v29 = vpack.c.bf16 %v10009_v28, %v10008_v27  ;;  %v10011_v36 = vld [vmem:[#allocation77_spill] sm:$0xff]  ;;  %v10012_v39 = vld [vmem:[#allocation72_spill] sm:$0xff]  ;;  %v10014_v43 = vld [vmem:[#allocation78_spill] sm:$0xff] }
 0x76a   : > { %7303 = vmatprep.subr.bf16.mxu1 %v7909_v51  ;;  %v7336_v37 = vpack.c.bf16 %v10011_v36, %v10010_v30  ;;  %v10013_v24 = vld [vmem:[#allocation73_spill] sm:$0xff]  ;;  %v10015_v44 = vld [vmem:[#allocation79_spill] sm:$0xff]  ;;  %v10016_v48 = vld [vmem:[#allocation94_spill] sm:$0xff]  ;;  %p7748_p10 = pnand (%p3147_p5), %p7747_p9, %p7741_p6 }
 0x76b   : > { %v7340_v42 = vpack.c.bf16 %v10013_v24, %v10012_v39  ;;  %v7344_v45 = vpack.c.bf16 %v10015_v44, %v10014_v43  ;;  %v10017_v49 = vld [vmem:[#allocation95_spill] sm:$0xff]  ;;  %v10018_v32 = vld [vmem:[#allocation92_spill] sm:$0xff]  ;;  %v10019_v33 = vld [vmem:[#allocation93_spill] sm:$0xff] }
 0x76c   : > { %v7360_v50 = vpack.c.bf16 %v10017_v49, %v10016_v48  ;;  %v7348_v34 = vpack.c.bf16 %v10019_v33, %v10018_v32  ;;  %v10028_v28 = vld [vmem:[#allocation67_spill] sm:$0xff]  ;;  %v10029_v36 = vld [vmem:[#allocation64_spill] sm:$0xff]  ;;  %v10030_v49 = vld [vmem:[#allocation85_spill] sm:$0xff] }
 0x839   : > { %v3231_v35 = vpop.f32.mrb[0].mxu0 }
 0x83a   : > { %v3307_v11 = vpop.f32.mrb[0].mxu1  ;;  %v6918_v13 = vpop.f32.mrb[1].mxu0 }
 0x83b   : > { %v3308_v12 = vadd.f32 %v3307_v11, %v3231_v35  ;;  %v6925_v14 = vpop.f32.mrb[1].mxu1  ;;  %v10020_v35 = vld [vmem:[#allocation62_spill] sm:$0xff]  ;;  %v10021_v11 = vld [vmem:[#allocation65_spill] sm:$0xff] }
 0x83d   : > { %v3317_v16 = vadd.f32 %v9990_v15, %v3308_v12  ;;  %v7467_v12 = vadd.f32 %v10021_v11, %v10020_v35  ;;  %v10022_v15 = vld [vmem:[#allocation63_spill] sm:$0xff] }
 0x83f   : > { %vm3318_vm13 = vcmp.gt.f32.partialorder %v3317_v16, 0.0  ;;  %v3319_v17 = vmul.f32 0.01, %v3317_v16 }
 0x841   : > { %v3320_v61 = vsel %vm3318_vm13, %v3317_v16, %v3319_v17  ;;  %v10023_v16 = vld [vmem:[#allocation66_spill] sm:$0xff] }
 0x842   : > { %6931 = vmatmul.mubr.msk.f32.vlgmr.msra.gmra.mrb[2].mxu0 %vm551_vm7, %v3320_v61  ;;  %v7469_v17 = vadd.f32 %v10023_v16, %v10022_v15 }
 0x843   : > { %6951 = vmatprep.mubr.msk.f32.mxu0 %vm7910_vm12, %v7911_v31  ;;  %7310 = vmatpush3.bf16.msk.msra.mxu0 %vm9015_vm5, %v7308_v54 }
 0x844   : > { %7311 = vmatprep.subr.bf16.mxu0 %v7909_v51 }
 0x915   : > { %v3399_v46 = vpop.f32.mrb[2].mxu0 }
 0x916   : > { %v3400_v55 = vadd.f32 %v9995_v63, %v3399_v46  ;;  %v6932_v58 = vpop.f32.mrb[3].mxu0 }
 0x917   : > { %v10024_v58 = vld [vmem:[#allocation80_spill] sm:$0xff] }
 0x918   : > { %vm3403_vm14 = vcmp.gt.f32.partialorder %v3400_v55, 0.0  ;;  %v3404_v59 = vmul.f32 0.01, %v3400_v55 }
 0x91a   : > { %v3405_v5 = vsel %vm3403_vm14, %v3400_v55, %v3404_v59  ;;  %v10025_v59 = vld [vmem:[#allocation83_spill] sm:$0xff] }
 0x91b   : > { %6938 = vmatmul.mubr.msk.f32.vlgmr.msra.gmra.mrb[2].mxu1 %vm551_vm7, %v3405_v5  ;;  %6952 = vmatmul.mubr.msk.f32.vlgmr.msra.gmra.mrb[4].mxu0 %vm551_vm7, %v3405_v5  ;;  %v7471_v60 = vadd.f32 %v10025_v59, %v10024_v58  ;;  %v10037_v58 = vld [vmem:[#allocation101_spill] sm:$0xff] }
 0x91c   : > { %7306 = vmatpush3.bf16.msk.msra.mxu1 %vm9015_vm5, %v7304_v2  ;;  %7314 = vmatpush3.bf16.msk.msra.mxu0 %vm9015_vm5, %v7312_v4  ;;  %v10026_v4 = vld [vmem:[#allocation81_spill] sm:$0xff] }
 0x91d   : > { %6944 = vmatprep.mubr.msk.f32.mxu1 %vm7910_vm12, %v7911_v31  ;;  %6958 = vmatprep.mubr.msk.f32.mxu0 %vm7910_vm12, %v7911_v31 }
 0x91e   : > { %7315 = vmatprep.subr.bf16.mxu1 %v7909_v51  ;;  %7319 = vmatprep.subr.bf16.mxu0 %v7909_v51 }
 0x923   : > { %6945 = vmatmul.mubr.msk.f32.vlgmr.msra.gmra.mrb[2].mxu1 %vm551_vm7, %v7878_v0  ;;  %6959 = vmatmul.mubr.msk.f32.vlgmr.msra.gmra.mrb[4].mxu0 %vm551_vm7, %v7878_v0 }
 0x924   : > { %7318 = vmatpush3.bf16.msk.msra.mxu1 %vm9015_vm5, %v7316_v9  ;;  %7322 = vmatpush3.bf16.msk.msra.mxu0 %vm9015_vm5, %v7320_v19 }
 0x925   : > { %6965 = vmatprep.mubr.msk.f32.mxu1 %vm7910_vm12, %v7911_v31  ;;  %6972 = vmatprep.mubr.msk.f32.mxu0 %vm7910_vm12, %v7911_v31 }
 0x926   : > { %7323 = vmatprep.subr.bf16.mxu1 %v7909_v51  ;;  %7331 = vmatprep.subr.bf16.mxu0 %v7909_v51 }
 0x927   : > { %6966 = vmatmul.mubr.msk.f32.vlgmr.msra.gmra.mrb[4].mxu1 %vm551_vm7, %v3405_v5  ;;  %6973 = vmatmul.mubr.msk.f32.vlgmr.msra.gmra.mrb[6].mxu0 %vm551_vm7, %v7878_v0 }
 0x928   : > { %7326 = vmatpush3.bf16.msk.msra.mxu1 %vm9015_vm5, %v7324_v22  ;;  %7334 = vmatpush3.bf16.msk.msra.mxu0 %vm9015_vm5, %v7332_v26 }
 0x929   : > { %6979 = vmatprep.mubr.msk.f32.mxu1 %vm7910_vm12, %v7911_v31  ;;  %7327 = vmatprep.subr.bf16.mxu1 %v7909_v51 }
 0x92a   : > { %6993 = vmatprep.mubr.msk.f32.mxu0 %vm7910_vm12, %v7911_v31  ;;  %7335 = vmatprep.subr.bf16.mxu0 %v7909_v51 }
 0x92b   : > { %6980 = vmatmul.mubr.msk.f32.vlgmr.msra.gmra.mrb[6].mxu1 %vm551_vm7, %v3405_v5  ;;  %6994 = vmatmul.mubr.msk.f32.vlgmr.msra.gmra.mrb[8].mxu0 %vm551_vm7, %v3405_v5 }
 0x92c   : > { %7330 = vmatpush3.bf16.msk.msra.mxu1 %vm9015_vm5, %v7328_v29  ;;  %7338 = vmatpush3.bf16.msk.msra.mxu0 %vm9015_vm5, %v7336_v37 }
 0x92d   : > { %6986 = vmatprep.mubr.msk.f32.mxu1 %vm7910_vm12, %v7911_v31  ;;  %7000 = vmatprep.mubr.msk.f32.mxu0 %vm7910_vm12, %v7911_v31 }
 0x92e   : > { %7339 = vmatprep.subr.bf16.mxu1 %v7909_v51  ;;  %7343 = vmatprep.subr.bf16.mxu0 %v7909_v51 }
 0x933   : > { %6987 = vmatmul.mubr.msk.f32.vlgmr.msra.gmra.mrb[6].mxu1 %vm551_vm7, %v7874_v7  ;;  %7001 = vmatmul.mubr.msk.f32.vlgmr.msra.gmra.mrb[8].mxu0 %vm551_vm7, %v7874_v7 }
 0x934   : > { %7342 = vmatpush3.bf16.msk.msra.mxu1 %vm9015_vm5, %v7340_v42  ;;  %7007 = vmatprep.mubr.msk.f32.mxu1 %vm7910_vm12, %v7911_v31 }
 0x935   : > { %7346 = vmatpush3.bf16.msk.msra.mxu0 %vm9015_vm5, %v7344_v45  ;;  %7014 = vmatprep.mubr.msk.f32.mxu0 %vm7910_vm12, %v7911_v31 }
 0x936   : > { %7359 = vmatprep.subr.bf16.mxu0 %v7909_v51  ;;  %7347 = vmatprep.subr.bf16.mxu1 %v7909_v51 }
 0x937   : > { %7008 = vmatmul.mubr.msk.f32.vlgmr.msra.gmra.mrb[8].mxu1 %vm551_vm7, %v3405_v5  ;;  %v10027_v5 = vld [vmem:[#allocation84_spill] sm:$0xff] }
 0x938   : > { %7015 = vmatmul.mubr.msk.f32.vlgmr.msra.gmra.mrb[10].mxu0 %vm551_vm7, %v7874_v7  ;;  %7021 = vmatprep.mubr.msk.f32.mxu1 %vm7910_vm12, %v7911_v31  ;;  %v7473_v6 = vadd.f32 %v10027_v5, %v10026_v4  ;;  %v10042_v5 = vld [vmem:[#allocation96_spill] sm:$0xff] }
 0x939   : > { %7042 = vmatprep.mubr.msk.f32.mxu0 %vm7910_vm12, %v7911_v31  ;;  %7362 = vmatpush3.bf16.msk.msra.mxu0 %vm9015_vm5, %v7360_v50 }
 0x93a   : > { %7350 = vmatpush3.bf16.msk.msra.mxu1 %vm9015_vm5, %v7348_v34  ;;  %7363 = vmatprep.subr.bf16.mxu0 %v7909_v51 }
 0x93b   : > { %7351 = vmatprep.subr.bf16.mxu1 %v7909_v51 }
 0x9f6   : > { %v3566_v13 = vpop.f32.mrb[2].mxu1  ;;  %v3731_v14 = vpop.f32.mrb[4].mxu0 }
 0x9f7   : > { %v7468_v61 = vadd.f32 %v7467_v12, %v3566_v13  ;;  %v6946_v57 = vpop.f32.mrb[3].mxu1  ;;  %v6960_v53 = vpop.f32.mrb[5].mxu0  ;;  %v7470_v56 = vadd.f32 %v7469_v17, %v3731_v14  ;;  %v10031_v12 = vld [vmem:[#allocation82_spill] sm:$0xff] }
 0x9f9   : > { %v6385_v41 = vmul.f32 -1.442695, %v7468_v61  ;;  %v6392_v55 = vmul.f32 -1.442695, %v7470_v56  ;;  %v10033_v56 = vld [vmem:[#allocation89_spill] sm:$0xff] }
 0x9fa   : > { %v3817_v47 = vpop.f32.mrb[4].mxu1  ;;  %v3896_v54 = vpop.f32.mrb[6].mxu0 }
 0x9fb   : > { %7700 = vpow2.f32 %v6385_v41  ;;  %v6967_v46 = vpop.f32.mrb[5].mxu1  ;;  %v6974_v63 = vpop.f32.mrb[7].mxu0  ;;  %v3897_v29 = vadd.f32 %v10028_v28, %v3896_v54  ;;  %v3818_v37 = vadd.f32 %v10029_v36, %v3817_v47  ;;  %v10032_v41 = vld [vmem:[#allocation88_spill] sm:$0xff]  ;;  %v10034_v54 = vld [vmem:[#allocation86_spill] sm:$0xff] }
 0x9fc   : > { %7702 = vpow2.f32 %v6392_v55  ;;  %v7364_v47 = vpack.c.bf16 %v10033_v56, %v10032_v41  ;;  %v10035_v46 = vld [vmem:[#allocation87_spill] sm:$0xff]  ;;  %v10036_v55 = vld [vmem:[#allocation100_spill] sm:$0xff] }
 0x9fd   : > { %v7352_v63 = vpack.c.bf16 %v10035_v46, %v10034_v54  ;;  %v7368_v59 = vpack.c.bf16 %v10037_v58, %v10036_v55  ;;  %v10071_v41 = vld [vmem:[#allocation108_spill] sm:$0xff] }
 0xa05   : > { %v7701_v62 = vpop.eup %7700 }
 0xa06   : > { %v3574_v2 = vadd.f32 1.0, %v7701_v62  ;;  %v4064_v3 = vpop.f32.mrb[6].mxu1  ;;  %v4229_v40 = vpop.f32.mrb[8].mxu0  ;;  %v10039_v62 = vld [vmem:[#allocation99_spill] sm:$0xff] }
 0xa07   : > { %v7472_v1 = vadd.f32 %v7471_v60, %v4064_v3  ;;  %v6988_v9 = vpop.f32.mrb[7].mxu1  ;;  %v7002_v10 = vpop.f32.mrb[9].mxu0  ;;  %v7474_v19 = vadd.f32 %v7473_v6, %v4229_v40  ;;  %v10038_v60 = vld [vmem:[#allocation98_spill] sm:$0xff]  ;;  %v10041_v40 = vld [vmem:[#allocation91_spill] sm:$0xff]  ;;  %v10043_v6 = vld [vmem:[#allocation97_spill] sm:$0xff] }
 0xa08   : > { %7704 = vrcp.f32 %v3574_v2  ;;  %v7703_v8 = vpop.eup %7702  ;;  %v7356_v2 = vpack.c.bf16 %v10039_v62, %v10038_v60  ;;  %v10040_v3 = vld [vmem:[#allocation90_spill] sm:$0xff]  ;;  %v10044_v9 = vld [vmem:[#allocation116_spill] sm:$0xff]  ;;  %v10045_v10 = vld [vmem:[#allocation117_spill] sm:$0xff] }
 0xa09   : > { %v6405_v18 = vmul.f32 -1.442695, %v7472_v1  ;;  %v6412_v26 = vmul.f32 -1.442695, %v7474_v19  ;;  %v3739_v27 = vadd.f32 1.0, %v7703_v8  ;;  %v7376_v4 = vpack.c.bf16 %v10041_v40, %v10040_v3  ;;  %v10046_v19 = vld [vmem:[#allocation102_spill] sm:$0xff] }
 0xa0a   : > { %v4315_v20 = vpop.f32.mrb[8].mxu1  ;;  %v7372_v1 = vpack.c.bf16 %v10043_v6, %v10042_v5  ;;  %v10049_v8 = vld [vmem:[#allocation111_spill] sm:$0xff] }
 0xa0b   : > { %7706 = vpow2.f32 %v6405_v18  ;;  %v7009_v21 = vpop.f32.mrb[9].mxu1  ;;  %v4394_v22 = vpop.f32.mrb[10].mxu0  ;;  %v4316_v13 = vadd.f32 %v10031_v12, %v4315_v20  ;;  %v7384_v18 = vpack.c.bf16 %v10045_v10, %v10044_v9  ;;  %v10047_v20 = vld [vmem:[#allocation103_spill] sm:$0xff]  ;;  %v10064_v12 = vld [vmem:[#allocation146_spill] sm:$0xff]  ;;  %v10072_v10 = vld [vmem:[#allocation128_spill] sm:$0xff] }
 0xa0c   : > { %v7016_v25 = vpop.f32.mrb[11].mxu0  ;;  %7708 = vpow2.f32 %v6412_v26  ;;  %v4395_v50 = vadd.f32 %v10030_v49, %v4394_v22  ;;  %v7380_v21 = vpack.c.bf16 %v10047_v20, %v10046_v19  ;;  %v10048_v22 = vld [vmem:[#allocation110_spill] sm:$0xff] }
 0xa0d   : > { %7710 = vrcp.f32 %v3739_v27  ;;  %v7388_v25 = vpack.c.bf16 %v10049_v8, %v10048_v22  ;;  %v10050_v26 = vld [vmem:[#allocation118_spill] sm:$0xff]  ;;  %v10051_v27 = vld [vmem:[#allocation119_spill] sm:$0xff] }
 0xa0e   : > { %v7396_v28 = vpack.c.bf16 %v10051_v27, %v10050_v26  ;;  %v10075_v26 = vld [vmem:[#allocation132_spill] sm:$0xff] }
 0xa12   : > { %v7705_v30 = vpop.eup %7704 }
 0xa13   : > { %v3900_v39 = vmul.f32 %v7705_v30, %v3897_v29  ;;  %v10052_v29 = vld [vmem:[#allocation112_spill] sm:$0xff]  ;;  %v10053_v30 = vld [vmem:[#allocation113_spill] sm:$0xff] }
 0xa14   : > { %v7400_v36 = vpack.c.bf16 %v10053_v30, %v10052_v29 }
 0xa15   : > { %v7707_v24 = vpop.eup %7706  ;;  %v3901_v42 = vadd.f32 %v3900_v39, %v3818_v37  ;;  %v10054_v37 = vld [vmem:[#allocation122_spill] sm:$0xff]  ;;  %v10055_v39 = vld [vmem:[#allocation123_spill] sm:$0xff] }
 0xa16   : > { %v4072_v43 = vadd.f32 1.0, %v7707_v24  ;;  %v7709_v44 = vpop.eup %7708  ;;  %v7392_v24 = vpack.c.bf16 %v10055_v39, %v10054_v37 }
 0xa17   : > { %7712 = vtanh.f32 %v3901_v42  ;;  %v7711_v45 = vpop.eup %7710  ;;  %v4237_v48 = vadd.f32 1.0, %v7709_v44  ;;  %v10056_v42 = vld [vmem:[#allocation124_spill] sm:$0xff] }
 0xa18   : > { %7714 = vrcp.f32 %v4072_v43  ;;  %v3903_v32 = vsub.f32 1.0, %v7711_v45  ;;  %v3905_v35 = vmul.f32 %v7878_v0, %v7711_v45  ;;  %v10057_v43 = vld [vmem:[#allocation125_spill] sm:$0xff]  ;;  %v10058_v45 = vld [vmem:[#allocation120_spill] sm:$0xff] }
 0xa19   : > { %7716 = vrcp.f32 %v4237_v48  ;;  %v7404_v44 = vpack.c.bf16 %v10057_v43, %v10056_v42  ;;  %v10059_v48 = vld [vmem:[#allocation121_spill] sm:$0xff] }
 0xa1a   : > { %v7408_v49 = vpack.c.bf16 %v10059_v48, %v10058_v45 }
 0xa21   : > { %v7713_v33 = vpop.eup %7712 }
 0xa22   : > { %v7715_v34 = vpop.eup %7714  ;;  %v3904_v11 = vmul.f32 %v7713_v33, %v3903_v32  ;;  %v10061_v32 = vld [vmem:[#allocation115_spill] sm:$0xff] }
 0xa23   : > { %v4398_v14 = vmul.f32 %v7715_v34, %v4395_v50  ;;  %v7717_v16 = vpop.eup %7716  ;;  %v10060_v50 = vld [vmem:[#allocation114_spill] sm:$0xff] }
 0xa24   : > { %v9526_v0 = vadd.f32 %v3905_v35, %v3904_v11   ;;  %v4401_v17 = vsub.f32 1.0, %v7717_v16  ;;  %v4403_v57 = vmul.f32 %v7874_v7, %v7717_v16  ;;  %v7412_v33 = vpack.c.bf16 %v10061_v32, %v10060_v50  ;;  %v10062_v34 = vld [vmem:[#allocation126_spill] sm:$0xff]  ;;  %v10063_v35 = vld [vmem:[#allocation127_spill] sm:$0xff] }
 0xa25   : > { %v4399_v15 = vadd.f32 %v4398_v14, %v4316_v13  ;;  %v7416_v11 = vpack.c.bf16 %v10063_v35, %v10062_v34  ;;  %v10065_v13 = vld [vmem:[#allocation147_spill] sm:$0xff] }
 0xa26   : > { %v7424_v14 = vpack.c.bf16 %v10065_v13, %v10064_v12 }
 0xa27   : > { %7718 = vtanh.f32 %v4399_v15  ;;  %v10066_v15 = vld [vmem:[#allocation148_spill] sm:$0xff] }
 0xa31   : > { %v7719_v61 = vpop.eup %7718 }
 0xa32   : > { %v4402_v53 = vmul.f32 %v7719_v61, %v4401_v17  ;;  %v10068_v17 = vld [vmem:[#allocation104_spill] sm:$0xff]  ;;  %v10069_v61 = vld [vmem:[#allocation107_spill] sm:$0xff] }
 0xa34   : > { %v9533_v7 = vadd.f32 %v4403_v57, %v4402_v53   ;;  %v7475_v57 = vadd.f32 %v10069_v61, %v10068_v17  ;;  %v10070_v53 = vld [vmem:[#allocation105_spill] sm:$0xff] }
 0xa35   : > { %v7477_v56 = vadd.f32 %v10071_v41, %v10070_v53  ;;  %v10078_v41 = vld [vmem:[#allocation133_spill] sm:$0xff] }
 0xa36   : > { %7022 = vmatmul.mubr.msk.f32.vlgmr.msra.gmra.mrb[10].mxu1 %vm551_vm7, %v9533_v7  ;;  %7043 = vmatmul.mubr.msk.f32.vlgmr.msra.gmra.mrb[12].mxu0 %vm551_vm7, %v9533_v7 }
 0xa37   : > { %7366 = vmatpush3.bf16.msk.msra.mxu0 %vm9015_vm5, %v7364_v47  ;;  %7354 = vmatpush3.bf16.msk.msra.mxu1 %vm9015_vm5, %v7352_v63 }
 0xa38   : > { %7028 = vmatprep.mubr.msk.f32.mxu1 %vm7910_vm12, %v7911_v31  ;;  %7049 = vmatprep.mubr.msk.f32.mxu0 %vm7910_vm12, %v7911_v31 }
 0xa39   : > { %7367 = vmatprep.subr.bf16.mxu0 %v7909_v51  ;;  %7355 = vmatprep.subr.bf16.mxu1 %v7909_v51 }
 0xa3e   : > { %7029 = vmatmul.mubr.msk.f32.vlgmr.msra.gmra.mrb[10].mxu1 %vm551_vm7, %v9526_v0  ;;  %7050 = vmatmul.mubr.msk.f32.vlgmr.msra.gmra.mrb[12].mxu0 %vm551_vm7, %v9526_v0 }
 0xa3f   : > { %7370 = vmatpush3.bf16.msk.msra.mxu0 %vm9015_vm5, %v7368_v59  ;;  %7358 = vmatpush3.bf16.msk.msra.mxu1 %vm9015_vm5, %v7356_v2 }
 0xa40   : > { %7035 = vmatprep.mubr.msk.f32.mxu1 %vm7910_vm12, %v7911_v31  ;;  %7056 = vmatprep.mubr.msk.f32.mxu0 %vm7910_vm12, %v7911_v31 }
 0xa41   : > { %7375 = vmatprep.subr.bf16.mxu0 %v7909_v51  ;;  %7371 = vmatprep.subr.bf16.mxu1 %v7909_v51 }
 0xa46   : > { %7036 = vmatmul.mubr.msk.f32.vlgmr.msra.gmra.mrb[10].mxu1 %vm551_vm7, %v7870_v23  ;;  %7057 = vmatmul.mubr.msk.f32.vlgmr.msra.gmra.mrb[12].mxu0 %vm551_vm7, %v7870_v23 }
 0xa47   : > { %7378 = vmatpush3.bf16.msk.msra.mxu0 %vm9015_vm5, %v7376_v4  ;;  %7374 = vmatpush3.bf16.msk.msra.mxu1 %vm9015_vm5, %v7372_v1 }
 0xa48   : > { %7063 = vmatprep.mubr.msk.f32.mxu1 %vm7910_vm12, %v7911_v31  ;;  %7070 = vmatprep.mubr.msk.f32.mxu0 %vm7910_vm12, %v7911_v31 }
 0xa49   : > { %7383 = vmatprep.subr.bf16.mxu0 %v7909_v51  ;;  %7379 = vmatprep.subr.bf16.mxu1 %v7909_v51 }
 0xa4a   : > { %7064 = vmatmul.mubr.msk.f32.vlgmr.msra.gmra.mrb[12].mxu1 %vm551_vm7, %v9533_v7  ;;  %7071 = vmatmul.mubr.msk.f32.vlgmr.msra.gmra.mrb[14].mxu0 %vm551_vm7, %v9526_v0 }
 0xa4b   : > { %7386 = vmatpush3.bf16.msk.msra.mxu0 %vm9015_vm5, %v7384_v18  ;;  %7382 = vmatpush3.bf16.msk.msra.mxu1 %vm9015_vm5, %v7380_v21  ;;  %v10073_v18 = vld [vmem:[#allocation131_spill] sm:$0xff] }
 0xa4c   : > { %7077 = vmatprep.mubr.msk.f32.mxu1 %vm7910_vm12, %v7911_v31  ;;  %7084 = vmatprep.mubr.msk.f32.mxu0 %vm7910_vm12, %v7911_v31  ;;  %v7479_v19 = vadd.f32 %v10073_v18, %v10072_v10 }
 0xa4d   : > { %7387 = vmatprep.subr.bf16.mxu0 %v7909_v51  ;;  %7395 = vmatprep.subr.bf16.mxu1 %v7909_v51 }
 0xa4e   : > { %7078 = vmatmul.mubr.msk.f32.vlgmr.msra.gmra.mrb[14].mxu1 %vm551_vm7, %v7870_v23  ;;  %7085 = vmatmul.mubr.msk.f32.vlgmr.msra.gmra.mrb[16].mxu0 %vm551_vm7, %v9533_v7 }
 0xa4f   : > { %7390 = vmatpush3.bf16.msk.msra.mxu0 %vm9015_vm5, %v7388_v25  ;;  %7398 = vmatpush3.bf16.msk.msra.mxu1 %vm9015_vm5, %v7396_v28  ;;  %v10074_v25 = vld [vmem:[#allocation129_spill] sm:$0xff] }
 0xa50   : > { %7105 = vmatprep.mubr.msk.f32.mxu1 %vm7910_vm12, %v7911_v31  ;;  %7091 = vmatprep.mubr.msk.f32.mxu0 %vm7910_vm12, %v7911_v31  ;;  %v7481_v27 = vadd.f32 %v10075_v26, %v10074_v25  ;;  %v10076_v28 = vld [vmem:[#allocation109_spill] sm:$0xff] }
 0xa51   : > { %7391 = vmatprep.subr.bf16.mxu0 %v7909_v51  ;;  %7399 = vmatprep.subr.bf16.mxu1 %v7909_v51 }
 0xa52   : > { %7106 = vmatmul.mubr.msk.f32.vlgmr.msra.gmra.mrb[16].mxu1 %vm551_vm7, %v9533_v7 }
 0xa53   : > { %7402 = vmatpush3.bf16.msk.msra.mxu1 %vm9015_vm5, %v7400_v36  ;;  %7112 = vmatprep.mubr.msk.f32.mxu1 %vm7910_vm12, %v7911_v31 }
 0xa54   : > { %7403 = vmatprep.subr.bf16.mxu1 %v7909_v51 }
 0xa56   : > { %7092 = vmatmul.mubr.msk.f32.vlgmr.msra.gmra.mrb[16].mxu0 %vm551_vm7, %v9526_v0 }
 0xa57   : > { %7394 = vmatpush3.bf16.msk.msra.mxu0 %vm9015_vm5, %v7392_v24  ;;  %7098 = vmatprep.mubr.msk.f32.mxu0 %vm7910_vm12, %v7911_v31  ;;  %v10077_v24 = vld [vmem:[#allocation106_spill] sm:$0xff] }
 0xa58   : > { %7407 = vmatprep.subr.bf16.mxu0 %v7909_v51 }
 0xa5a   : > { %7113 = vmatmul.mubr.msk.f32.vlgmr.msra.gmra.mrb[16].mxu1 %vm551_vm7, %v9526_v0 }
 0xa5b   : > { %7406 = vmatpush3.bf16.msk.msra.mxu1 %vm9015_vm5, %v7404_v44  ;;  %7119 = vmatprep.mubr.msk.f32.mxu1 %vm7910_vm12, %v7911_v31 }
 0xa5c   : > { %7411 = vmatprep.subr.bf16.mxu1 %v7909_v51 }
 0xa5e   : > { %7099 = vmatmul.mubr.msk.f32.vlgmr.msra.gmra.mrb[16].mxu0 %vm551_vm7, %v7866_v38 }
 0xa5f   : > { %7410 = vmatpush3.bf16.msk.msra.mxu0 %vm9015_vm5, %v7408_v49  ;;  %7126 = vmatprep.mubr.msk.f32.mxu0 %vm7910_vm12, %v7911_v31 }
 0xa60   : > { %7415 = vmatprep.subr.bf16.mxu0 %v7909_v51 }
 0xa62   : > { %7120 = vmatmul.mubr.msk.f32.vlgmr.msra.gmra.mrb[16].mxu1 %vm551_vm7, %v7866_v38  ;;  %7127 = vmatmul.mubr.msk.f32.vlgmr.msra.gmra.mrb[18].mxu0 %vm551_vm7, %v9533_v7 }
 0xa63   : > { %7414 = vmatpush3.bf16.msk.msra.mxu1 %vm9015_vm5, %v7412_v33  ;;  %7133 = vmatprep.mubr.msk.f32.mxu1 %vm7910_vm12, %v7911_v31 }
 0xa64   : > { %7418 = vmatpush3.bf16.msk.msra.mxu0 %vm9015_vm5, %v7416_v11  ;;  %7140 = vmatprep.mubr.msk.f32.mxu0 %vm7910_vm12, %v7911_v31 }
 0xa65   : > { %7423 = vmatprep.subr.bf16.mxu0 %v7909_v51  ;;  %7419 = vmatprep.subr.bf16.mxu1 %v7909_v51  ;;  %v10067_v51 = vld [vmem:[#allocation149_spill] sm:$0xff] }
 0xa66   : > { %7134 = vmatmul.mubr.msk.f32.vlgmr.msra.gmra.mrb[18].mxu1 %vm551_vm7, %v9526_v0  ;;  %v7420_v16 = vpack.c.bf16 %v10067_v51, %v10066_v15 }
 0xa67   : > { %7141 = vmatmul.mubr.msk.f32.vlgmr.msra.gmra.mrb[20].mxu0 %vm551_vm7, %v7866_v38  ;;  %7147 = vmatprep.mubr.msk.f32.mxu1 %vm7910_vm12, %v7911_v31 }
 0xa68   : > { %7154 = vmatprep.mubr.msk.f32.mxu0 %vm7910_vm12, %v7911_v31  ;;  %7426 = vmatpush3.bf16.msk.msra.mxu0 %vm9015_vm5, %v7424_v14 }
 0xa69   : > { %7422 = vmatpush3.bf16.msk.msra.mxu1 %vm9015_vm5, %v7420_v16 }
 0xb19   : > { %v4642_v47 = vpop.f32.mrb[10].mxu1  ;;  %v4881_v31 = vpop.f32.mrb[12].mxu0 }
 0xb1a   : > { %v7476_v54 = vadd.f32 %v7475_v57, %v4642_v47  ;;  %v7037_v46 = vpop.f32.mrb[11].mxu1  ;;  %v7058_v63 = vpop.f32.mrb[13].mxu0  ;;  %v7478_v58 = vadd.f32 %v7477_v56, %v4881_v31  ;;  %v10079_v31 = vld [vmem:[#allocation130_spill] sm:$0xff] }
 0xb1c   : > { %v6427_v55 = vmul.f32 -1.442695, %v7476_v54  ;;  %v6436_v40 = vmul.f32 -1.442695, %v7478_v58 }
 0xb1d   : > { %v4961_v59 = vpop.f32.mrb[12].mxu1  ;;  %v5034_v60 = vpop.f32.mrb[14].mxu0 }
 0xb1e   : > { %7720 = vpow2.f32 %v6427_v55  ;;  %v5035_v62 = vadd.f32 %v5034_v60, %v4961_v59  ;;  %v7065_v2 = vpop.f32.mrb[13].mxu1  ;;  %v7072_v3 = vpop.f32.mrb[15].mxu0 }
 0xb1f   : > { %7722 = vpow2.f32 %v6436_v40 }
 0xb20   : > { %v5044_v42 = vadd.f32 %v10077_v24, %v5035_v62 }
 0xb21   : > { %v5120_v4 = vpop.f32.mrb[14].mxu1 }
 0xb22   : > { %v7079_v5 = vpop.f32.mrb[15].mxu1  ;;  %v5121_v29 = vadd.f32 %v10076_v28, %v5120_v4 }
 0xb28   : > { %v7721_v6 = vpop.eup %7720 }
 0xb29   : > { %v4650_v1 = vadd.f32 1.0, %v7721_v6  ;;  %v7723_v9 = vpop.eup %7722  ;;  %v10080_v6 = vld [vmem:[#allocation150_spill] sm:$0xff] }
 0xb2a   : > { %v4889_v20 = vadd.f32 1.0, %v7723_v9 }
 0xb2b   : > { %7724 = vrcp.f32 %v4650_v1 }
 0xb2c   : > { %7726 = vrcp.f32 %v4889_v20 }
 0xb31   : > { %v5362_v21 = vpop.f32.mrb[16].mxu0 }
 0xb32   : > { %v7480_v22 = vadd.f32 %v7479_v19, %v5362_v21  ;;  %v7100_v8 = vpop.f32.mrb[17].mxu0 }
 0xb34   : > { %v6453_v30 = vmul.f32 -1.442695, %v7480_v22 }
 0xb35   : > { %v7725_v36 = vpop.eup %7724  ;;  %v5601_v37 = vpop.f32.mrb[16].mxu1 }
 0xb36   : > { %v5681_v39 = vpop.f32.mrb[18].mxu0  ;;  %v5124_v43 = vmul.f32 %v7725_v36, %v5121_v29  ;;  %7728 = vpow2.f32 %v6453_v30  ;;  %v7482_v44 = vadd.f32 %v7481_v27, %v5601_v37  ;;  %v7121_v45 = vpop.f32.mrb[17].mxu1 }
 0xb37   : > { %v7128_v48 = vpop.f32.mrb[19].mxu0  ;;  %v7727_v12 = vpop.eup %7726 }
 0xb38   : > { %v5125_v49 = vadd.f32 %v5124_v43, %v5044_v42  ;;  %v6462_v50 = vmul.f32 -1.442695, %v7482_v44  ;;  %v5127_v15 = vsub.f32 1.0, %v7727_v12  ;;  %v5129_v17 = vmul.f32 %v7870_v23, %v7727_v12 }
 0xb39   : > { %v5754_v32 = vpop.f32.mrb[18].mxu1 }
 0xb3a   : > { %7730 = vtanh.f32 %v5125_v49  ;;  %v5755_v33 = vadd.f32 %v5754_v32, %v5681_v39  ;;  %v7135_v34 = vpop.f32.mrb[19].mxu1  ;;  %v5840_v35 = vpop.f32.mrb[20].mxu0 }
 0xb3b   : > { %v7142_v11 = vpop.f32.mrb[21].mxu0  ;;  %7732 = vpow2.f32 %v6462_v50  ;;  %v5841_v56 = vadd.f32 %v10078_v41, %v5840_v35 }
 0xb3c   : > { %v5764_v54 = vadd.f32 %v10079_v31, %v5755_v33 }
 0xb40   : > { %v7729_v13 = vpop.eup %7728 }
 0xb41   : > { %v5370_v14 = vadd.f32 1.0, %v7729_v13 }
 0xb43   : > { %7734 = vrcp.f32 %v5370_v14 }
 0xb44   : > { %v7731_v51 = vpop.eup %7730 }
 0xb45   : > { %v5128_v16 = vmul.f32 %v7731_v51, %v5127_v15  ;;  %v7733_v61 = vpop.eup %7732 }
 0xb46   : > { %v5609_v53 = vadd.f32 1.0, %v7733_v61 }
 0xb47   : > { %v5130_v57 = vadd.f32 %v5129_v17, %v5128_v16  }
 0xb48   : > { %7736 = vrcp.f32 %v5609_v53 }
 0xb49   : > { %7155 = vmatmul.mubr.msk.f32.vlgmr.msra.gmra.mrb[22].mxu0 %vm551_vm7, %v5130_v57  ;;  %v10084_v42 = vmov %v5130_v57 }
 0xb4d   : > { %v7735_v47 = vpop.eup %7734 }
 0xb4e   : > { %v5844_v46 = vmul.f32 %v7735_v47, %v5841_v56 }
 0xb50   : > { %v5845_v63 = vadd.f32 %v5844_v46, %v5764_v54 }
 0xb52   : > { %7738 = vtanh.f32 %v5845_v63  ;;  %v7737_v55 = vpop.eup %7736 }
 0xb53   : > { %v5847_v58 = vsub.f32 1.0, %v7737_v55  ;;  %v5849_v23 = vmul.f32 %v7866_v38, %v7737_v55 }
 0xb5c   : > { %v7739_v59 = vpop.eup %7738 }
 0xb5d   : > { %v5848_v60 = vmul.f32 %v7739_v59, %v5847_v58 }
 0xb5f   : > { %v5850_v62 = vadd.f32 %v5849_v23, %v5848_v60   ;;  %v10082_v23 = vmov %v5130_v57 }
 0xb61   : > { %7148 = vmatmul.mubr.msk.f32.vlgmr.msra.gmra.mrb[20].mxu1 %vm551_vm7, %v5850_v62  ;;  %v10081_v38 = vmov %v5850_v62  ;;  %v10083_v24 = vmov %v5850_v62 }
 0xc1c   : > { %v5999_v2 = vpop.f32.mrb[22].mxu0 }
 0xc1d   : > { %v7156_v3 = vpop.f32.mrb[23].mxu0 }
 0xc33   :  { %3149 = sbr.rel (!%p3147_p5) target bundleno = 1888 (0x760), region = 328 }
 0xc34   : > { %v5923_v40 = vpop.f32.mrb[20].mxu1 }
 0xc35   : > { %v6000_v4 = vadd.f32 %v5999_v2, %v5923_v40  ;;  %v7149_v5 = vpop.f32.mrb[21].mxu1 }
 0xc37   : > { %v6009_v1 = vadd.f32 %v10080_v6, %v6000_v4 }
 0xc39   : > { %6012 = vst [vmem:[%s6011_s4] sm:$0xff] %v6009_v1 }
 0xc3a   :  { %7751 = shalt.err (!%p7748_p10)
}
 0xc3b   :  { %s7752_s24 = scalar_lea.hbm %s9763_s25, 1536 }
 0xc3c   :  { %p7753_p11 = scmp.ne.s32.totalorder %s9763_s25, %s7752_s24  ;;  %p7756_p12 = scmp.lt.u32.totalorder %s7752_s24, %s9763_s25 }
 0xc3e   :  { %p7758_p13 = pnand %p7756_p12, %p7753_p11 }
 0xc40   :  { %7761 = shalt.err (!%p7758_p13)
}
 0xc41   :  { %s7913_s0 = smov 128   ;;  %s7914_s27 = smov 8  }
 0xc42   :  { %6024 = dma.vmem_to_hbm [thread:$0]  %s6019_s28, 1536, %s9763_s25, [#allocation8], %s7913_s0, %s7913_s0, %s7914_s27  }
 0xc43   :  { %7826 = dma.done.wait [#allocation8], 1536  }
 0xc44   :  { %7827 = vsyncadd [#allocation8], 4294965760 }
 0xc45   :  { %6028 = vsyncpa [#allocation8], 1 }

</bundles_post_ra>
